<compile_context>
chip_gen: v7x
topology: tpu7x:2x2x1
jax: 0.10.0
libtpu: 0.0.40
codegen_flags: <defaults>
</compile_context>

<pallas_src>
import math

import jax
import jax.numpy as jnp
from jax.experimental import pallas as pl
from jax.experimental.pallas import tpu as pltpu

# ----------------------------- sizes -----------------------------
B = 2                       # batch
C_IN = 3                    # image channels
IMG = 16                    # image spatial size
PATCH = 4                   # patchify conv kernel == stride
ENC_SIZE = IMG // PATCH     # 4  -> "encoded_image_size"
P = ENC_SIZE * ENC_SIZE     # 16 -> num_pixels
CPP = C_IN * PATCH * PATCH  # 48 -> im2col row width
E = 32                      # encoder_dim
A = 16                      # attention_dim
M = 16                      # embed_dim
D = 32                      # decoder_dim
V = 64                      # vocab_size
T_CAP = 8                   # caption length
T = T_CAP - 1               # decode_length

# ---------------- weight-slab layout (rows; all offsets are multiples of 8) ----------------
R_CONV = 0                   # (CPP, E)    patch-embed conv, pre-transposed
R_EA = R_CONV + CPP          # (E, A)      encoder_att
R_INIT = R_EA + E            # (E, 2D)     [init_h | init_c]
R_HPROJ = R_INIT + E         # (D, A+E)    [decoder_att | f_beta]
R_IHE = R_HPROJ + D          # (M, 4D)     W_ih embedding half
R_XH = R_IHE + M             # (E+D, 4D)   [W_ih attention half ; W_hh]
R_FC = R_XH + E + D          # (D, V)      fc
W_ROWS = R_FC + D            # 256
W_COLS = 4 * D               # 128

# ---------------- bias-slab layout (one (8,128) vreg) ----------------
BR_CONV, BR_EA, BR_INIT, BR_HPROJ, BR_GATE, BR_FC, BR_FA, BR_FAB = range(8)


# ------------------------- fused kernel -------------------------
def _cnn_to_rnn_kernel(x_ref, emb_ref, w_ref, b_ref, preds_ref, alphas_ref):
    # ---------------- encoder prologue (patch-embed conv + ReLU) ----------------
    feat = jnp.maximum(
        jnp.dot(x_ref[...], w_ref[R_CONV:R_CONV + CPP, :E],
                preferred_element_type=jnp.float32)
        + b_ref[BR_CONV:BR_CONV + 1, :E],
        0.0)                                           # (B*P, E)
    enc = feat.reshape(B, P, E)                        # encoder_out (B, P, E)

    # ---------------- init_hidden_state (fused init_h | init_c) ----------------
    mean_enc = jnp.mean(enc, axis=1)                   # (B, E)
    hc0 = (jnp.dot(mean_enc, w_ref[R_INIT:R_INIT + E, :2 * D],
                   preferred_element_type=jnp.float32)
           + b_ref[BR_INIT:BR_INIT + 1, :2 * D])       # (B, 2D)
    h = hc0[:, :D]
    c = hc0[:, D:2 * D]

    # ---------------- hoisted time-invariant projections (kept in vregs) ----------------
    att1 = (jnp.dot(feat, w_ref[R_EA:R_EA + E, :A],
                    preferred_element_type=jnp.float32)
            + b_ref[BR_EA:BR_EA + 1, :A]).reshape(B, P, A)         # (B, P, A)
    # embedding half of the LSTM gate pre-activation, all T steps in one matmul
    eg = (jnp.dot(emb_ref[...], w_ref[R_IHE:R_IHE + M, :],
                  preferred_element_type=jnp.float32)
          + b_ref[BR_GATE:BR_GATE + 1, :])                          # (T*B, 4D)

    w_fa = b_ref[BR_FA:BR_FA + 1, :A]                  # (1, A) full_att weight row
    b_fa = b_ref[BR_FAB:BR_FAB + 1, :P]                # (1, P) full_att bias (broadcast)
    b_hproj = b_ref[BR_HPROJ:BR_HPROJ + 1, :A + E]     # [b_da | b_fb]

    # ---------------- sequential decode loop (statically unrolled, T = 7) ----------------
    h_list = []
    a_list = []
    for t in range(T):
        # Re-load loop weights from VMEM each step (cheap vld; keeps live ranges short).
        w_hproj = w_ref[R_HPROJ:R_HPROJ + D, :A + E]   # [w_da | w_fb]    (D, A+E)
        w_xh = w_ref[R_XH:R_XH + E + D, :]             # [w_iha ; w_hh]   (E+D, 4D)

        # ---- fused h-only projections: decoder_att(h) | f_beta(h) ----
        hproj = jnp.dot(h, w_hproj, preferred_element_type=jnp.float32) + b_hproj
        att2 = hproj[:, :A]                            # (B, A)
        gate = jax.nn.sigmoid(hproj[:, A:A + E])       # (B, E)

        # ---- attention scores + softmax over pixels ----
        att_h = jnp.maximum(att1 + att2[:, None, :], 0.0)               # (B, P, A)
        att = jnp.sum(att_h * w_fa[None, :, :], axis=-1) + b_fa          # (B, P)
        att = att - jnp.max(att, axis=1, keepdims=True)
        ex = jnp.exp(att)
        alpha = ex * pl.reciprocal(jnp.sum(ex, axis=1, keepdims=True), approx=True)
        awe = gate * jnp.sum(enc * alpha[:, :, None], axis=1)            # (B, E)

        # ---- fused LSTMCell: gates = emb-part + [awe, h] @ [w_iha ; w_hh] ----
        xh = jnp.concatenate([awe, h], axis=1)                           # (B, E+D)
        gates = (eg[t * B:(t + 1) * B, :]
                 + jnp.dot(xh, w_xh, preferred_element_type=jnp.float32))  # (B, 4D)
        i_g = jax.nn.sigmoid(gates[:, 0 * D:1 * D])
        f_g = jax.nn.sigmoid(gates[:, 1 * D:2 * D])
        g_g = jnp.tanh(gates[:, 2 * D:3 * D])
        o_g = jax.nn.sigmoid(gates[:, 3 * D:4 * D])
        c = f_g * c + i_g * g_g
        h = o_g * jnp.tanh(c)

        h_list.append(h)
        a_list.append(alpha)

    # ---------------- bulk fc + single output stores (off the recurrence) ----------------
    # fc(dropout(h)) for all steps at once; dropout is eval-mode identity.
    hs = jnp.concatenate(h_list, axis=0)                                 # (T*B, D)
    preds_ref[...] = (jnp.dot(hs, w_ref[R_FC:R_FC + D, :V],
                              preferred_element_type=jnp.float32)
                      + b_ref[BR_FC:BR_FC + 1, :V])                      # (T*B, V)
    alphas_ref[...] = jnp.concatenate(a_list, axis=0)                    # (T*B, P)


# ------------------------- weight packing (do once, outside the hot path) -------------------------
def pack_params(p):
    """Pre-transpose / fuse / pack all static weights into two slabs (2 DMAs)."""
    w_ih = p["w_ih"]

    wslab = jnp.zeros((W_ROWS, W_COLS), jnp.float32)

    def put(slab, r, w):
        return slab.at[r:r + w.shape[0], :w.shape[1]].set(w.astype(jnp.float32))

    wslab = put(wslab, R_CONV, p["w_conv"].reshape(E, CPP).T)
    wslab = put(wslab, R_EA, p["w_ea"].T)
    wslab = put(wslab, R_INIT, jnp.concatenate([p["w_init_h"].T, p["w_init_c"].T], axis=1))
    wslab = put(wslab, R_HPROJ, jnp.concatenate([p["w_da"].T, p["w_fb"].T], axis=1))
    wslab = put(wslab, R_IHE, w_ih[:, :M].T)
    wslab = put(wslab, R_XH, jnp.concatenate([w_ih[:, M:].T, p["w_hh"].T], axis=0))
    wslab = put(wslab, R_FC, p["w_fc"].T)

    bslab = jnp.zeros((8, 128), jnp.float32)

    def putb(slab, r, b):
        b = jnp.asarray(b, jnp.float32).reshape(1, -1)
        return slab.at[r:r + 1, :b.shape[1]].set(b)

    bslab = putb(bslab, BR_CONV, p["b_conv"])
    bslab = putb(bslab, BR_EA, p["b_ea"])
    bslab = putb(bslab, BR_INIT, jnp.concatenate([p["b_init_h"], p["b_init_c"]], axis=1))
    bslab = putb(bslab, BR_HPROJ, jnp.concatenate([p["b_da"], p["b_fb"]], axis=1))
    bslab = putb(bslab, BR_GATE, p["b_ih"] + p["b_hh"])
    bslab = putb(bslab, BR_FC, p["b_fc"])
    bslab = putb(bslab, BR_FA, p["w_fa"])
    bslab = putb(bslab, BR_FAB, jnp.broadcast_to(p["b_fa"], (1, P)))

    return {"wslab": wslab, "bslab": bslab, "embedding": p["embedding"]}


# ------------------------- wrapper -------------------------
def cnn_to_rnn_forward(images, captions, packed):
    """images: (B, C, IMG, IMG) NCHW; captions: (B, T_CAP) int32
       -> (predictions (B, T, V), alphas (B, T, P))."""
    assert images.shape == (B, C_IN, IMG, IMG), "batch/shape must match module constants"
    assert captions.shape == (B, T_CAP), "caption shape must match module constants"

    # im2col for a kernel=stride=PATCH conv (pure layout glue).
    x = images.reshape(B, C_IN, ENC_SIZE, PATCH, ENC_SIZE, PATCH)
    x = x.transpose(0, 2, 4, 1, 3, 5).reshape(B * P, CPP)

    # Embedding lookup + time-major flatten: (T*B, M).
    emb = packed["embedding"][captions[:, :T]]                     # (B, T, M)
    emb_tm = jnp.transpose(emb, (1, 0, 2)).reshape(T * B, M)

    vmem = pl.BlockSpec(memory_space=pltpu.MemorySpace.VMEM)
    preds_tm, alphas_tm = pl.pallas_call(
        _cnn_to_rnn_kernel,
        out_shape=(jax.ShapeDtypeStruct((T * B, V), jnp.float32),
                   jax.ShapeDtypeStruct((T * B, P), jnp.float32)),
        in_specs=[vmem, vmem, vmem, vmem],
        out_specs=(vmem, vmem),
    )(x, emb_tm, packed["wslab"], packed["bslab"])

    # Back to the PyTorch (B, T, ...) layout (tiny XLA copies, outside the kernel).
    preds = jnp.transpose(preds_tm.reshape(T, B, V), (1, 0, 2))
    alphas = jnp.transpose(alphas_tm.reshape(T, B, P), (1, 0, 2))
    return preds, alphas


# ------------------------- parameter init -------------------------
def _uniform(key, shape, bound):
    return jax.random.uniform(key, shape, jnp.float32, -bound, bound)


def init_params(key):
    ks = jax.random.split(key, 24)
    p = {}
    # encoder patch-embedding conv (stand-in for resnet18 backbone, out channels = E)
    fan = CPP
    p["w_conv"] = _uniform(ks[0], (E, C_IN, PATCH, PATCH), 1.0 / math.sqrt(fan))
    p["b_conv"] = _uniform(ks[1], (E,), 1.0 / math.sqrt(fan))
    # embedding: uniform(-0.1, 0.1) per init_weights
    p["embedding"] = _uniform(ks[2], (V, M), 0.1)
    # attention linears (PyTorch default Linear init ~ U(-1/sqrt(fan_in), 1/sqrt(fan_in)))
    p["w_ea"] = _uniform(ks[3], (A, E), 1.0 / math.sqrt(E))
    p["b_ea"] = _uniform(ks[4], (1, A), 1.0 / math.sqrt(E))
    p["w_da"] = _uniform(ks[5], (A, D), 1.0 / math.sqrt(D))
    p["b_da"] = _uniform(ks[6], (1, A), 1.0 / math.sqrt(D))
    p["w_fa"] = _uniform(ks[7], (1, A), 1.0 / math.sqrt(A))
    p["b_fa"] = _uniform(ks[8], (1, 1), 1.0 / math.sqrt(A))
    # init_h / init_c
    p["w_init_h"] = _uniform(ks[9], (D, E), 1.0 / math.sqrt(E))
    p["b_init_h"] = _uniform(ks[10], (1, D), 1.0 / math.sqrt(E))
    p["w_init_c"] = _uniform(ks[11], (D, E), 1.0 / math.sqrt(E))
    p["b_init_c"] = _uniform(ks[12], (1, D), 1.0 / math.sqrt(E))
    # f_beta
    p["w_fb"] = _uniform(ks[13], (E, D), 1.0 / math.sqrt(D))
    p["b_fb"] = _uniform(ks[14], (1, E), 1.0 / math.sqrt(D))
    # LSTMCell (input = M + E, hidden = D), gate order i, f, g, o
    p["w_ih"] = _uniform(ks[15], (4 * D, M + E), 1.0 / math.sqrt(D))
    p["b_ih"] = _uniform(ks[16], (1, 4 * D), 1.0 / math.sqrt(D))
    p["w_hh"] = _uniform(ks[17], (4 * D, D), 1.0 / math.sqrt(D))
    p["b_hh"] = _uniform(ks[18], (1, 4 * D), 1.0 / math.sqrt(D))
    # fc: weight uniform(-0.1, 0.1), bias zeros (per init_weights)
    p["w_fc"] = _uniform(ks[19], (V, D), 0.1)
    p["b_fc"] = jnp.zeros((1, V), jnp.float32)
    return p


# ----------------------------- main -----------------------------
if __name__ == "__main__":
    key = jax.random.PRNGKey(0)
    kp, kimg, kcap = jax.random.split(key, 3)
    params = init_params(kp)
    packed = pack_params(params)          # pack/fuse weights once, outside the hot path
    images = jax.random.normal(kimg, (B, C_IN, IMG, IMG), jnp.float32)
    captions = jax.random.randint(kcap, (B, T_CAP), 0, V)

    fwd = jax.jit(cnn_to_rnn_forward)
    preds, alphas = fwd(images, captions, packed)
    jax.block_until_ready((preds, alphas))

    assert preds.shape == (B, T, V) and preds.dtype == jnp.float32
    assert alphas.shape == (B, T, P) and alphas.dtype == jnp.float32
    print("KERNEL_OK")
</pallas_src>

<mosaic_0001>
module attributes {stable_mosaic.version = 11 : i64} {
  func.func @_cnn_to_rnn_kernel(%arg0: memref<32x48xf32, #tpu.memory_space<vmem>>, %arg1: memref<14x16xf32, #tpu.memory_space<vmem>>, %arg2: memref<256x128xf32, #tpu.memory_space<vmem>>, %arg3: memref<8x128xf32, #tpu.memory_space<vmem>>, %arg4: memref<14x64xf32, #tpu.memory_space<vmem>>, %arg5: memref<14x16xf32, #tpu.memory_space<vmem>>) attributes {dimension_semantics = [], scalar_prefetch = 0 : i64, scratch_operands = 0 : i64, tpu.core_type = #tpu.core_type<tc>} {
    %c0 = arith.constant 0 : index
    %c0_0 = arith.constant 0 : index
    %0 = vector.load %arg0[%c0, %c0_0] : memref<32x48xf32, #tpu.memory_space<vmem>>, vector<32x48xf32>
    %c0_1 = arith.constant 0 : index
    %c0_2 = arith.constant 0 : index
    %1 = vector.load %arg2[%c0_1, %c0_2] : memref<256x128xf32, #tpu.memory_space<vmem>>, vector<48x32xf32>
    %cst = arith.constant dense<0.000000e+00> : vector<32x32xf32>
    %2 = tpu.matmul %0, %1, %cst {dimension_numbers = #tpu.dot_dimension_numbers<[1], [0], [0], [1], [0, 0, 1, 1], [], []>} : vector<32x48xf32>, vector<48x32xf32>, vector<32x32xf32> -> vector<32x32xf32>
    %c0_3 = arith.constant 0 : index
    %c0_4 = arith.constant 0 : index
    %3 = vector.load %arg3[%c0_3, %c0_4] : memref<8x128xf32, #tpu.memory_space<vmem>>, vector<1x32xf32>
    %4 = vector.broadcast %3 : vector<1x32xf32> to vector<32x32xf32>
    %5 = arith.addf %2, %4 : vector<32x32xf32>
    %cst_5 = arith.constant 0.000000e+00 : f32
    %6 = vector.broadcast %cst_5 : f32 to vector<32x32xf32>
    %7 = arith.maximumf %5, %6 : vector<32x32xf32>
    %8 = vector.shape_cast %7 : vector<32x32xf32> to vector<2x16x32xf32>
    %cst_6 = arith.constant dense<0.000000e+00> : vector<2x32xf32>
    %9 = vector.multi_reduction <add>, %8, %cst_6 [1] : vector<2x16x32xf32> to vector<2x32xf32>
    %cst_7 = arith.constant 1.600000e+01 : f32
    %10 = vector.broadcast %cst_7 : f32 to vector<2x32xf32>
    %11 = arith.divf %9, %10 : vector<2x32xf32>
    %c80 = arith.constant 80 : index
    %c0_8 = arith.constant 0 : index
    %12 = vector.load %arg2[%c80, %c0_8] : memref<256x128xf32, #tpu.memory_space<vmem>>, vector<32x64xf32>
    %cst_9 = arith.constant dense<0.000000e+00> : vector<2x64xf32>
    %13 = tpu.matmul %11, %12, %cst_9 {dimension_numbers = #tpu.dot_dimension_numbers<[1], [0], [0], [1], [0, 0, 1, 1], [], []>} : vector<2x32xf32>, vector<32x64xf32>, vector<2x64xf32> -> vector<2x64xf32>
    %c2 = arith.constant 2 : index
    %c0_10 = arith.constant 0 : index
    %14 = vector.load %arg3[%c2, %c0_10] : memref<8x128xf32, #tpu.memory_space<vmem>>, vector<1x64xf32>
    %15 = vector.broadcast %14 : vector<1x64xf32> to vector<2x64xf32>
    %16 = arith.addf %13, %15 : vector<2x64xf32>
    %17 = vector.extract_strided_slice %16 {offsets = [0, 0], sizes = [2, 32], strides = [1, 1]} : vector<2x64xf32> to vector<2x32xf32>
    %18 = vector.extract_strided_slice %16 {offsets = [0, 32], sizes = [2, 32], strides = [1, 1]} : vector<2x64xf32> to vector<2x32xf32>
    %c48 = arith.constant 48 : index
    %c0_11 = arith.constant 0 : index
    %19 = vector.load %arg2[%c48, %c0_11] : memref<256x128xf32, #tpu.memory_space<vmem>>, vector<32x16xf32>
    %cst_12 = arith.constant dense<0.000000e+00> : vector<32x16xf32>
    %20 = tpu.matmul %7, %19, %cst_12 {dimension_numbers = #tpu.dot_dimension_numbers<[1], [0], [0], [1], [0, 0, 1, 1], [], []>} : vector<32x32xf32>, vector<32x16xf32>, vector<32x16xf32> -> vector<32x16xf32>
    %c1 = arith.constant 1 : index
    %c0_13 = arith.constant 0 : index
    %21 = vector.load %arg3[%c1, %c0_13] : memref<8x128xf32, #tpu.memory_space<vmem>>, vector<1x16xf32>
    %22 = vector.broadcast %21 : vector<1x16xf32> to vector<32x16xf32>
    %23 = arith.addf %20, %22 : vector<32x16xf32>
    %24 = vector.shape_cast %23 : vector<32x16xf32> to vector<2x16x16xf32>
    %c0_14 = arith.constant 0 : index
    %c0_15 = arith.constant 0 : index
    %25 = vector.load %arg1[%c0_14, %c0_15] : memref<14x16xf32, #tpu.memory_space<vmem>>, vector<14x16xf32>
    %c144 = arith.constant 144 : index
    %c0_16 = arith.constant 0 : index
    %26 = vector.load %arg2[%c144, %c0_16] : memref<256x128xf32, #tpu.memory_space<vmem>>, vector<16x128xf32>
    %cst_17 = arith.constant dense<0.000000e+00> : vector<14x128xf32>
    %27 = tpu.matmul %25, %26, %cst_17 {dimension_numbers = #tpu.dot_dimension_numbers<[1], [0], [0], [1], [0, 0, 1, 1], [], []>} : vector<14x16xf32>, vector<16x128xf32>, vector<14x128xf32> -> vector<14x128xf32>
    %c4 = arith.constant 4 : index
    %c0_18 = arith.constant 0 : index
    %28 = vector.load %arg3[%c4, %c0_18] : memref<8x128xf32, #tpu.memory_space<vmem>>, vector<1x128xf32>
    %29 = vector.broadcast %28 : vector<1x128xf32> to vector<14x128xf32>
    %30 = arith.addf %27, %29 : vector<14x128xf32>
    %c6 = arith.constant 6 : index
    %c0_19 = arith.constant 0 : index
    %31 = vector.load %arg3[%c6, %c0_19] : memref<8x128xf32, #tpu.memory_space<vmem>>, vector<1x16xf32>
    %c7 = arith.constant 7 : index
    %c0_20 = arith.constant 0 : index
    %32 = vector.load %arg3[%c7, %c0_20] : memref<8x128xf32, #tpu.memory_space<vmem>>, vector<1x16xf32>
    %c3 = arith.constant 3 : index
    %c0_21 = arith.constant 0 : index
    %33 = vector.load %arg3[%c3, %c0_21] : memref<8x128xf32, #tpu.memory_space<vmem>>, vector<1x48xf32>
    %c112 = arith.constant 112 : index
    %c0_22 = arith.constant 0 : index
    %34 = vector.load %arg2[%c112, %c0_22] : memref<256x128xf32, #tpu.memory_space<vmem>>, vector<32x48xf32>
    %c160 = arith.constant 160 : index
    %c0_23 = arith.constant 0 : index
    %35 = vector.load %arg2[%c160, %c0_23] : memref<256x128xf32, #tpu.memory_space<vmem>>, vector<64x128xf32>
    %cst_24 = arith.constant dense<0.000000e+00> : vector<2x48xf32>
    %36 = tpu.matmul %17, %34, %cst_24 {dimension_numbers = #tpu.dot_dimension_numbers<[1], [0], [0], [1], [0, 0, 1, 1], [], []>} : vector<2x32xf32>, vector<32x48xf32>, vector<2x48xf32> -> vector<2x48xf32>
    %37 = vector.broadcast %33 : vector<1x48xf32> to vector<2x48xf32>
    %38 = arith.addf %36, %37 : vector<2x48xf32>
    %39 = vector.extract_strided_slice %38 {offsets = [0, 0], sizes = [2, 16], strides = [1, 1]} : vector<2x48xf32> to vector<2x16xf32>
    %40 = vector.extract_strided_slice %38 {offsets = [0, 16], sizes = [2, 32], strides = [1, 1]} : vector<2x48xf32> to vector<2x32xf32>
    %41 = arith.negf %40 : vector<2x32xf32>
    %42 = math.exp %41 : vector<2x32xf32>
    %cst_25 = arith.constant 1.000000e+00 : f32
    %43 = vector.broadcast %cst_25 : f32 to vector<2x32xf32>
    %44 = arith.addf %43, %42 : vector<2x32xf32>
    %45 = arith.divf %43, %44 : vector<2x32xf32>
    %46 = vector.shape_cast %39 : vector<2x16xf32> to vector<2x1x16xf32>
    %47 = vector.broadcast %46 : vector<2x1x16xf32> to vector<2x16x16xf32>
    %48 = arith.addf %24, %47 : vector<2x16x16xf32>
    %cst_26 = arith.constant 0.000000e+00 : f32
    %49 = vector.broadcast %cst_26 : f32 to vector<2x16x16xf32>
    %50 = arith.maximumf %48, %49 : vector<2x16x16xf32>
    %51 = vector.shape_cast %31 : vector<1x16xf32> to vector<1x1x16xf32>
    %52 = vector.broadcast %51 : vector<1x1x16xf32> to vector<2x16x16xf32>
    %53 = arith.mulf %50, %52 : vector<2x16x16xf32>
    %cst_27 = arith.constant dense<0.000000e+00> : vector<2x16xf32>
    %54 = vector.multi_reduction <add>, %53, %cst_27 [2] : vector<2x16x16xf32> to vector<2x16xf32>
    %55 = vector.broadcast %32 : vector<1x16xf32> to vector<2x16xf32>
    %56 = arith.addf %54, %55 : vector<2x16xf32>
    %cst_28 = arith.constant dense<0xFF800000> : vector<2xf32>
    %57 = vector.multi_reduction <maximumf>, %56, %cst_28 [1] : vector<2x16xf32> to vector<2xf32>
    %58 = vector.shape_cast %57 : vector<2xf32> to vector<2x1xf32>
    %59 = vector.broadcast %58 : vector<2x1xf32> to vector<2x16xf32>
    %60 = arith.subf %56, %59 : vector<2x16xf32>
    %61 = math.exp %60 : vector<2x16xf32>
    %cst_29 = arith.constant dense<0.000000e+00> : vector<2xf32>
    %62 = vector.multi_reduction <add>, %61, %cst_29 [1] : vector<2x16xf32> to vector<2xf32>
    %63 = vector.shape_cast %62 : vector<2xf32> to vector<2x1xf32>
    %64 = tpu.reciprocal %63 {approx = true} : vector<2x1xf32> -> vector<2x1xf32>
    %65 = vector.broadcast %64 : vector<2x1xf32> to vector<2x16xf32>
    %66 = arith.mulf %61, %65 : vector<2x16xf32>
    %67 = vector.shape_cast %66 : vector<2x16xf32> to vector<2x16x1xf32>
    %68 = vector.broadcast %67 : vector<2x16x1xf32> to vector<2x16x32xf32>
    %69 = arith.mulf %8, %68 : vector<2x16x32xf32>
    %cst_30 = arith.constant dense<0.000000e+00> : vector<2x32xf32>
    %70 = vector.multi_reduction <add>, %69, %cst_30 [1] : vector<2x16x32xf32> to vector<2x32xf32>
    %71 = arith.mulf %45, %70 : vector<2x32xf32>
    %72 = tpu.concatenate %71, %17 in 1 : vector<2x32xf32>, vector<2x32xf32> -> vector<2x64xf32>
    %73 = vector.extract_strided_slice %30 {offsets = [0, 0], sizes = [2, 128], strides = [1, 1]} : vector<14x128xf32> to vector<2x128xf32>
    %cst_31 = arith.constant dense<0.000000e+00> : vector<2x128xf32>
    %74 = tpu.matmul %72, %35, %cst_31 {dimension_numbers = #tpu.dot_dimension_numbers<[1], [0], [0], [1], [0, 0, 1, 1], [], []>} : vector<2x64xf32>, vector<64x128xf32>, vector<2x128xf32> -> vector<2x128xf32>
    %75 = arith.addf %73, %74 : vector<2x128xf32>
    %76 = vector.extract_strided_slice %75 {offsets = [0, 0], sizes = [2, 32], strides = [1, 1]} : vector<2x128xf32> to vector<2x32xf32>
    %77 = arith.negf %76 : vector<2x32xf32>
    %78 = math.exp %77 : vector<2x32xf32>
    %cst_32 = arith.constant 1.000000e+00 : f32
    %79 = vector.broadcast %cst_32 : f32 to vector<2x32xf32>
    %80 = arith.addf %79, %78 : vector<2x32xf32>
    %81 = arith.divf %79, %80 : vector<2x32xf32>
    %82 = vector.extract_strided_slice %75 {offsets = [0, 32], sizes = [2, 32], strides = [1, 1]} : vector<2x128xf32> to vector<2x32xf32>
    %83 = arith.negf %82 : vector<2x32xf32>
    %84 = math.exp %83 : vector<2x32xf32>
    %cst_33 = arith.constant 1.000000e+00 : f32
    %85 = vector.broadcast %cst_33 : f32 to vector<2x32xf32>
    %86 = arith.addf %85, %84 : vector<2x32xf32>
    %87 = arith.divf %85, %86 : vector<2x32xf32>
    %88 = vector.extract_strided_slice %75 {offsets = [0, 64], sizes = [2, 32], strides = [1, 1]} : vector<2x128xf32> to vector<2x32xf32>
    %89 = math.tanh %88 : vector<2x32xf32>
    %90 = vector.extract_strided_slice %75 {offsets = [0, 96], sizes = [2, 32], strides = [1, 1]} : vector<2x128xf32> to vector<2x32xf32>
    %91 = arith.negf %90 : vector<2x32xf32>
    %92 = math.exp %91 : vector<2x32xf32>
    %cst_34 = arith.constant 1.000000e+00 : f32
    %93 = vector.broadcast %cst_34 : f32 to vector<2x32xf32>
    %94 = arith.addf %93, %92 : vector<2x32xf32>
    %95 = arith.divf %93, %94 : vector<2x32xf32>
    %96 = arith.mulf %87, %18 : vector<2x32xf32>
    %97 = arith.mulf %81, %89 : vector<2x32xf32>
    %98 = arith.addf %96, %97 : vector<2x32xf32>
    %99 = math.tanh %98 : vector<2x32xf32>
    %100 = arith.mulf %95, %99 : vector<2x32xf32>
    %c112_35 = arith.constant 112 : index
    %c0_36 = arith.constant 0 : index
    %101 = vector.load %arg2[%c112_35, %c0_36] : memref<256x128xf32, #tpu.memory_space<vmem>>, vector<32x48xf32>
    %c160_37 = arith.constant 160 : index
    %c0_38 = arith.constant 0 : index
    %102 = vector.load %arg2[%c160_37, %c0_38] : memref<256x128xf32, #tpu.memory_space<vmem>>, vector<64x128xf32>
    %cst_39 = arith.constant dense<0.000000e+00> : vector<2x48xf32>
    %103 = tpu.matmul %100, %101, %cst_39 {dimension_numbers = #tpu.dot_dimension_numbers<[1], [0], [0], [1], [0, 0, 1, 1], [], []>} : vector<2x32xf32>, vector<32x48xf32>, vector<2x48xf32> -> vector<2x48xf32>
    %104 = vector.broadcast %33 : vector<1x48xf32> to vector<2x48xf32>
    %105 = arith.addf %103, %104 : vector<2x48xf32>
    %106 = vector.extract_strided_slice %105 {offsets = [0, 0], sizes = [2, 16], strides = [1, 1]} : vector<2x48xf32> to vector<2x16xf32>
    %107 = vector.extract_strided_slice %105 {offsets = [0, 16], sizes = [2, 32], strides = [1, 1]} : vector<2x48xf32> to vector<2x32xf32>
    %108 = arith.negf %107 : vector<2x32xf32>
    %109 = math.exp %108 : vector<2x32xf32>
    %cst_40 = arith.constant 1.000000e+00 : f32
    %110 = vector.broadcast %cst_40 : f32 to vector<2x32xf32>
    %111 = arith.addf %110, %109 : vector<2x32xf32>
    %112 = arith.divf %110, %111 : vector<2x32xf32>
    %113 = vector.shape_cast %106 : vector<2x16xf32> to vector<2x1x16xf32>
    %114 = vector.broadcast %113 : vector<2x1x16xf32> to vector<2x16x16xf32>
    %115 = arith.addf %24, %114 : vector<2x16x16xf32>
    %cst_41 = arith.constant 0.000000e+00 : f32
    %116 = vector.broadcast %cst_41 : f32 to vector<2x16x16xf32>
    %117 = arith.maximumf %115, %116 : vector<2x16x16xf32>
    %118 = vector.shape_cast %31 : vector<1x16xf32> to vector<1x1x16xf32>
    %119 = vector.broadcast %118 : vector<1x1x16xf32> to vector<2x16x16xf32>
    %120 = arith.mulf %117, %119 : vector<2x16x16xf32>
    %cst_42 = arith.constant dense<0.000000e+00> : vector<2x16xf32>
    %121 = vector.multi_reduction <add>, %120, %cst_42 [2] : vector<2x16x16xf32> to vector<2x16xf32>
    %122 = vector.broadcast %32 : vector<1x16xf32> to vector<2x16xf32>
    %123 = arith.addf %121, %122 : vector<2x16xf32>
    %cst_43 = arith.constant dense<0xFF800000> : vector<2xf32>
    %124 = vector.multi_reduction <maximumf>, %123, %cst_43 [1] : vector<2x16xf32> to vector<2xf32>
    %125 = vector.shape_cast %124 : vector<2xf32> to vector<2x1xf32>
    %126 = vector.broadcast %125 : vector<2x1xf32> to vector<2x16xf32>
    %127 = arith.subf %123, %126 : vector<2x16xf32>
    %128 = math.exp %127 : vector<2x16xf32>
    %cst_44 = arith.constant dense<0.000000e+00> : vector<2xf32>
    %129 = vector.multi_reduction <add>, %128, %cst_44 [1] : vector<2x16xf32> to vector<2xf32>
    %130 = vector.shape_cast %129 : vector<2xf32> to vector<2x1xf32>
    %131 = tpu.reciprocal %130 {approx = true} : vector<2x1xf32> -> vector<2x1xf32>
    %132 = vector.broadcast %131 : vector<2x1xf32> to vector<2x16xf32>
    %133 = arith.mulf %128, %132 : vector<2x16xf32>
    %134 = vector.shape_cast %133 : vector<2x16xf32> to vector<2x16x1xf32>
    %135 = vector.broadcast %134 : vector<2x16x1xf32> to vector<2x16x32xf32>
    %136 = arith.mulf %8, %135 : vector<2x16x32xf32>
    %cst_45 = arith.constant dense<0.000000e+00> : vector<2x32xf32>
    %137 = vector.multi_reduction <add>, %136, %cst_45 [1] : vector<2x16x32xf32> to vector<2x32xf32>
    %138 = arith.mulf %112, %137 : vector<2x32xf32>
    %139 = tpu.concatenate %138, %100 in 1 : vector<2x32xf32>, vector<2x32xf32> -> vector<2x64xf32>
    %140 = vector.extract_strided_slice %30 {offsets = [2, 0], sizes = [2, 128], strides = [1, 1]} : vector<14x128xf32> to vector<2x128xf32>
    %cst_46 = arith.constant dense<0.000000e+00> : vector<2x128xf32>
    %141 = tpu.matmul %139, %102, %cst_46 {dimension_numbers = #tpu.dot_dimension_numbers<[1], [0], [0], [1], [0, 0, 1, 1], [], []>} : vector<2x64xf32>, vector<64x128xf32>, vector<2x128xf32> -> vector<2x128xf32>
    %142 = arith.addf %140, %141 : vector<2x128xf32>
    %143 = vector.extract_strided_slice %142 {offsets = [0, 0], sizes = [2, 32], strides = [1, 1]} : vector<2x128xf32> to vector<2x32xf32>
    %144 = arith.negf %143 : vector<2x32xf32>
    %145 = math.exp %144 : vector<2x32xf32>
    %cst_47 = arith.constant 1.000000e+00 : f32
    %146 = vector.broadcast %cst_47 : f32 to vector<2x32xf32>
    %147 = arith.addf %146, %145 : vector<2x32xf32>
    %148 = arith.divf %146, %147 : vector<2x32xf32>
    %149 = vector.extract_strided_slice %142 {offsets = [0, 32], sizes = [2, 32], strides = [1, 1]} : vector<2x128xf32> to vector<2x32xf32>
    %150 = arith.negf %149 : vector<2x32xf32>
    %151 = math.exp %150 : vector<2x32xf32>
    %cst_48 = arith.constant 1.000000e+00 : f32
    %152 = vector.broadcast %cst_48 : f32 to vector<2x32xf32>
    %153 = arith.addf %152, %151 : vector<2x32xf32>
    %154 = arith.divf %152, %153 : vector<2x32xf32>
    %155 = vector.extract_strided_slice %142 {offsets = [0, 64], sizes = [2, 32], strides = [1, 1]} : vector<2x128xf32> to vector<2x32xf32>
    %156 = math.tanh %155 : vector<2x32xf32>
    %157 = vector.extract_strided_slice %142 {offsets = [0, 96], sizes = [2, 32], strides = [1, 1]} : vector<2x128xf32> to vector<2x32xf32>
    %158 = arith.negf %157 : vector<2x32xf32>
    %159 = math.exp %158 : vector<2x32xf32>
    %cst_49 = arith.constant 1.000000e+00 : f32
    %160 = vector.broadcast %cst_49 : f32 to vector<2x32xf32>
    %161 = arith.addf %160, %159 : vector<2x32xf32>
    %162 = arith.divf %160, %161 : vector<2x32xf32>
    %163 = arith.mulf %154, %98 : vector<2x32xf32>
    %164 = arith.mulf %148, %156 : vector<2x32xf32>
    %165 = arith.addf %163, %164 : vector<2x32xf32>
    %166 = math.tanh %165 : vector<2x32xf32>
    %167 = arith.mulf %162, %166 : vector<2x32xf32>
    %c112_50 = arith.constant 112 : index
    %c0_51 = arith.constant 0 : index
    %168 = vector.load %arg2[%c112_50, %c0_51] : memref<256x128xf32, #tpu.memory_space<vmem>>, vector<32x48xf32>
    %c160_52 = arith.constant 160 : index
    %c0_53 = arith.constant 0 : index
    %169 = vector.load %arg2[%c160_52, %c0_53] : memref<256x128xf32, #tpu.memory_space<vmem>>, vector<64x128xf32>
    %cst_54 = arith.constant dense<0.000000e+00> : vector<2x48xf32>
    %170 = tpu.matmul %167, %168, %cst_54 {dimension_numbers = #tpu.dot_dimension_numbers<[1], [0], [0], [1], [0, 0, 1, 1], [], []>} : vector<2x32xf32>, vector<32x48xf32>, vector<2x48xf32> -> vector<2x48xf32>
    %171 = vector.broadcast %33 : vector<1x48xf32> to vector<2x48xf32>
    %172 = arith.addf %170, %171 : vector<2x48xf32>
    %173 = vector.extract_strided_slice %172 {offsets = [0, 0], sizes = [2, 16], strides = [1, 1]} : vector<2x48xf32> to vector<2x16xf32>
    %174 = vector.extract_strided_slice %172 {offsets = [0, 16], sizes = [2, 32], strides = [1, 1]} : vector<2x48xf32> to vector<2x32xf32>
    %175 = arith.negf %174 : vector<2x32xf32>
    %176 = math.exp %175 : vector<2x32xf32>
    %cst_55 = arith.constant 1.000000e+00 : f32
    %177 = vector.broadcast %cst_55 : f32 to vector<2x32xf32>
    %178 = arith.addf %177, %176 : vector<2x32xf32>
    %179 = arith.divf %177, %178 : vector<2x32xf32>
    %180 = vector.shape_cast %173 : vector<2x16xf32> to vector<2x1x16xf32>
    %181 = vector.broadcast %180 : vector<2x1x16xf32> to vector<2x16x16xf32>
    %182 = arith.addf %24, %181 : vector<2x16x16xf32>
    %cst_56 = arith.constant 0.000000e+00 : f32
    %183 = vector.broadcast %cst_56 : f32 to vector<2x16x16xf32>
    %184 = arith.maximumf %182, %183 : vector<2x16x16xf32>
    %185 = vector.shape_cast %31 : vector<1x16xf32> to vector<1x1x16xf32>
    %186 = vector.broadcast %185 : vector<1x1x16xf32> to vector<2x16x16xf32>
    %187 = arith.mulf %184, %186 : vector<2x16x16xf32>
    %cst_57 = arith.constant dense<0.000000e+00> : vector<2x16xf32>
    %188 = vector.multi_reduction <add>, %187, %cst_57 [2] : vector<2x16x16xf32> to vector<2x16xf32>
    %189 = vector.broadcast %32 : vector<1x16xf32> to vector<2x16xf32>
    %190 = arith.addf %188, %189 : vector<2x16xf32>
    %cst_58 = arith.constant dense<0xFF800000> : vector<2xf32>
    %191 = vector.multi_reduction <maximumf>, %190, %cst_58 [1] : vector<2x16xf32> to vector<2xf32>
    %192 = vector.shape_cast %191 : vector<2xf32> to vector<2x1xf32>
    %193 = vector.broadcast %192 : vector<2x1xf32> to vector<2x16xf32>
    %194 = arith.subf %190, %193 : vector<2x16xf32>
    %195 = math.exp %194 : vector<2x16xf32>
    %cst_59 = arith.constant dense<0.000000e+00> : vector<2xf32>
    %196 = vector.multi_reduction <add>, %195, %cst_59 [1] : vector<2x16xf32> to vector<2xf32>
    %197 = vector.shape_cast %196 : vector<2xf32> to vector<2x1xf32>
    %198 = tpu.reciprocal %197 {approx = true} : vector<2x1xf32> -> vector<2x1xf32>
    %199 = vector.broadcast %198 : vector<2x1xf32> to vector<2x16xf32>
    %200 = arith.mulf %195, %199 : vector<2x16xf32>
    %201 = vector.shape_cast %200 : vector<2x16xf32> to vector<2x16x1xf32>
    %202 = vector.broadcast %201 : vector<2x16x1xf32> to vector<2x16x32xf32>
    %203 = arith.mulf %8, %202 : vector<2x16x32xf32>
    %cst_60 = arith.constant dense<0.000000e+00> : vector<2x32xf32>
    %204 = vector.multi_reduction <add>, %203, %cst_60 [1] : vector<2x16x32xf32> to vector<2x32xf32>
    %205 = arith.mulf %179, %204 : vector<2x32xf32>
    %206 = tpu.concatenate %205, %167 in 1 : vector<2x32xf32>, vector<2x32xf32> -> vector<2x64xf32>
    %207 = vector.extract_strided_slice %30 {offsets = [4, 0], sizes = [2, 128], strides = [1, 1]} : vector<14x128xf32> to vector<2x128xf32>
    %cst_61 = arith.constant dense<0.000000e+00> : vector<2x128xf32>
    %208 = tpu.matmul %206, %169, %cst_61 {dimension_numbers = #tpu.dot_dimension_numbers<[1], [0], [0], [1], [0, 0, 1, 1], [], []>} : vector<2x64xf32>, vector<64x128xf32>, vector<2x128xf32> -> vector<2x128xf32>
    %209 = arith.addf %207, %208 : vector<2x128xf32>
    %210 = vector.extract_strided_slice %209 {offsets = [0, 0], sizes = [2, 32], strides = [1, 1]} : vector<2x128xf32> to vector<2x32xf32>
    %211 = arith.negf %210 : vector<2x32xf32>
    %212 = math.exp %211 : vector<2x32xf32>
    %cst_62 = arith.constant 1.000000e+00 : f32
    %213 = vector.broadcast %cst_62 : f32 to vector<2x32xf32>
    %214 = arith.addf %213, %212 : vector<2x32xf32>
    %215 = arith.divf %213, %214 : vector<2x32xf32>
    %216 = vector.extract_strided_slice %209 {offsets = [0, 32], sizes = [2, 32], strides = [1, 1]} : vector<2x128xf32> to vector<2x32xf32>
    %217 = arith.negf %216 : vector<2x32xf32>
    %218 = math.exp %217 : vector<2x32xf32>
    %cst_63 = arith.constant 1.000000e+00 : f32
    %219 = vector.broadcast %cst_63 : f32 to vector<2x32xf32>
    %220 = arith.addf %219, %218 : vector<2x32xf32>
    %221 = arith.divf %219, %220 : vector<2x32xf32>
    %222 = vector.extract_strided_slice %209 {offsets = [0, 64], sizes = [2, 32], strides = [1, 1]} : vector<2x128xf32> to vector<2x32xf32>
    %223 = math.tanh %222 : vector<2x32xf32>
    %224 = vector.extract_strided_slice %209 {offsets = [0, 96], sizes = [2, 32], strides = [1, 1]} : vector<2x128xf32> to vector<2x32xf32>
    %225 = arith.negf %224 : vector<2x32xf32>
    %226 = math.exp %225 : vector<2x32xf32>
    %cst_64 = arith.constant 1.000000e+00 : f32
    %227 = vector.broadcast %cst_64 : f32 to vector<2x32xf32>
    %228 = arith.addf %227, %226 : vector<2x32xf32>
    %229 = arith.divf %227, %228 : vector<2x32xf32>
    %230 = arith.mulf %221, %165 : vector<2x32xf32>
    %231 = arith.mulf %215, %223 : vector<2x32xf32>
    %232 = arith.addf %230, %231 : vector<2x32xf32>
    %233 = math.tanh %232 : vector<2x32xf32>
    %234 = arith.mulf %229, %233 : vector<2x32xf32>
    %c112_65 = arith.constant 112 : index
    %c0_66 = arith.constant 0 : index
    %235 = vector.load %arg2[%c112_65, %c0_66] : memref<256x128xf32, #tpu.memory_space<vmem>>, vector<32x48xf32>
    %c160_67 = arith.constant 160 : index
    %c0_68 = arith.constant 0 : index
    %236 = vector.load %arg2[%c160_67, %c0_68] : memref<256x128xf32, #tpu.memory_space<vmem>>, vector<64x128xf32>
    %cst_69 = arith.constant dense<0.000000e+00> : vector<2x48xf32>
    %237 = tpu.matmul %234, %235, %cst_69 {dimension_numbers = #tpu.dot_dimension_numbers<[1], [0], [0], [1], [0, 0, 1, 1], [], []>} : vector<2x32xf32>, vector<32x48xf32>, vector<2x48xf32> -> vector<2x48xf32>
    %238 = vector.broadcast %33 : vector<1x48xf32> to vector<2x48xf32>
    %239 = arith.addf %237, %238 : vector<2x48xf32>
    %240 = vector.extract_strided_slice %239 {offsets = [0, 0], sizes = [2, 16], strides = [1, 1]} : vector<2x48xf32> to vector<2x16xf32>
    %241 = vector.extract_strided_slice %239 {offsets = [0, 16], sizes = [2, 32], strides = [1, 1]} : vector<2x48xf32> to vector<2x32xf32>
    %242 = arith.negf %241 : vector<2x32xf32>
    %243 = math.exp %242 : vector<2x32xf32>
    %cst_70 = arith.constant 1.000000e+00 : f32
    %244 = vector.broadcast %cst_70 : f32 to vector<2x32xf32>
    %245 = arith.addf %244, %243 : vector<2x32xf32>
    %246 = arith.divf %244, %245 : vector<2x32xf32>
    %247 = vector.shape_cast %240 : vector<2x16xf32> to vector<2x1x16xf32>
    %248 = vector.broadcast %247 : vector<2x1x16xf32> to vector<2x16x16xf32>
    %249 = arith.addf %24, %248 : vector<2x16x16xf32>
    %cst_71 = arith.constant 0.000000e+00 : f32
    %250 = vector.broadcast %cst_71 : f32 to vector<2x16x16xf32>
    %251 = arith.maximumf %249, %250 : vector<2x16x16xf32>
    %252 = vector.shape_cast %31 : vector<1x16xf32> to vector<1x1x16xf32>
    %253 = vector.broadcast %252 : vector<1x1x16xf32> to vector<2x16x16xf32>
    %254 = arith.mulf %251, %253 : vector<2x16x16xf32>
    %cst_72 = arith.constant dense<0.000000e+00> : vector<2x16xf32>
    %255 = vector.multi_reduction <add>, %254, %cst_72 [2] : vector<2x16x16xf32> to vector<2x16xf32>
    %256 = vector.broadcast %32 : vector<1x16xf32> to vector<2x16xf32>
    %257 = arith.addf %255, %256 : vector<2x16xf32>
    %cst_73 = arith.constant dense<0xFF800000> : vector<2xf32>
    %258 = vector.multi_reduction <maximumf>, %257, %cst_73 [1] : vector<2x16xf32> to vector<2xf32>
    %259 = vector.shape_cast %258 : vector<2xf32> to vector<2x1xf32>
    %260 = vector.broadcast %259 : vector<2x1xf32> to vector<2x16xf32>
    %261 = arith.subf %257, %260 : vector<2x16xf32>
    %262 = math.exp %261 : vector<2x16xf32>
    %cst_74 = arith.constant dense<0.000000e+00> : vector<2xf32>
    %263 = vector.multi_reduction <add>, %262, %cst_74 [1] : vector<2x16xf32> to vector<2xf32>
    %264 = vector.shape_cast %263 : vector<2xf32> to vector<2x1xf32>
    %265 = tpu.reciprocal %264 {approx = true} : vector<2x1xf32> -> vector<2x1xf32>
    %266 = vector.broadcast %265 : vector<2x1xf32> to vector<2x16xf32>
    %267 = arith.mulf %262, %266 : vector<2x16xf32>
    %268 = vector.shape_cast %267 : vector<2x16xf32> to vector<2x16x1xf32>
    %269 = vector.broadcast %268 : vector<2x16x1xf32> to vector<2x16x32xf32>
    %270 = arith.mulf %8, %269 : vector<2x16x32xf32>
    %cst_75 = arith.constant dense<0.000000e+00> : vector<2x32xf32>
    %271 = vector.multi_reduction <add>, %270, %cst_75 [1] : vector<2x16x32xf32> to vector<2x32xf32>
    %272 = arith.mulf %246, %271 : vector<2x32xf32>
    %273 = tpu.concatenate %272, %234 in 1 : vector<2x32xf32>, vector<2x32xf32> -> vector<2x64xf32>
    %274 = vector.extract_strided_slice %30 {offsets = [6, 0], sizes = [2, 128], strides = [1, 1]} : vector<14x128xf32> to vector<2x128xf32>
    %cst_76 = arith.constant dense<0.000000e+00> : vector<2x128xf32>
    %275 = tpu.matmul %273, %236, %cst_76 {dimension_numbers = #tpu.dot_dimension_numbers<[1], [0], [0], [1], [0, 0, 1, 1], [], []>} : vector<2x64xf32>, vector<64x128xf32>, vector<2x128xf32> -> vector<2x128xf32>
    %276 = arith.addf %274, %275 : vector<2x128xf32>
    %277 = vector.extract_strided_slice %276 {offsets = [0, 0], sizes = [2, 32], strides = [1, 1]} : vector<2x128xf32> to vector<2x32xf32>
    %278 = arith.negf %277 : vector<2x32xf32>
    %279 = math.exp %278 : vector<2x32xf32>
    %cst_77 = arith.constant 1.000000e+00 : f32
    %280 = vector.broadcast %cst_77 : f32 to vector<2x32xf32>
    %281 = arith.addf %280, %279 : vector<2x32xf32>
    %282 = arith.divf %280, %281 : vector<2x32xf32>
    %283 = vector.extract_strided_slice %276 {offsets = [0, 32], sizes = [2, 32], strides = [1, 1]} : vector<2x128xf32> to vector<2x32xf32>
    %284 = arith.negf %283 : vector<2x32xf32>
    %285 = math.exp %284 : vector<2x32xf32>
    %cst_78 = arith.constant 1.000000e+00 : f32
    %286 = vector.broadcast %cst_78 : f32 to vector<2x32xf32>
    %287 = arith.addf %286, %285 : vector<2x32xf32>
    %288 = arith.divf %286, %287 : vector<2x32xf32>
    %289 = vector.extract_strided_slice %276 {offsets = [0, 64], sizes = [2, 32], strides = [1, 1]} : vector<2x128xf32> to vector<2x32xf32>
    %290 = math.tanh %289 : vector<2x32xf32>
    %291 = vector.extract_strided_slice %276 {offsets = [0, 96], sizes = [2, 32], strides = [1, 1]} : vector<2x128xf32> to vector<2x32xf32>
    %292 = arith.negf %291 : vector<2x32xf32>
    %293 = math.exp %292 : vector<2x32xf32>
    %cst_79 = arith.constant 1.000000e+00 : f32
    %294 = vector.broadcast %cst_79 : f32 to vector<2x32xf32>
    %295 = arith.addf %294, %293 : vector<2x32xf32>
    %296 = arith.divf %294, %295 : vector<2x32xf32>
    %297 = arith.mulf %288, %232 : vector<2x32xf32>
    %298 = arith.mulf %282, %290 : vector<2x32xf32>
    %299 = arith.addf %297, %298 : vector<2x32xf32>
    %300 = math.tanh %299 : vector<2x32xf32>
    %301 = arith.mulf %296, %300 : vector<2x32xf32>
    %c112_80 = arith.constant 112 : index
    %c0_81 = arith.constant 0 : index
    %302 = vector.load %arg2[%c112_80, %c0_81] : memref<256x128xf32, #tpu.memory_space<vmem>>, vector<32x48xf32>
    %c160_82 = arith.constant 160 : index
    %c0_83 = arith.constant 0 : index
    %303 = vector.load %arg2[%c160_82, %c0_83] : memref<256x128xf32, #tpu.memory_space<vmem>>, vector<64x128xf32>
    %cst_84 = arith.constant dense<0.000000e+00> : vector<2x48xf32>
    %304 = tpu.matmul %301, %302, %cst_84 {dimension_numbers = #tpu.dot_dimension_numbers<[1], [0], [0], [1], [0, 0, 1, 1], [], []>} : vector<2x32xf32>, vector<32x48xf32>, vector<2x48xf32> -> vector<2x48xf32>
    %305 = vector.broadcast %33 : vector<1x48xf32> to vector<2x48xf32>
    %306 = arith.addf %304, %305 : vector<2x48xf32>
    %307 = vector.extract_strided_slice %306 {offsets = [0, 0], sizes = [2, 16], strides = [1, 1]} : vector<2x48xf32> to vector<2x16xf32>
    %308 = vector.extract_strided_slice %306 {offsets = [0, 16], sizes = [2, 32], strides = [1, 1]} : vector<2x48xf32> to vector<2x32xf32>
    %309 = arith.negf %308 : vector<2x32xf32>
    %310 = math.exp %309 : vector<2x32xf32>
    %cst_85 = arith.constant 1.000000e+00 : f32
    %311 = vector.broadcast %cst_85 : f32 to vector<2x32xf32>
    %312 = arith.addf %311, %310 : vector<2x32xf32>
    %313 = arith.divf %311, %312 : vector<2x32xf32>
    %314 = vector.shape_cast %307 : vector<2x16xf32> to vector<2x1x16xf32>
    %315 = vector.broadcast %314 : vector<2x1x16xf32> to vector<2x16x16xf32>
    %316 = arith.addf %24, %315 : vector<2x16x16xf32>
    %cst_86 = arith.constant 0.000000e+00 : f32
    %317 = vector.broadcast %cst_86 : f32 to vector<2x16x16xf32>
    %318 = arith.maximumf %316, %317 : vector<2x16x16xf32>
    %319 = vector.shape_cast %31 : vector<1x16xf32> to vector<1x1x16xf32>
    %320 = vector.broadcast %319 : vector<1x1x16xf32> to vector<2x16x16xf32>
    %321 = arith.mulf %318, %320 : vector<2x16x16xf32>
    %cst_87 = arith.constant dense<0.000000e+00> : vector<2x16xf32>
    %322 = vector.multi_reduction <add>, %321, %cst_87 [2] : vector<2x16x16xf32> to vector<2x16xf32>
    %323 = vector.broadcast %32 : vector<1x16xf32> to vector<2x16xf32>
    %324 = arith.addf %322, %323 : vector<2x16xf32>
    %cst_88 = arith.constant dense<0xFF800000> : vector<2xf32>
    %325 = vector.multi_reduction <maximumf>, %324, %cst_88 [1] : vector<2x16xf32> to vector<2xf32>
    %326 = vector.shape_cast %325 : vector<2xf32> to vector<2x1xf32>
    %327 = vector.broadcast %326 : vector<2x1xf32> to vector<2x16xf32>
    %328 = arith.subf %324, %327 : vector<2x16xf32>
    %329 = math.exp %328 : vector<2x16xf32>
    %cst_89 = arith.constant dense<0.000000e+00> : vector<2xf32>
    %330 = vector.multi_reduction <add>, %329, %cst_89 [1] : vector<2x16xf32> to vector<2xf32>
    %331 = vector.shape_cast %330 : vector<2xf32> to vector<2x1xf32>
    %332 = tpu.reciprocal %331 {approx = true} : vector<2x1xf32> -> vector<2x1xf32>
    %333 = vector.broadcast %332 : vector<2x1xf32> to vector<2x16xf32>
    %334 = arith.mulf %329, %333 : vector<2x16xf32>
    %335 = vector.shape_cast %334 : vector<2x16xf32> to vector<2x16x1xf32>
    %336 = vector.broadcast %335 : vector<2x16x1xf32> to vector<2x16x32xf32>
    %337 = arith.mulf %8, %336 : vector<2x16x32xf32>
    %cst_90 = arith.constant dense<0.000000e+00> : vector<2x32xf32>
    %338 = vector.multi_reduction <add>, %337, %cst_90 [1] : vector<2x16x32xf32> to vector<2x32xf32>
    %339 = arith.mulf %313, %338 : vector<2x32xf32>
    %340 = tpu.concatenate %339, %301 in 1 : vector<2x32xf32>, vector<2x32xf32> -> vector<2x64xf32>
    %341 = vector.extract_strided_slice %30 {offsets = [8, 0], sizes = [2, 128], strides = [1, 1]} : vector<14x128xf32> to vector<2x128xf32>
    %cst_91 = arith.constant dense<0.000000e+00> : vector<2x128xf32>
    %342 = tpu.matmul %340, %303, %cst_91 {dimension_numbers = #tpu.dot_dimension_numbers<[1], [0], [0], [1], [0, 0, 1, 1], [], []>} : vector<2x64xf32>, vector<64x128xf32>, vector<2x128xf32> -> vector<2x128xf32>
    %343 = arith.addf %341, %342 : vector<2x128xf32>
    %344 = vector.extract_strided_slice %343 {offsets = [0, 0], sizes = [2, 32], strides = [1, 1]} : vector<2x128xf32> to vector<2x32xf32>
    %345 = arith.negf %344 : vector<2x32xf32>
    %346 = math.exp %345 : vector<2x32xf32>
    %cst_92 = arith.constant 1.000000e+00 : f32
    %347 = vector.broadcast %cst_92 : f32 to vector<2x32xf32>
    %348 = arith.addf %347, %346 : vector<2x32xf32>
    %349 = arith.divf %347, %348 : vector<2x32xf32>
    %350 = vector.extract_strided_slice %343 {offsets = [0, 32], sizes = [2, 32], strides = [1, 1]} : vector<2x128xf32> to vector<2x32xf32>
    %351 = arith.negf %350 : vector<2x32xf32>
    %352 = math.exp %351 : vector<2x32xf32>
    %cst_93 = arith.constant 1.000000e+00 : f32
    %353 = vector.broadcast %cst_93 : f32 to vector<2x32xf32>
    %354 = arith.addf %353, %352 : vector<2x32xf32>
    %355 = arith.divf %353, %354 : vector<2x32xf32>
    %356 = vector.extract_strided_slice %343 {offsets = [0, 64], sizes = [2, 32], strides = [1, 1]} : vector<2x128xf32> to vector<2x32xf32>
    %357 = math.tanh %356 : vector<2x32xf32>
    %358 = vector.extract_strided_slice %343 {offsets = [0, 96], sizes = [2, 32], strides = [1, 1]} : vector<2x128xf32> to vector<2x32xf32>
    %359 = arith.negf %358 : vector<2x32xf32>
    %360 = math.exp %359 : vector<2x32xf32>
    %cst_94 = arith.constant 1.000000e+00 : f32
    %361 = vector.broadcast %cst_94 : f32 to vector<2x32xf32>
    %362 = arith.addf %361, %360 : vector<2x32xf32>
    %363 = arith.divf %361, %362 : vector<2x32xf32>
    %364 = arith.mulf %355, %299 : vector<2x32xf32>
    %365 = arith.mulf %349, %357 : vector<2x32xf32>
    %366 = arith.addf %364, %365 : vector<2x32xf32>
    %367 = math.tanh %366 : vector<2x32xf32>
    %368 = arith.mulf %363, %367 : vector<2x32xf32>
    %c112_95 = arith.constant 112 : index
    %c0_96 = arith.constant 0 : index
    %369 = vector.load %arg2[%c112_95, %c0_96] : memref<256x128xf32, #tpu.memory_space<vmem>>, vector<32x48xf32>
    %c160_97 = arith.constant 160 : index
    %c0_98 = arith.constant 0 : index
    %370 = vector.load %arg2[%c160_97, %c0_98] : memref<256x128xf32, #tpu.memory_space<vmem>>, vector<64x128xf32>
    %cst_99 = arith.constant dense<0.000000e+00> : vector<2x48xf32>
    %371 = tpu.matmul %368, %369, %cst_99 {dimension_numbers = #tpu.dot_dimension_numbers<[1], [0], [0], [1], [0, 0, 1, 1], [], []>} : vector<2x32xf32>, vector<32x48xf32>, vector<2x48xf32> -> vector<2x48xf32>
    %372 = vector.broadcast %33 : vector<1x48xf32> to vector<2x48xf32>
    %373 = arith.addf %371, %372 : vector<2x48xf32>
    %374 = vector.extract_strided_slice %373 {offsets = [0, 0], sizes = [2, 16], strides = [1, 1]} : vector<2x48xf32> to vector<2x16xf32>
    %375 = vector.extract_strided_slice %373 {offsets = [0, 16], sizes = [2, 32], strides = [1, 1]} : vector<2x48xf32> to vector<2x32xf32>
    %376 = arith.negf %375 : vector<2x32xf32>
    %377 = math.exp %376 : vector<2x32xf32>
    %cst_100 = arith.constant 1.000000e+00 : f32
    %378 = vector.broadcast %cst_100 : f32 to vector<2x32xf32>
    %379 = arith.addf %378, %377 : vector<2x32xf32>
    %380 = arith.divf %378, %379 : vector<2x32xf32>
    %381 = vector.shape_cast %374 : vector<2x16xf32> to vector<2x1x16xf32>
    %382 = vector.broadcast %381 : vector<2x1x16xf32> to vector<2x16x16xf32>
    %383 = arith.addf %24, %382 : vector<2x16x16xf32>
    %cst_101 = arith.constant 0.000000e+00 : f32
    %384 = vector.broadcast %cst_101 : f32 to vector<2x16x16xf32>
    %385 = arith.maximumf %383, %384 : vector<2x16x16xf32>
    %386 = vector.shape_cast %31 : vector<1x16xf32> to vector<1x1x16xf32>
    %387 = vector.broadcast %386 : vector<1x1x16xf32> to vector<2x16x16xf32>
    %388 = arith.mulf %385, %387 : vector<2x16x16xf32>
    %cst_102 = arith.constant dense<0.000000e+00> : vector<2x16xf32>
    %389 = vector.multi_reduction <add>, %388, %cst_102 [2] : vector<2x16x16xf32> to vector<2x16xf32>
    %390 = vector.broadcast %32 : vector<1x16xf32> to vector<2x16xf32>
    %391 = arith.addf %389, %390 : vector<2x16xf32>
    %cst_103 = arith.constant dense<0xFF800000> : vector<2xf32>
    %392 = vector.multi_reduction <maximumf>, %391, %cst_103 [1] : vector<2x16xf32> to vector<2xf32>
    %393 = vector.shape_cast %392 : vector<2xf32> to vector<2x1xf32>
    %394 = vector.broadcast %393 : vector<2x1xf32> to vector<2x16xf32>
    %395 = arith.subf %391, %394 : vector<2x16xf32>
    %396 = math.exp %395 : vector<2x16xf32>
    %cst_104 = arith.constant dense<0.000000e+00> : vector<2xf32>
    %397 = vector.multi_reduction <add>, %396, %cst_104 [1] : vector<2x16xf32> to vector<2xf32>
    %398 = vector.shape_cast %397 : vector<2xf32> to vector<2x1xf32>
    %399 = tpu.reciprocal %398 {approx = true} : vector<2x1xf32> -> vector<2x1xf32>
    %400 = vector.broadcast %399 : vector<2x1xf32> to vector<2x16xf32>
    %401 = arith.mulf %396, %400 : vector<2x16xf32>
    %402 = vector.shape_cast %401 : vector<2x16xf32> to vector<2x16x1xf32>
    %403 = vector.broadcast %402 : vector<2x16x1xf32> to vector<2x16x32xf32>
    %404 = arith.mulf %8, %403 : vector<2x16x32xf32>
    %cst_105 = arith.constant dense<0.000000e+00> : vector<2x32xf32>
    %405 = vector.multi_reduction <add>, %404, %cst_105 [1] : vector<2x16x32xf32> to vector<2x32xf32>
    %406 = arith.mulf %380, %405 : vector<2x32xf32>
    %407 = tpu.concatenate %406, %368 in 1 : vector<2x32xf32>, vector<2x32xf32> -> vector<2x64xf32>
    %408 = vector.extract_strided_slice %30 {offsets = [10, 0], sizes = [2, 128], strides = [1, 1]} : vector<14x128xf32> to vector<2x128xf32>
    %cst_106 = arith.constant dense<0.000000e+00> : vector<2x128xf32>
    %409 = tpu.matmul %407, %370, %cst_106 {dimension_numbers = #tpu.dot_dimension_numbers<[1], [0], [0], [1], [0, 0, 1, 1], [], []>} : vector<2x64xf32>, vector<64x128xf32>, vector<2x128xf32> -> vector<2x128xf32>
    %410 = arith.addf %408, %409 : vector<2x128xf32>
    %411 = vector.extract_strided_slice %410 {offsets = [0, 0], sizes = [2, 32], strides = [1, 1]} : vector<2x128xf32> to vector<2x32xf32>
    %412 = arith.negf %411 : vector<2x32xf32>
    %413 = math.exp %412 : vector<2x32xf32>
    %cst_107 = arith.constant 1.000000e+00 : f32
    %414 = vector.broadcast %cst_107 : f32 to vector<2x32xf32>
    %415 = arith.addf %414, %413 : vector<2x32xf32>
    %416 = arith.divf %414, %415 : vector<2x32xf32>
    %417 = vector.extract_strided_slice %410 {offsets = [0, 32], sizes = [2, 32], strides = [1, 1]} : vector<2x128xf32> to vector<2x32xf32>
    %418 = arith.negf %417 : vector<2x32xf32>
    %419 = math.exp %418 : vector<2x32xf32>
    %cst_108 = arith.constant 1.000000e+00 : f32
    %420 = vector.broadcast %cst_108 : f32 to vector<2x32xf32>
    %421 = arith.addf %420, %419 : vector<2x32xf32>
    %422 = arith.divf %420, %421 : vector<2x32xf32>
    %423 = vector.extract_strided_slice %410 {offsets = [0, 64], sizes = [2, 32], strides = [1, 1]} : vector<2x128xf32> to vector<2x32xf32>
    %424 = math.tanh %423 : vector<2x32xf32>
    %425 = vector.extract_strided_slice %410 {offsets = [0, 96], sizes = [2, 32], strides = [1, 1]} : vector<2x128xf32> to vector<2x32xf32>
    %426 = arith.negf %425 : vector<2x32xf32>
    %427 = math.exp %426 : vector<2x32xf32>
    %cst_109 = arith.constant 1.000000e+00 : f32
    %428 = vector.broadcast %cst_109 : f32 to vector<2x32xf32>
    %429 = arith.addf %428, %427 : vector<2x32xf32>
    %430 = arith.divf %428, %429 : vector<2x32xf32>
    %431 = arith.mulf %422, %366 : vector<2x32xf32>
    %432 = arith.mulf %416, %424 : vector<2x32xf32>
    %433 = arith.addf %431, %432 : vector<2x32xf32>
    %434 = math.tanh %433 : vector<2x32xf32>
    %435 = arith.mulf %430, %434 : vector<2x32xf32>
    %c112_110 = arith.constant 112 : index
    %c0_111 = arith.constant 0 : index
    %436 = vector.load %arg2[%c112_110, %c0_111] : memref<256x128xf32, #tpu.memory_space<vmem>>, vector<32x48xf32>
    %c160_112 = arith.constant 160 : index
    %c0_113 = arith.constant 0 : index
    %437 = vector.load %arg2[%c160_112, %c0_113] : memref<256x128xf32, #tpu.memory_space<vmem>>, vector<64x128xf32>
    %cst_114 = arith.constant dense<0.000000e+00> : vector<2x48xf32>
    %438 = tpu.matmul %435, %436, %cst_114 {dimension_numbers = #tpu.dot_dimension_numbers<[1], [0], [0], [1], [0, 0, 1, 1], [], []>} : vector<2x32xf32>, vector<32x48xf32>, vector<2x48xf32> -> vector<2x48xf32>
    %439 = vector.broadcast %33 : vector<1x48xf32> to vector<2x48xf32>
    %440 = arith.addf %438, %439 : vector<2x48xf32>
    %441 = vector.extract_strided_slice %440 {offsets = [0, 0], sizes = [2, 16], strides = [1, 1]} : vector<2x48xf32> to vector<2x16xf32>
    %442 = vector.extract_strided_slice %440 {offsets = [0, 16], sizes = [2, 32], strides = [1, 1]} : vector<2x48xf32> to vector<2x32xf32>
    %443 = arith.negf %442 : vector<2x32xf32>
    %444 = math.exp %443 : vector<2x32xf32>
    %cst_115 = arith.constant 1.000000e+00 : f32
    %445 = vector.broadcast %cst_115 : f32 to vector<2x32xf32>
    %446 = arith.addf %445, %444 : vector<2x32xf32>
    %447 = arith.divf %445, %446 : vector<2x32xf32>
    %448 = vector.shape_cast %441 : vector<2x16xf32> to vector<2x1x16xf32>
    %449 = vector.broadcast %448 : vector<2x1x16xf32> to vector<2x16x16xf32>
    %450 = arith.addf %24, %449 : vector<2x16x16xf32>
    %cst_116 = arith.constant 0.000000e+00 : f32
    %451 = vector.broadcast %cst_116 : f32 to vector<2x16x16xf32>
    %452 = arith.maximumf %450, %451 : vector<2x16x16xf32>
    %453 = vector.shape_cast %31 : vector<1x16xf32> to vector<1x1x16xf32>
    %454 = vector.broadcast %453 : vector<1x1x16xf32> to vector<2x16x16xf32>
    %455 = arith.mulf %452, %454 : vector<2x16x16xf32>
    %cst_117 = arith.constant dense<0.000000e+00> : vector<2x16xf32>
    %456 = vector.multi_reduction <add>, %455, %cst_117 [2] : vector<2x16x16xf32> to vector<2x16xf32>
    %457 = vector.broadcast %32 : vector<1x16xf32> to vector<2x16xf32>
    %458 = arith.addf %456, %457 : vector<2x16xf32>
    %cst_118 = arith.constant dense<0xFF800000> : vector<2xf32>
    %459 = vector.multi_reduction <maximumf>, %458, %cst_118 [1] : vector<2x16xf32> to vector<2xf32>
    %460 = vector.shape_cast %459 : vector<2xf32> to vector<2x1xf32>
    %461 = vector.broadcast %460 : vector<2x1xf32> to vector<2x16xf32>
    %462 = arith.subf %458, %461 : vector<2x16xf32>
    %463 = math.exp %462 : vector<2x16xf32>
    %cst_119 = arith.constant dense<0.000000e+00> : vector<2xf32>
    %464 = vector.multi_reduction <add>, %463, %cst_119 [1] : vector<2x16xf32> to vector<2xf32>
    %465 = vector.shape_cast %464 : vector<2xf32> to vector<2x1xf32>
    %466 = tpu.reciprocal %465 {approx = true} : vector<2x1xf32> -> vector<2x1xf32>
    %467 = vector.broadcast %466 : vector<2x1xf32> to vector<2x16xf32>
    %468 = arith.mulf %463, %467 : vector<2x16xf32>
    %469 = vector.shape_cast %468 : vector<2x16xf32> to vector<2x16x1xf32>
    %470 = vector.broadcast %469 : vector<2x16x1xf32> to vector<2x16x32xf32>
    %471 = arith.mulf %8, %470 : vector<2x16x32xf32>
    %cst_120 = arith.constant dense<0.000000e+00> : vector<2x32xf32>
    %472 = vector.multi_reduction <add>, %471, %cst_120 [1] : vector<2x16x32xf32> to vector<2x32xf32>
    %473 = arith.mulf %447, %472 : vector<2x32xf32>
    %474 = tpu.concatenate %473, %435 in 1 : vector<2x32xf32>, vector<2x32xf32> -> vector<2x64xf32>
    %475 = vector.extract_strided_slice %30 {offsets = [12, 0], sizes = [2, 128], strides = [1, 1]} : vector<14x128xf32> to vector<2x128xf32>
    %cst_121 = arith.constant dense<0.000000e+00> : vector<2x128xf32>
    %476 = tpu.matmul %474, %437, %cst_121 {dimension_numbers = #tpu.dot_dimension_numbers<[1], [0], [0], [1], [0, 0, 1, 1], [], []>} : vector<2x64xf32>, vector<64x128xf32>, vector<2x128xf32> -> vector<2x128xf32>
    %477 = arith.addf %475, %476 : vector<2x128xf32>
    %478 = vector.extract_strided_slice %477 {offsets = [0, 0], sizes = [2, 32], strides = [1, 1]} : vector<2x128xf32> to vector<2x32xf32>
    %479 = arith.negf %478 : vector<2x32xf32>
    %480 = math.exp %479 : vector<2x32xf32>
    %cst_122 = arith.constant 1.000000e+00 : f32
    %481 = vector.broadcast %cst_122 : f32 to vector<2x32xf32>
    %482 = arith.addf %481, %480 : vector<2x32xf32>
    %483 = arith.divf %481, %482 : vector<2x32xf32>
    %484 = vector.extract_strided_slice %477 {offsets = [0, 32], sizes = [2, 32], strides = [1, 1]} : vector<2x128xf32> to vector<2x32xf32>
    %485 = arith.negf %484 : vector<2x32xf32>
    %486 = math.exp %485 : vector<2x32xf32>
    %cst_123 = arith.constant 1.000000e+00 : f32
    %487 = vector.broadcast %cst_123 : f32 to vector<2x32xf32>
    %488 = arith.addf %487, %486 : vector<2x32xf32>
    %489 = arith.divf %487, %488 : vector<2x32xf32>
    %490 = vector.extract_strided_slice %477 {offsets = [0, 64], sizes = [2, 32], strides = [1, 1]} : vector<2x128xf32> to vector<2x32xf32>
    %491 = math.tanh %490 : vector<2x32xf32>
    %492 = vector.extract_strided_slice %477 {offsets = [0, 96], sizes = [2, 32], strides = [1, 1]} : vector<2x128xf32> to vector<2x32xf32>
    %493 = arith.negf %492 : vector<2x32xf32>
    %494 = math.exp %493 : vector<2x32xf32>
    %cst_124 = arith.constant 1.000000e+00 : f32
    %495 = vector.broadcast %cst_124 : f32 to vector<2x32xf32>
    %496 = arith.addf %495, %494 : vector<2x32xf32>
    %497 = arith.divf %495, %496 : vector<2x32xf32>
    %498 = arith.mulf %489, %433 : vector<2x32xf32>
    %499 = arith.mulf %483, %491 : vector<2x32xf32>
    %500 = arith.addf %498, %499 : vector<2x32xf32>
    %501 = math.tanh %500 : vector<2x32xf32>
    %502 = arith.mulf %497, %501 : vector<2x32xf32>
    %503 = tpu.concatenate %100, %167, %234, %301, %368, %435, %502 in 0 : vector<2x32xf32>, vector<2x32xf32>, vector<2x32xf32>, vector<2x32xf32>, vector<2x32xf32>, vector<2x32xf32>, vector<2x32xf32> -> vector<14x32xf32>
    %c224 = arith.constant 224 : index
    %c0_125 = arith.constant 0 : index
    %504 = vector.load %arg2[%c224, %c0_125] : memref<256x128xf32, #tpu.memory_space<vmem>>, vector<32x64xf32>
    %cst_126 = arith.constant dense<0.000000e+00> : vector<14x64xf32>
    %505 = tpu.matmul %503, %504, %cst_126 {dimension_numbers = #tpu.dot_dimension_numbers<[1], [0], [0], [1], [0, 0, 1, 1], [], []>} : vector<14x32xf32>, vector<32x64xf32>, vector<14x64xf32> -> vector<14x64xf32>
    %c5 = arith.constant 5 : index
    %c0_127 = arith.constant 0 : index
    %506 = vector.load %arg3[%c5, %c0_127] : memref<8x128xf32, #tpu.memory_space<vmem>>, vector<1x64xf32>
    %507 = vector.broadcast %506 : vector<1x64xf32> to vector<14x64xf32>
    %508 = arith.addf %505, %507 : vector<14x64xf32>
    %c0_128 = arith.constant 0 : index
    %c0_129 = arith.constant 0 : index
    %509 = vector.load %arg4[%c0_128, %c0_129] : memref<14x64xf32, #tpu.memory_space<vmem>>, vector<14x64xf32>
    tpu.vector_store %arg4[%c0_128, %c0_129], %508 {strides = array<i32>} : memref<14x64xf32, #tpu.memory_space<vmem>>, vector<14x64xf32>,
    %510 = tpu.concatenate %66, %133, %200, %267, %334, %401, %468 in 0 : vector<2x16xf32>, vector<2x16xf32>, vector<2x16xf32>, vector<2x16xf32>, vector<2x16xf32>, vector<2x16xf32>, vector<2x16xf32> -> vector<14x16xf32>
    %c0_130 = arith.constant 0 : index
    %c0_131 = arith.constant 0 : index
    %511 = vector.load %arg5[%c0_130, %c0_131] : memref<14x16xf32, #tpu.memory_space<vmem>>, vector<14x16xf32>
    tpu.vector_store %arg5[%c0_130, %c0_131], %510 {strides = array<i32>} : memref<14x16xf32, #tpu.memory_space<vmem>>, vector<14x16xf32>,
    return
  }
}

</mosaic_0001>

<bundles_post_ra>
// kernel: cnn_to_rnn_forward.1
= control target key start
LH: loop header
LB: loop body
LE: loop exit
PB: predicated region body
PF: predicated region fallthrough
CT: control target
= control target key end

     0   :  { %vm34_vm0 = vcmask 392192   ;;  %v5524_v16 = vmov 0.0|0.0   ;;  %vm4465_vm1 = vmmov 0   ;;  %v4466_v19 = vmov 0.0   ;;  %s4469_s13 = smov 16   ;;  %s4470_s20 = smov 112   ;;  %s5518_s2 = inlined_call_operand.vmem [shape: f32[256,128], index: 2, kind: input, shape index: {}]   ;;  %s5519_s0 = inlined_call_operand.vmem [shape: f32[32,48], index: 0, kind: input, shape index: {}]   ;;  %s5520_s3 = inlined_call_operand.vmem [shape: f32[8,128], index: 3, kind: input, shape index: {}]   ;;  %s5521_s1 = inlined_call_operand.vmem [shape: f32[14,16], index: 1, kind: input, shape index: {}]   ;;  %s5522_s5 = inlined_call_operand.vmem [shape: f32[14,16], index: 5, kind: output, shape index: {1}]   ;;  %s5523_s4 = inlined_call_operand.vmem [shape: f32[14,64], index: 4, kind: output, shape index: {0}]  }
   0x1   :  { %v23_v0 = vld [vmem:[%s5518_s2] sm:$0xff]  ;;  %v24_v1 = vld [vmem:[%s5518_s2 + $0x8] sm:$0xff]  ;;  %v25_v2 = vld [vmem:[%s5518_s2 + $0x10] sm:$0xff]  ;;  %4143 = vmatprep.subr.bf16.mxu1 %v5524_v16  ;;  %3886 = vmatprep.mubr.msk.f32.mxu1 %vm4465_vm1, %v4466_v19  ;;  %vm136_vm2 = vcmask 261120   ;;  %vm169_vm3 = vcmask 1041409   ;;  %vm358_vm4 = vcmask 130048  }
   0x2   :  { %v4131_v3 = vpack.c.bf16 %v24_v1, %v23_v0  ;;  %v26_v4 = vld [vmem:[%s5518_s2 + $0x18] sm:$0xff]  ;;  %v27_v6 = vld [vmem:[%s5518_s2 + $0x20] sm:$0xff]  ;;  %v28_v7 = vld [vmem:[%s5518_s2 + $0x28] sm:$0xff]  ;;  %vm644_vm5 = vcmask 130112   ;;  %vm657_vm6 = vcmask 123904   ;;  %s4471_s21 = smov 32  }
   0x3   :  { %v4135_v5 = vpack.c.bf16 %v26_v4, %v25_v2  ;;  %v19_v8 = vld [vmem:[%s5519_s0] sm:$0xff]  ;;  %v4139_v9 = vpack.c.bf16 %v28_v7, %v27_v6  ;;  %v20_v10 = vld [vmem:[%s5519_s0 + $0x8] sm:$0xff]  ;;  %v21_v11 = vld [vmem:[%s5519_s0 + $0x10] sm:$0xff]  ;;  %vm796_vm7 = vcmask 523264   ;;  %s4472_s24 = smov 64   ;;  %vm3416_vm8 = vcmask 1041408  }
   0x4   :  { %4132 = vmatprep.subr.bf16.mxu0 %v4131_v3  ;;  %3872 = vmatprep.mubr.msk.f32.mxu0 %vm34_vm0, %v19_v8  ;;  %v22_v12 = vld [vmem:[%s5519_s0 + $0x18] sm:$0xff]  ;;  %v158_v13 = vld [vmem:[%s5518_s2 + $0x50] sm:$0xff]  ;;  %v160_v15 = vld [vmem:[%s5518_s2 + $0x60] sm:$0xff]  ;;  %vm3418_vm9 = vcmask 1043456   ;;  %vm3559_vm10 = vcmask 1043459   ;;  %vm3580_vm11 = vcmask 1045509  }
   0x5   :  { %4134 = vmatpush3.bf16.msra.mxu0 %v4131_v3  ;;  %v159_v14 = vld [vmem:[%s5518_s2 + $0x58] sm:$0xff]  ;;  %v161_v18 = vld [vmem:[%s5518_s2 + $0x68] sm:$0xff]  ;;  %v243_v20 = vld [vmem:[%s5518_s2 + $0x30] sm:$0xff]  ;;  %vm3601_vm12 = vcmask 1047559   ;;  %vm3420_vm13 = vcmask 1045504   ;;  %vm3670_vm14 = vcmask 128000  }
   0x6   :  { %4136 = vmatprep.subr.bf16.mxu0 %v4135_v5  ;;  %v4144_v17 = vpack.c.bf16 %v159_v14, %v158_v13  ;;  %v244_v21 = vld [vmem:[%s5518_s2 + $0x38] sm:$0xff]  ;;  %v4147_v22 = vpack.c.bf16 %v161_v18, %v160_v15  ;;  %v3680_v24 = vld [vmem:[%s5520_s3] ss:$0 sm:$0xff]  ;;  %v246_v56 = vld [vmem:[%s5518_s2 + $0x48] sm:$0xff]  ;;  %v542_v13 = vlaneseq  ;;  %vm3519_vm15 = vcmask 521216  }
   0x7   :  { %v4149_v23 = vpack.c.bf16 %v244_v21, %v243_v20  ;;  %v245_v55 = vld [vmem:[%s5518_s2 + $0x40] sm:$0xff]  ;;  %v443_v61 = vld [vmem:[%s5518_s2 + $0x70] sm:$0xff]  ;;  %v444_v62 = vld [vmem:[%s5518_s2 + $0x78] sm:$0xff] }
   0x8   :  { %4145 = vmatpush3.bf16.msra.mxu1 %v4144_v17  ;;  %v4153_v59 = vpack.c.bf16 %v246_v56, %v245_v55  ;;  %v4594_v63 = vpack.c.bf16 %v444_v62, %v443_v61  ;;  %v445_v0 = vld [vmem:[%s5518_s2 + $0x80] sm:$0xff]  ;;  %v446_v1 = vld [vmem:[%s5518_s2 + $0x88] sm:$0xff]  ;;  %v4630_v15 = vshrl.u32 %v542_v13, 7 }
   0x9   :  { %4138 = vmatpush3.bf16.msra.mxu0 %v4135_v5  ;;  %4146 = vmatprep.subr.bf16.mxu1 %v5524_v16  ;;  %v4608_v2 = vpack.c.bf16 %v446_v1, %v445_v0  ;;  %v3685_v3 = vld [vmem:[%s5520_s3 + $0x2] ss:$0 sm:$0xff]  ;;  %v4635_v17 = vld [vmem:[%s5520_s3 + $0x3] ss:$0 sm:$0xff]  ;;  %v3699_v56 = vld [vmem:[%s5520_s3 + $0x7] ss:$0 sm:$0xff] }
   0xa   :  { %4140 = vmatprep.subr.bf16.mxu0 %v4139_v9 }
   0xc   :  { %4148 = vmatpush3.bf16.msra.mxu1 %v4147_v22 }
   0xd   :  { %4142 = vmatpush3.bf16.msra.mxu0 %v4139_v9  ;;  %4150 = vmatprep.subr.bf16.mxu1 %v4149_v23 }
  0x10   :  { %3873 = vmatmul.mubr.msk.f32.vlgmr.msra.gmra.mrb[0].mxu0 %vm34_vm0, %v20_v10 }
  0x11   :  { %3875 = vmatprep.mubr.msk.f32.mxu0 %vm34_vm0, %v21_v11  ;;  %v4467_v11 = vmov 1966171168  }
  0x14   :  { %3876 = vmatmul.mubr.msk.f32.gmra.mrb[2].mxu0 %vm34_vm0, %v22_v12  ;;  %v540_v12 = vunpack.c.l.s4 %v4467_v11 }
  0x16   :  { %v541_v14 = vunpack.c.0.s8 %v540_v12 }
  0x18   :  { %v4638_v18 = vsub.s32 %v541_v14, %v4630_v15 }
  0xe3   :  { %v3874_v25 = vpop.f32.mrb[0].mxu0 }
  0xe4   :  { %v119_v26 = vadd.f32 %v3874_v25, %v3680_v24  ;;  %v113_v27 = vpop.f32.mrb[1].mxu0  ;;  %v3687_v25 = vld [vmem:[%s5520_s3 + $0x1] ss:$0 sm:$0xff] }
  0xe5   :  { %v114_v28 = vadd.f32 %v3680_v24, %v113_v27 }
  0xe6   :  { %v4562_v29 = vmax.f32 %v119_v26, 0.0 }
  0xe7   :  { %v4564_v30 = vmax.f32 %v114_v28, 0.0  ;;  %v3877_v31 = vpop.f32.mrb[2].mxu0 }
  0xe8   :  { %v129_v32 = vadd.f32 %v3877_v31, %v3680_v24  ;;  %v123_v33 = vpop.f32.mrb[3].mxu0  ;;  %v138_v34 = vsel %vm136_vm2, %v4562_v29, 0.0 }
  0xe9   :  { %v124_v35 = vadd.f32 %v3680_v24, %v123_v33  ;;  %v137_v36 = vsel %vm136_vm2, %v4564_v30, 0.0  ;;  %v4646_v24 = vsub.s32 0, %v4630_v15 }
  0xea   :  { %v4570_v37 = vmax.f32 %v129_v32, 0.0  ;;  %v139_v38 = vadd.f32 %v138_v34, %v137_v36 }
  0xeb   :  { %v4572_v39 = vmax.f32 %v124_v35, 0.0 }
  0xec   :  { %v140_v40 = vrot.slane %v139_v38, 4  ;;  %v147_v41 = vsel %vm136_vm2, %v4570_v37, 0.0 }
  0xed   :  { %v146_v42 = vsel %vm136_vm2, %v4572_v39, 0.0 }
  0xee   :  { %v141_v43 = vadd.f32 %v140_v40, %v139_v38  ;;  %v148_v44 = vadd.f32 %v147_v41, %v146_v42  ;;  %v4668_v41 = vld [vmem:[%s5520_s3 + $0x6] ss:$0 sm:$0xff] }
  0xf0   :  { %v142_v45 = vrot.slane %v141_v43, 2  ;;  %v149_v46 = vrot.slane %v148_v44, 4 }
  0xf2   :  { %v143_v47 = vadd.f32 %v142_v45, %v141_v43  ;;  %v150_v48 = vadd.f32 %v149_v46, %v148_v44 }
  0xf4   :  { %v144_v49 = vrot.slane %v143_v47, 1  ;;  %v151_v50 = vrot.slane %v150_v48, 2 }
  0xf6   :  { %v152_v51 = vadd.f32 %v151_v50, %v150_v48  ;;  %v145_v52 = vadd.f32 %v144_v49, %v143_v47 }
  0xf8   :  { %v153_v53 = vrot.slane %v152_v51, 1  ;;  %v156_v57 = vmul.f32 0.0625, %v145_v52 }
  0xfa   :  { %v154_v54 = vadd.f32 %v153_v53, %v152_v51 }
  0xfc   :  { %v157_v58 = vmul.f32 0.0625, %v154_v54 }
  0xfe   :  { %v170_v60 = vsel %vm169_vm3, %v157_v58, %v156_v57  ;;  %v4468_v57 = vmov 0  }
  0xff   :  { %3887 = vmatmul.mubr.msk.f32.vlgmr.msra.gmra.mrb[0].mxu1 %vm136_vm2, %v170_v60  ;;  %4305 = vset.pattern.permute.xlu0 %v4468_v57 }
 0x100   :  { %4152 = vmatpush3.bf16.msra.mxu1 %v4149_v23  ;;  %3897 = vmatprep.mubr.msk.f32.mxu1 %vm136_vm2, %v4564_v30 }
 0x101   :  { %4154 = vmatprep.subr.bf16.mxu1 %v4153_v59  ;;  %4304 = vset.pattern.permute.xlu1 %v4468_v57 }
 0x104   :  { %4156 = vmatpush3.bf16.msra.mxu1 %v4153_v59 }
 0x105   :  { %4161 = vmatprep.subr.bf16.mxu1 %v5524_v16 }
 0x107   :  { %3898 = vmatmul.mubr.msk.f32.vlgmr.msra.gmra.mrb[2].mxu1 %vm136_vm2, %v4562_v29 }
 0x108   :  { %3900 = vmatprep.mubr.msk.f32.mxu1 %vm136_vm2, %v4572_v39  ;;  %4163 = vmatpush3.bf16.msra.mxu1 %v4594_v63 }
 0x109   :  { %4164 = vmatprep.subr.bf16.mxu1 %v5524_v16 }
 0x10b   :  { %3901 = vmatmul.mubr.msk.f32.gmra.mrb[4].mxu1 %vm136_vm2, %v4570_v37 }
 0x10c   :  { %4166 = vmatpush3.bf16.msra.mxu1 %v4608_v2  ;;  %3918 = vmatprep.mubr.msk.f32.mxu1 %vm4465_vm1, %v4466_v19 }
 0x10d   :  { %4179 = vmatprep.subr.bf16.mxu1 %v5524_v16 }
 0x1d2   :  { %v239_v4 = vpop.f32.mrb[0].mxu1 }
 0x1d3   :  { %v4620_v5 = vadd.f32 %v3685_v3, %v239_v4  ;;  %v3888_v6 = vpop.f32.mrb[1].mxu1 }
 0x1d5   :  { %3919 = vmatmul.mubr.msk.f32.vlgmr.msra.gmra.mrb[6].mxu1 %vm136_vm2, %v4620_v5 }
 0x1d6   :  { %4181 = vmatpush3.bf16.msra.mxu1 %v4594_v63  ;;  %3948 = vmatprep.mubr.msk.f32.mxu1 %vm4465_vm1, %v4466_v19 }
 0x1d7   :  { %4182 = vmatprep.subr.bf16.mxu1 %v5524_v16 }
 0x1da   :  { %v3899_v7 = vpop.f32.mrb[2].mxu1  ;;  %4184 = vmatpush3.bf16.msra.mxu1 %v4608_v2 }
 0x1db   :  { %v330_v8 = vpop.f32.mrb[3].mxu1  ;;  %4185 = vmatprep.subr.bf16.mxu1 %v5524_v16  ;;  %v4652_v28 = vadd.f32 %v3899_v7, %v3687_v25  ;;  %v634_v7 = vand.u32 127, %v542_v13 }
 0x1dc   :  { %v4654_v31 = vadd.f32 %v3687_v25, %v330_v8 }
 0x1dd   :  { %v639_v8 = vadd.s32 4294967288, %v634_v7  ;;  %v4695_v12 = vsub.s32 %v634_v7, %v4630_v15 }
 0x1de   :  { %v3902_v9 = vpop.f32.mrb[4].mxu1 }
 0x1df   :  { %v340_v10 = vpop.f32.mrb[5].mxu1  ;;  %v4658_v34 = vadd.f32 %v3902_v9, %v3687_v25 }
 0x1e0   :  { %v4660_v35 = vadd.f32 %v3687_v25, %v340_v10  ;;  %v4692_v10 = vsub.s32 %v639_v8, %v4630_v15 }
 0x2a8   :  { %v528_v20 = vpop.f32.mrb[6].mxu1 }
 0x2a9   :  { %v4641_v21 = vadd.f32 %v4635_v17, %v528_v20  ;;  %v3920_v22 = vpop.f32.mrb[7].mxu1 }
 0x2ab   :  { %v545_v23 = vrot.slane %v4641_v21, %v4638_v18 }
 0x2ad   :  { %v546_v26 = vcombine.high %v545_v23, %v545_v23  ;;  %v553_v27 = vrot.slane %v545_v23, %v4638_v18 }
 0x2af   :  { %v560_v32 = vrot.slane %v546_v26, %v4638_v18  ;;  %v564_v33 = vrot.slane %v553_v27, %v4646_v24 }
 0x2b1   :  { %v571_v36 = vadd.f32 %v564_v33, %v4654_v31  ;;  %v568_v38 = vrot.slane %v560_v32, %v4646_v24  ;;  %v572_v40 = vadd.f32 %v564_v33, %v4652_v28 }
 0x2b3   :  { %v575_v42 = vmax.f32 %v571_v36, 0.0  ;;  %v573_v43 = vadd.f32 %v568_v38, %v4660_v35  ;;  %v576_v44 = vmax.f32 %v572_v40, 0.0  ;;  %v574_v45 = vadd.f32 %v568_v38, %v4658_v34 }
 0x2b4   :  { %v4706_v36 = vsub.s32 1, %v4630_v15 }
 0x2b5   :  { %v583_v46 = vmul.f32 %v4668_v41, %v575_v42  ;;  %v577_v47 = vmax.f32 %v573_v43, 0.0  ;;  %v578_v48 = vmax.f32 %v574_v45, 0.0  ;;  %v584_v51 = vmul.f32 %v4668_v41, %v576_v44 }
 0x2b7   :  { %v587_v49 = vsel %vm358_vm4, %v583_v46, 0.0  ;;  %v585_v50 = vmul.f32 %v4668_v41, %v577_v47  ;;  %v586_v53 = vmul.f32 %v4668_v41, %v578_v48  ;;  %v590_v54 = vsel %vm358_vm4, %v584_v51, 0.0 }
 0x2b8   :  { %588 = vadd.xlane.f32.xlu0 %v587_v49 }
 0x2b9   :  { %v593_v52 = vsel %vm358_vm4, %v585_v50, 0.0  ;;  %v596_v55 = vsel %vm358_vm4, %v586_v53, 0.0 }
 0x2ba   :  { %594 = vadd.xlane.f32.xlu1 %v593_v52 }
 0x2bc   :  { %591 = vadd.xlane.f32.xlu0 %v590_v54 }
 0x2be   :  { %597 = vadd.xlane.f32.xlu1 %v596_v55 }
 0x2cf   :  { %609 = vbcast.lane.b32.xlu1 %v3699_v56, 264 }
 0x2d2   :  { %605 = vbcast.lane.b32.xlu0 %v3699_v56, 256 }
 0x345   :  { %v589_v58 = vpop.xlane.xlu0 %588 }
 0x347   :  { %v595_v59 = vpop.xlane.xlu1 %594 }
 0x349   :  { %v592_v60 = vpop.xlane.xlu0 %591 }
 0x34b   :  { %v598_v61 = vpop.xlane.xlu1 %597 }
 0x34d   :  { %v4683_v62 = vpop.permute.xlu0 %605 }
 0x34e   :  { %v615_v0 = vadd.f32 %v4683_v62, %v595_v59  ;;  %v613_v1 = vadd.f32 %v4683_v62, %v589_v58 }
 0x34f   :  { %v4687_v3 = vpop.permute.xlu1 %609 }
 0x350   :  { %628 = vperm.xlu0 %4305, %v615_v0   ;;  %622 = vperm.xlu1 %4304, %v613_v1   ;;  %v614_v4 = vadd.f32 %v4687_v3, %v592_v60  ;;  %v616_v6 = vadd.f32 %v4687_v3, %v598_v61 }
 0x354   :  { %625 = vperm.xlu1 %4304, %v614_v4  }
 0x358   :  { %631 = vperm.xlu1 %4304, %v616_v6  }
 0x3cf   :  { %v623_v9 = vpop.permute.xlu1 %622  ;;  %v629_v14 = vpop.permute.xlu0 %628 }
 0x3d0   :  { %v649_v23 = vrot.slane %v629_v14, %v4695_v12  ;;  %v638_v25 = vrot.slane %v623_v9, %v4695_v12 }
 0x3d3   :  { %v626_v11 = vpop.permute.xlu1 %625 }
 0x3d4   :  { %v643_v20 = vrot.slane %v626_v11, %v4692_v10 }
 0x3d6   :  { %v645_v26 = vsel %vm644_vm5, %v643_v20, %v638_v25 }
 0x3d7   :  { %v632_v22 = vpop.permute.xlu1 %631 }
 0x3d8   :  { %v653_v13 = vrot.slane %v632_v22, %v4692_v10 }
 0x3da   :  { %v654_v27 = vsel %vm644_vm5, %v653_v13, %v649_v23 }
 0x3db   :  { %v655_v32 = vsel %vm169_vm3, %v654_v27, %v645_v26 }
 0x3dc   :  { %v658_v33 = vsel %vm657_vm6, %v655_v32, -inf }
 0x3dd   :  { %659 = vmax.xlane.f32.xlu1 %v658_v33 }
 0x46a   :  { %v660_v38 = vpop.xlane.xlu1 %659 }
 0x46b   :  { %v665_v40 = vrot.slane %v660_v38, %v4646_v24  ;;  %v669_v42 = vrot.slane %v660_v38, %v4706_v36 }
 0x46d   :  { %v672_v43 = vsub.f32 %v613_v1, %v665_v40  ;;  %v673_v44 = vsub.f32 %v614_v4, %v665_v40  ;;  %v674_v46 = vsub.f32 %v615_v0, %v669_v42  ;;  %v675_v48 = vsub.f32 %v616_v6, %v669_v42 }
 0x46f   :  { %v676_v45 = vmul.f32 1.442695, %v672_v43  ;;  %v678_v47 = vmul.f32 1.442695, %v673_v44  ;;  %v680_v49 = vmul.f32 1.442695, %v674_v46 }
 0x470   :  { %v682_v50 = vmul.f32 1.442695, %v675_v48 }
 0x471   :  { %4306 = vpow2.f32 %v676_v45 }
 0x472   :  { %4308 = vpow2.f32 %v678_v47 }
 0x473   :  { %4310 = vpow2.f32 %v680_v49 }
 0x474   :  { %4312 = vpow2.f32 %v682_v50 }
 0x47b   :  { %v4307_v51 = vpop.eup %4306 }
 0x47c   :  { %689 = vperm.xlu0 %4305, %v4307_v51   ;;  %v4309_v15 = vpop.eup %4308 }
 0x47d   :  { %v4311_v52 = vpop.eup %4310 }
 0x47e   :  { %v4313_v53 = vpop.eup %4312 }
 0x480   :  { %692 = vperm.xlu0 %4305, %v4309_v15  }
 0x484   :  { %695 = vperm.xlu0 %4305, %v4311_v52  }
 0x488   :  { %698 = vperm.xlu0 %4305, %v4313_v53  }
 0x4fb   :  { %v690_v54 = vpop.permute.xlu0 %689 }
 0x4fc   :  { %v703_v59 = vrot.slane %v690_v54, %v4695_v12 }
 0x4ff   :  { %v693_v55 = vpop.permute.xlu0 %692 }
 0x500   :  { %v707_v57 = vrot.slane %v693_v55, %v4692_v10 }
 0x502   :  { %v708_v0 = vsel %vm644_vm5, %v707_v57, %v703_v59  ;;  %v352_v57 = vld [vmem:[%s5518_s2 + $0x98] sm:$0xff]  ;;  %v349_v59 = vld [vmem:[%s5521_s1] sm:$0xff] }
 0x503   :  { %v696_v56 = vpop.permute.xlu0 %695  ;;  %3907 = vmatprep.mubr.msk.f32.mxu0 %vm358_vm4, %v349_v59 }
 0x504   :  { %v712_v60 = vrot.slane %v696_v56, %v4695_v12  ;;  %v351_v56 = vld [vmem:[%s5518_s2 + $0x90] sm:$0xff] }
 0x507   :  { %v699_v58 = vpop.permute.xlu0 %698 }
 0x508   :  { %v716_v61 = vrot.slane %v699_v58, %v4692_v10  ;;  %v4157_v58 = vpack.c.bf16 %v352_v57, %v351_v56 }
 0x50a   :  { %v717_v1 = vsel %vm644_vm5, %v716_v61, %v712_v60  ;;  %v447_v60 = vld [vmem:[%s5518_s2 + $0xa0] sm:$0xff]  ;;  %v448_v61 = vld [vmem:[%s5518_s2 + $0xa8] sm:$0xff]  ;;  %4158 = vmatprep.subr.bf16.mxu0 %v4157_v58 }
 0x50b   :  { %v718_v4 = vsel %vm169_vm3, %v717_v1, %v708_v0  ;;  %4160 = vmatpush3.bf16.msra.mxu0 %v4157_v58 }
 0x50c   :  { %v720_v6 = vsel %vm657_vm6, %v718_v4, 0.0  ;;  %4167 = vmatprep.subr.bf16.mxu0 %v5524_v16 }
 0x50d   :  { %721 = vadd.xlane.f32.xlu0 %v720_v6  ;;  %v350_v6 = vld [vmem:[%s5521_s1 + $0x8] sm:$0x3f] }
 0x50e   :  { %3908 = vmatmul.mubr.msk.f32.vlgmr.msra.gmra.mrb[4].mxu0 %vm358_vm4, %v350_v6 }
 0x50f   :  { %3937 = vmatprep.mubr.msk.f32.mxu0 %vm4465_vm1, %v4466_v19 }
 0x59a   :  { %v722_v7 = vpop.xlane.xlu0 %721 }
 0x59b   :  { %4314 = vrcp.f32 %v722_v7  ;;  %v4759_v7 = vpack.c.bf16 %v448_v61, %v447_v60 }
 0x59d   :  { %4169 = vmatpush3.bf16.msra.mxu0 %v4759_v7 }
 0x59e   :  { %4170 = vmatprep.subr.bf16.mxu0 %v5524_v16 }
 0x5a5   :  { %v4315_v8 = vpop.eup %4314 }
 0x5a6   :  { %v728_v9 = vrot.slane %v4315_v8, %v4646_v24  ;;  %v732_v20 = vrot.slane %v4315_v8, %v4706_v36  ;;  %v449_v8 = vld [vmem:[%s5518_s2 + $0xb0] sm:$0xff] }
 0x5a8   :  { %v736_v11 = vmul.f32 %v4309_v15, %v728_v9  ;;  %v735_v14 = vmul.f32 %v4307_v51, %v728_v9  ;;  %v737_v22 = vmul.f32 %v4311_v52, %v732_v20  ;;  %v738_v23 = vmul.f32 %v4313_v53, %v732_v20  ;;  %v450_v9 = vld [vmem:[%s5518_s2 + $0xb8] sm:$0xff]  ;;  %v451_v20 = vld [vmem:[%s5518_s2 + $0xc0] sm:$0xff] }
 0x5aa   :  { %746 = vperm.xlu0 %4305, %v736_v11   ;;  %741 = vperm.xlu1 %4304, %v735_v14   ;;  %v4772_v14 = vpack.c.bf16 %v450_v9, %v449_v8 }
 0x5ac   :  { %4172 = vmatpush3.bf16.msra.mxu0 %v4772_v14 }
 0x5ad   :  { %4173 = vmatprep.subr.bf16.mxu0 %v5524_v16 }
 0x5ae   :  { %751 = vperm.xlu1 %4304, %v737_v22   ;;  %v452_v22 = vld [vmem:[%s5518_s2 + $0xc8] sm:$0xff] }
 0x5b2   :  { %756 = vperm.xlu1 %4304, %v738_v23   ;;  %v4784_v23 = vpack.c.bf16 %v452_v22, %v451_v20 }
 0x5b4   :  { %4175 = vmatpush3.bf16.msra.mxu0 %v4784_v23 }
 0x5b5   :  { %4176 = vmatprep.subr.bf16.mxu0 %v5524_v16 }
 0x629   :  { %v4720_v25 = vpop.permute.xlu0 %746  ;;  %v4722_v13 = vpop.permute.xlu1 %741 }
 0x62a   :  { %v760_v26 = vmul.f32 %v4720_v25, %v4562_v29  ;;  %v759_v27 = vmul.f32 %v4722_v13, %v4564_v30 }
 0x62c   :  { %v764_v32 = vsel %vm136_vm2, %v760_v26, 0.0  ;;  %v763_v33 = vsel %vm136_vm2, %v759_v27, 0.0  ;;  %v3697_v26 = vmul.f32 -1.442695, %v4641_v21 }
 0x62d   :  { %v765_v38 = vadd.f32 %v764_v32, %v763_v33  ;;  %v4730_v40 = vpop.permute.xlu1 %751  ;;  %v453_v33 = vld [vmem:[%s5518_s2 + $0xd0] sm:$0xff] }
 0x62e   :  { %v761_v43 = vmul.f32 %v4730_v40, %v4572_v39  ;;  %4316 = vpow2.f32 %v3697_v26 }
 0x62f   :  { %v766_v42 = vrot.slane %v765_v38, 4 }
 0x630   :  { %v772_v47 = vsel %vm136_vm2, %v761_v43, 0.0 }
 0x631   :  { %v767_v44 = vadd.f32 %v766_v42, %v765_v38  ;;  %v4734_v45 = vpop.permute.xlu1 %756  ;;  %v454_v38 = vld [vmem:[%s5518_s2 + $0xd8] sm:$0xff] }
 0x632   :  { %v762_v46 = vmul.f32 %v4734_v45, %v4570_v37  ;;  %v4796_v42 = vpack.c.bf16 %v454_v38, %v453_v33 }
 0x633   :  { %v768_v50 = vrot.slane %v767_v44, 2 }
 0x634   :  { %v773_v48 = vsel %vm136_vm2, %v762_v46, 0.0  ;;  %4178 = vmatpush3.bf16.msra.mxu0 %v4796_v42  ;;  %v3692_v46 = vld [vmem:[%s5520_s3 + $0x4] ss:$0 sm:$0xff] }
 0x635   :  { %v774_v49 = vadd.f32 %v773_v48, %v772_v47  ;;  %v769_v52 = vadd.f32 %v768_v50, %v767_v44  ;;  %4197 = vmatprep.subr.bf16.mxu0 %v5524_v16  ;;  %v3909_v47 = vpop.f32.mrb[4].mxu0 }
 0x636   :  { %v4806_v48 = vadd.f32 %v3909_v47, %v3692_v46 }
 0x637   :  { %v775_v51 = vrot.slane %v774_v49, 4  ;;  %v770_v54 = vrot.slane %v769_v52, 1 }
 0x638   :  { %v4317_v27 = vpop.eup %4316 }
 0x639   :  { %v776_v15 = vadd.f32 %v775_v51, %v774_v49  ;;  %v771_v1 = vadd.f32 %v770_v54, %v769_v52  ;;  %v535_v32 = vadd.f32 1.0, %v4317_v27  ;;  %v431_v49 = vpop.f32.mrb[5].mxu0 }
 0x63a   :  { %v4816_v52 = vadd.f32 %v3692_v46, %v431_v49 }
 0x63b   :  { %v777_v53 = vrot.slane %v776_v15, 2  ;;  %4318 = vrcp.f32 %v535_v32 }
 0x63d   :  { %v778_v55 = vadd.f32 %v777_v53, %v776_v15 }
 0x63f   :  { %v779_v0 = vrot.slane %v778_v55, 1 }
 0x641   :  { %v780_v4 = vadd.f32 %v779_v0, %v778_v55 }
 0x643   :  { %v783_v11 = vsel %vm169_vm3, %v780_v4, %v771_v1 }
 0x644   :  { %784 = vrot.lane.b32.xlu1 %v783_v11, %s4469_s13 }
 0x645   :  { %v4319_v43 = vpop.eup %4318 }
 0x6b6   :  { %v785_v21 = vpop.permute.xlu1 %784 }
 0x6b7   :  { %v787_v44 = vmul.f32 %v4319_v43, %v785_v21 }
 0x6b9   :  { %789 = vrot.lane.b32.xlu1 %v787_v44, %s4470_s20 }
 0x6bd   :  { %792 = vrot.lane.b32.xlu1 %v4620_v5, %s4471_s21 }
 0x72b   :  { %v790_v50 = vpop.permute.xlu1 %789 }
 0x72f   :  { %v793_v51 = vpop.permute.xlu1 %792 }
 0x730   :  { %v795_v15 = vsel %vm136_vm2, %v790_v50, %v793_v51 }
 0x731   :  { %3938 = vmatmul.mubr.msk.f32.vlgmr.msra.gmra.mrb[6].mxu0 %vm796_vm7, %v795_v15 }
 0x732   :  { %4199 = vmatpush3.bf16.msra.mxu0 %v4594_v63  ;;  %3978 = vmatprep.mubr.msk.f32.mxu0 %vm4465_vm1, %v4466_v19 }
 0x733   :  { %4200 = vmatprep.subr.bf16.mxu0 %v5524_v16 }
 0x736   :  { %4202 = vmatpush3.bf16.msra.mxu0 %v4608_v2 }
 0x737   :  { %4203 = vmatprep.subr.bf16.mxu0 %v5524_v16 }
 0x804   :  { %v866_v53 = vpop.f32.mrb[6].mxu0 }
 0x805   :  { %v870_v54 = vadd.f32 %v866_v53, %v4816_v52  ;;  %v3939_v55 = vpop.f32.mrb[7].mxu0 }
 0x807   :  { %4320 = vtanh.f32 %v870_v54  ;;  %v3701_v57 = vmul.f32 -1.442695, %v870_v54 }
 0x809   :  { %4322 = vpow2.f32 %v3701_v57 }
 0x811   :  { %v4321_v56 = vpop.eup %4320 }
 0x812   :  { %880 = vrot.lane.b32.xlu0 %v4321_v56, %s4472_s24 }
 0x813   :  { %v4323_v58 = vpop.eup %4322 }
 0x814   :  { %v874_v59 = vadd.f32 1.0, %v4323_v58 }
 0x816   :  { %4324 = vrcp.f32 %v874_v59 }
 0x820   :  { %v4325_v60 = vpop.eup %4324 }
 0x821   :  { %v878_v1 = vmul.f32 %v4325_v60, %v4620_v5 }
 0x884   :  { %v881_v61 = vpop.permute.xlu0 %880 }
 0x885   :  { %v883_v0 = vmul.f32 %v4325_v60, %v881_v61 }
 0x887   :  { %885 = vrot.lane.b32.xlu1 %v883_v0, %s4471_s21 }
 0x8f9   :  { %v886_v4 = vpop.permute.xlu1 %885 }
 0x8fa   :  { %v4822_v6 = vadd.f32 %v886_v4, %v878_v1 }
 0x8fc   :  { %4326 = vtanh.f32 %v4822_v6 }
 0x906   :  { %v4327_v8 = vpop.eup %4326 }
 0x907   :  { %891 = vrot.lane.b32.xlu0 %v4327_v8, %s4472_s24 }
 0x979   :  { %v892_v9 = vpop.permute.xlu0 %891 }
 0x97a   :  { %v4826_v11 = vmul.f32 %v4325_v60, %v892_v9 }
 0x97c   :  { %896 = vrot.lane.b32.xlu1 %v4826_v11, %s4471_s21 }
 0x9ee   :  { %v897_v20 = vpop.permute.xlu1 %896 }
 0x9ef   :  { %3949 = vmatmul.mubr.msk.f32.vlgmr.msra.gmra.mrb[8].mxu1 %vm136_vm2, %v897_v20 }
 0x9f0   :  { %4187 = vmatpush3.bf16.msra.mxu1 %v4759_v7  ;;  %3967 = vmatprep.mubr.msk.f32.mxu1 %vm4465_vm1, %v4466_v19 }
 0x9f1   :  { %4188 = vmatprep.subr.bf16.mxu1 %v5524_v16 }
 0x9f4   :  { %4190 = vmatpush3.bf16.msra.mxu1 %v4772_v14 }
 0x9f5   :  { %4191 = vmatprep.subr.bf16.mxu1 %v5524_v16 }
 0x9f8   :  { %4193 = vmatpush3.bf16.msra.mxu1 %v4784_v23 }
 0x9f9   :  { %4194 = vmatprep.subr.bf16.mxu1 %v5524_v16 }
 0x9fc   :  { %4196 = vmatpush3.bf16.msra.mxu1 %v4796_v42 }
 0x9fd   :  { %4215 = vmatprep.subr.bf16.mxu1 %v5524_v16 }
 0xac2   :  { %v966_v5 = vpop.f32.mrb[8].mxu1 }
 0xac3   :  { %v4842_v22 = vadd.f32 %v4635_v17, %v966_v5  ;;  %v3950_v26 = vpop.f32.mrb[9].mxu1 }
 0xac5   :  { %v983_v27 = vrot.slane %v4842_v22, %v4638_v18 }
 0xac7   :  { %v984_v32 = vcombine.high %v983_v27, %v983_v27  ;;  %v991_v33 = vrot.slane %v983_v27, %v4638_v18 }
 0xac9   :  { %v998_v38 = vrot.slane %v984_v32, %v4638_v18  ;;  %v1002_v43 = vrot.slane %v991_v33, %v4646_v24 }
 0xacb   :  { %v1010_v21 = vadd.f32 %v1002_v43, %v4652_v28  ;;  %v1009_v44 = vadd.f32 %v1002_v43, %v4654_v31  ;;  %v1006_v46 = vrot.slane %v998_v38, %v4646_v24 }
 0xacd   :  { %v1014_v47 = vmax.f32 %v1010_v21, 0.0  ;;  %v1013_v49 = vmax.f32 %v1009_v44, 0.0  ;;  %v1011_v50 = vadd.f32 %v1006_v46, %v4660_v35  ;;  %v1012_v51 = vadd.f32 %v1006_v46, %v4658_v34 }
 0xacf   :  { %v1018_v15 = vmul.f32 %v4668_v41, %v1014_v47  ;;  %v1017_v53 = vmul.f32 %v4668_v41, %v1013_v49  ;;  %v1015_v54 = vmax.f32 %v1011_v50, 0.0  ;;  %v1016_v58 = vmax.f32 %v1012_v51, 0.0 }
 0xad1   :  { %v1024_v55 = vsel %vm358_vm4, %v1018_v15, 0.0  ;;  %v1021_v56 = vsel %vm358_vm4, %v1017_v53, 0.0  ;;  %v1019_v57 = vmul.f32 %v4668_v41, %v1015_v54  ;;  %v1020_v60 = vmul.f32 %v4668_v41, %v1016_v58 }
 0xad2   :  { %1025 = vadd.xlane.f32.xlu1 %v1024_v55  ;;  %1022 = vadd.xlane.f32.xlu0 %v1021_v56 }
 0xad3   :  { %v1027_v59 = vsel %vm358_vm4, %v1019_v57, 0.0  ;;  %v1030_v61 = vsel %vm358_vm4, %v1020_v60, 0.0 }
 0xad6   :  { %1028 = vadd.xlane.f32.xlu0 %v1027_v59 }
 0xada   :  { %1031 = vadd.xlane.f32.xlu0 %v1030_v61 }
 0xb5f   :  { %v1026_v0 = vpop.xlane.xlu1 %1025  ;;  %v1023_v1 = vpop.xlane.xlu0 %1022 }
 0xb60   :  { %v1034_v4 = vadd.f32 %v1026_v0, %v4687_v3  ;;  %v1033_v8 = vadd.f32 %v1023_v1, %v4683_v62 }
 0xb62   :  { %1045 = vperm.xlu1 %4304, %v1034_v4   ;;  %1042 = vperm.xlu0 %4305, %v1033_v8  }
 0xb63   :  { %v1029_v9 = vpop.xlane.xlu0 %1028 }
 0xb64   :  { %v1035_v20 = vadd.f32 %v1029_v9, %v4683_v62 }
 0xb66   :  { %1048 = vperm.xlu1 %4304, %v1035_v20  }
 0xb67   :  { %v1032_v5 = vpop.xlane.xlu0 %1031 }
 0xb68   :  { %v1036_v26 = vadd.f32 %v1032_v5, %v4687_v3 }
 0xb6a   :  { %1051 = vperm.xlu1 %4304, %v1036_v26  }
 0xbe1   :  { %v1046_v27 = vpop.permute.xlu1 %1045  ;;  %v1043_v32 = vpop.permute.xlu0 %1042 }
 0xbe2   :  { %v1060_v38 = vrot.slane %v1046_v27, %v4692_v10  ;;  %v1056_v43 = vrot.slane %v1043_v32, %v4695_v12 }
 0xbe4   :  { %v1061_v47 = vsel %vm644_vm5, %v1060_v38, %v1056_v43 }
 0xbe5   :  { %v1049_v33 = vpop.permute.xlu1 %1048 }
 0xbe6   :  { %v1065_v44 = vrot.slane %v1049_v33, %v4695_v12 }
 0xbe9   :  { %v1052_v21 = vpop.permute.xlu1 %1051 }
 0xbea   :  { %v1069_v46 = vrot.slane %v1052_v21, %v4692_v10 }
 0xbec   :  { %v1070_v49 = vsel %vm644_vm5, %v1069_v46, %v1065_v44 }
 0xbed   :  { %v1071_v50 = vsel %vm169_vm3, %v1070_v49, %v1061_v47 }
 0xbee   :  { %v1073_v51 = vsel %vm657_vm6, %v1071_v50, -inf }
 0xbef   :  { %1074 = vmax.xlane.f32.xlu0 %v1073_v51 }
 0xc7c   :  { %v1075_v15 = vpop.xlane.xlu0 %1074 }
 0xc7d   :  { %v1080_v53 = vrot.slane %v1075_v15, %v4646_v24  ;;  %v1084_v54 = vrot.slane %v1075_v15, %v4706_v36 }
 0xc7f   :  { %v1087_v55 = vsub.f32 %v1033_v8, %v1080_v53  ;;  %v1088_v56 = vsub.f32 %v1034_v4, %v1080_v53  ;;  %v1089_v58 = vsub.f32 %v1035_v20, %v1084_v54  ;;  %v1090_v60 = vsub.f32 %v1036_v26, %v1084_v54 }
 0xc81   :  { %v1091_v57 = vmul.f32 1.442695, %v1087_v55  ;;  %v1093_v59 = vmul.f32 1.442695, %v1088_v56  ;;  %v1095_v61 = vmul.f32 1.442695, %v1089_v58 }
 0xc82   :  { %v1097_v0 = vmul.f32 1.442695, %v1090_v60 }
 0xc83   :  { %4328 = vpow2.f32 %v1091_v57 }
 0xc84   :  { %4330 = vpow2.f32 %v1093_v59 }
 0xc85   :  { %4332 = vpow2.f32 %v1095_v61 }
 0xc86   :  { %4334 = vpow2.f32 %v1097_v0 }
 0xc8d   :  { %v4329_v1 = vpop.eup %4328 }
 0xc8e   :  { %1104 = vperm.xlu1 %4304, %v4329_v1   ;;  %v4331_v9 = vpop.eup %4330 }
 0xc8f   :  { %v4333_v5 = vpop.eup %4332 }
 0xc90   :  { %v4335_v27 = vpop.eup %4334 }
 0xc92   :  { %1107 = vperm.xlu1 %4304, %v4331_v9  }
 0xc96   :  { %1110 = vperm.xlu1 %4304, %v4333_v5  }
 0xc9a   :  { %1113 = vperm.xlu1 %4304, %v4335_v27  }
 0xd0d   :  { %v1105_v8 = vpop.permute.xlu1 %1104 }
 0xd0e   :  { %v1118_v26 = vrot.slane %v1105_v8, %v4695_v12 }
 0xd11   :  { %v1108_v4 = vpop.permute.xlu1 %1107 }
 0xd12   :  { %v1122_v20 = vrot.slane %v1108_v4, %v4692_v10 }
 0xd14   :  { %v1123_v21 = vsel %vm644_vm5, %v1122_v20, %v1118_v26 }
 0xd15   :  { %v1111_v32 = vpop.permute.xlu1 %1110 }
 0xd16   :  { %v1127_v38 = vrot.slane %v1111_v32, %v4695_v12 }
 0xd19   :  { %v1114_v33 = vpop.permute.xlu1 %1113 }
 0xd1a   :  { %v1131_v43 = vrot.slane %v1114_v33, %v4692_v10 }
 0xd1c   :  { %v1132_v44 = vsel %vm644_vm5, %v1131_v43, %v1127_v38 }
 0xd1d   :  { %v1133_v46 = vsel %vm169_vm3, %v1132_v44, %v1123_v21 }
 0xd1e   :  { %v1135_v47 = vsel %vm657_vm6, %v1133_v46, 0.0 }
 0xd1f   :  { %1136 = vadd.xlane.f32.xlu1 %v1135_v47 }
 0xdac   :  { %v1137_v49 = vpop.xlane.xlu1 %1136 }
 0xdad   :  { %4336 = vrcp.f32 %v1137_v49 }
 0xdb7   :  { %v4337_v50 = vpop.eup %4336 }
 0xdb8   :  { %v1147_v51 = vrot.slane %v4337_v50, %v4706_v36  ;;  %v1143_v15 = vrot.slane %v4337_v50, %v4646_v24 }
 0xdba   :  { %v1152_v53 = vmul.f32 %v4333_v5, %v1147_v51  ;;  %v1150_v54 = vmul.f32 %v4329_v1, %v1143_v15  ;;  %v1151_v55 = vmul.f32 %v4331_v9, %v1143_v15  ;;  %v1153_v56 = vmul.f32 %v4335_v27, %v1147_v51 }
 0xdbc   :  { %1166 = vperm.xlu1 %4304, %v1152_v53   ;;  %1156 = vperm.xlu0 %4305, %v1150_v54   ;;  %v3703_v54 = vmul.f32 -1.442695, %v4842_v22 }
 0xdbe   :  { %4338 = vpow2.f32 %v3703_v54 }
 0xdc0   :  { %1161 = vperm.xlu0 %4305, %v1151_v55  }
 0xdc4   :  { %1171 = vperm.xlu0 %4305, %v1153_v56  }
 0xdc8   :  { %v4339_v55 = vpop.eup %4338 }
 0xdc9   :  { %v973_v56 = vadd.f32 1.0, %v4339_v55 }
 0xdcb   :  { %4340 = vrcp.f32 %v973_v56 }
 0xe3b   :  { %v4886_v57 = vpop.permute.xlu0 %1156  ;;  %v4890_v59 = vpop.permute.xlu1 %1166 }
 0xe3c   :  { %v1174_v58 = vmul.f32 %v4886_v57, %v4564_v30  ;;  %v1176_v0 = vmul.f32 %v4890_v59, %v4572_v39 }
 0xe3e   :  { %v1178_v1 = vsel %vm136_vm2, %v1174_v58, 0.0  ;;  %v1187_v32 = vsel %vm136_vm2, %v1176_v0, 0.0  ;;  %v4341_v58 = vpop.eup %4340 }
 0xe3f   :  { %v4892_v60 = vpop.permute.xlu0 %1161 }
 0xe40   :  { %v1175_v61 = vmul.f32 %v4892_v60, %v4562_v29 }
 0xe42   :  { %v1179_v9 = vsel %vm136_vm2, %v1175_v61, 0.0 }
 0xe43   :  { %v1180_v5 = vadd.f32 %v1179_v9, %v1178_v1  ;;  %v4900_v27 = vpop.permute.xlu0 %1171 }
 0xe44   :  { %v1177_v8 = vmul.f32 %v4900_v27, %v4570_v37 }
 0xe45   :  { %v1181_v4 = vrot.slane %v1180_v5, 4 }
 0xe46   :  { %v1188_v20 = vsel %vm136_vm2, %v1177_v8, 0.0 }
 0xe47   :  { %v1182_v33 = vadd.f32 %v1181_v4, %v1180_v5  ;;  %v1189_v26 = vadd.f32 %v1188_v20, %v1187_v32 }
 0xe49   :  { %v1190_v38 = vrot.slane %v1189_v26, 4  ;;  %v1183_v43 = vrot.slane %v1182_v33, 2 }
 0xe4b   :  { %v1191_v21 = vadd.f32 %v1190_v38, %v1189_v26  ;;  %v1184_v44 = vadd.f32 %v1183_v43, %v1182_v33 }
 0xe4d   :  { %v1192_v46 = vrot.slane %v1191_v21, 2  ;;  %v1185_v47 = vrot.slane %v1184_v44, 1 }
 0xe4f   :  { %v1193_v49 = vadd.f32 %v1192_v46, %v1191_v21  ;;  %v1186_v51 = vadd.f32 %v1185_v47, %v1184_v44  ;;  %v1296_v46 = vrot.slane %v4822_v6, 6 }
 0xe51   :  { %v1194_v50 = vrot.slane %v1193_v49, 1 }
 0xe53   :  { %v1195_v15 = vadd.f32 %v1194_v50, %v1193_v49 }
 0xe55   :  { %v1198_v53 = vsel %vm169_vm3, %v1195_v15, %v1186_v51 }
 0xe56   :  { %1199 = vrot.lane.b32.xlu0 %v1198_v53, %s4469_s13 }
 0xec8   :  { %v1200_v61 = vpop.permute.xlu0 %1199 }
 0xec9   :  { %v1202_v0 = vmul.f32 %v4341_v58, %v1200_v61 }
 0xecb   :  { %1204 = vrot.lane.b32.xlu0 %v1202_v0, %s4470_s20 }
 0xecf   :  { %1207 = vrot.lane.b32.xlu0 %v4826_v11, %s4472_s24 }
 0xf3d   :  { %v1205_v1 = vpop.permute.xlu0 %1204 }
 0xf41   :  { %v1208_v9 = vpop.permute.xlu0 %1207 }
 0xf42   :  { %v1210_v5 = vsel %vm136_vm2, %v1205_v1, %v1208_v9 }
 0xf43   :  { %3968 = vmatmul.mubr.msk.f32.vlgmr.msra.gmra.mrb[10].mxu1 %vm796_vm7, %v1210_v5 }
 0xf44   :  { %4217 = vmatpush3.bf16.msra.mxu1 %v4594_v63  ;;  %4008 = vmatprep.mubr.msk.f32.mxu1 %vm4465_vm1, %v4466_v19 }
 0xf45   :  { %4218 = vmatprep.subr.bf16.mxu1 %v5524_v16 }
 0xf48   :  { %4220 = vmatpush3.bf16.msra.mxu1 %v4608_v2 }
 0xf49   :  { %4221 = vmatprep.subr.bf16.mxu1 %v5524_v16 }
0x1016   :  { %v1280_v22 = vpop.f32.mrb[10].mxu1 }
0x1017   :  { %v1285_v8 = vrot.slane %v1280_v22, 6  ;;  %v3969_v4 = vpop.f32.mrb[11].mxu1 }
0x1019   :  { %v1287_v32 = vadd.f32 %v1285_v8, %v4816_v52 }
0x101b   :  { %4342 = vtanh.f32 %v1287_v32  ;;  %v3705_v33 = vmul.f32 -1.442695, %v1287_v32 }
0x101d   :  { %4344 = vpow2.f32 %v3705_v33 }
0x1025   :  { %v4343_v20 = vpop.eup %4342 }
0x1026   :  { %1300 = vrot.lane.b32.xlu1 %v4343_v20, %s4472_s24 }
0x1027   :  { %v4345_v26 = vpop.eup %4344 }
0x1028   :  { %v1291_v38 = vadd.f32 1.0, %v4345_v26 }
0x102a   :  { %4346 = vrcp.f32 %v1291_v38 }
0x1034   :  { %v4347_v43 = vpop.eup %4346 }
0x1035   :  { %v1298_v47 = vmul.f32 %v4347_v43, %v1296_v46 }
0x1098   :  { %v1301_v21 = vpop.permute.xlu1 %1300 }
0x1099   :  { %v1303_v44 = vmul.f32 %v4347_v43, %v1301_v21 }
0x109b   :  { %1305 = vrot.lane.b32.xlu0 %v1303_v44, %s4471_s21 }
0x110d   :  { %v1306_v49 = vpop.permute.xlu0 %1305 }
0x110e   :  { %v4924_v50 = vadd.f32 %v1306_v49, %v1298_v47 }
0x1110   :  { %4348 = vtanh.f32 %v4924_v50 }
0x111a   :  { %v4349_v51 = vpop.eup %4348 }
0x111b   :  { %1311 = vrot.lane.b32.xlu1 %v4349_v51, %s4472_s24 }
0x118d   :  { %v1312_v15 = vpop.permute.xlu1 %1311 }
0x118e   :  { %v4928_v53 = vmul.f32 %v4347_v43, %v1312_v15 }
0x1190   :  { %v1316_v54 = vrot.slane %v4928_v53, 2 }
0x1192   :  { %1317 = vrot.lane.b32.xlu0 %v1316_v54, %s4471_s21 }
0x1204   :  { %v1318_v55 = vpop.permute.xlu0 %1317 }
0x1205   :  { %3979 = vmatmul.mubr.msk.f32.vlgmr.msra.gmra.mrb[8].mxu0 %vm136_vm2, %v1318_v55 }
0x1206   :  { %4205 = vmatpush3.bf16.msra.mxu0 %v4759_v7  ;;  %3997 = vmatprep.mubr.msk.f32.mxu0 %vm4465_vm1, %v4466_v19 }
0x1207   :  { %4206 = vmatprep.subr.bf16.mxu0 %v5524_v16 }
0x120a   :  { %4208 = vmatpush3.bf16.msra.mxu0 %v4772_v14 }
0x120b   :  { %4209 = vmatprep.subr.bf16.mxu0 %v5524_v16 }
0x120e   :  { %4211 = vmatpush3.bf16.msra.mxu0 %v4784_v23 }
0x120f   :  { %4212 = vmatprep.subr.bf16.mxu0 %v5524_v16 }
0x1212   :  { %4214 = vmatpush3.bf16.msra.mxu0 %v4796_v42 }
0x1213   :  { %4233 = vmatprep.subr.bf16.mxu0 %v5524_v16 }
0x12d8   :  { %v1387_v6 = vpop.f32.mrb[8].mxu0 }
0x12d9   :  { %v4946_v56 = vadd.f32 %v4635_v17, %v1387_v6  ;;  %v3980_v58 = vpop.f32.mrb[9].mxu0 }
0x12db   :  { %v1404_v61 = vrot.slane %v4946_v56, %v4638_v18 }
0x12dd   :  { %v1405_v0 = vcombine.high %v1404_v61, %v1404_v61  ;;  %v1412_v1 = vrot.slane %v1404_v61, %v4638_v18 }
0x12df   :  { %v1419_v9 = vrot.slane %v1405_v0, %v4638_v18  ;;  %v1423_v5 = vrot.slane %v1412_v1, %v4646_v24 }
0x12e1   :  { %v1431_v22 = vadd.f32 %v1423_v5, %v4652_v28  ;;  %v1430_v8 = vadd.f32 %v1423_v5, %v4654_v31  ;;  %v1427_v4 = vrot.slane %v1419_v9, %v4646_v24 }
0x12e3   :  { %v1435_v32 = vmax.f32 %v1431_v22, 0.0  ;;  %v1434_v17 = vmax.f32 %v1430_v8, 0.0  ;;  %v1432_v20 = vadd.f32 %v1427_v4, %v4660_v35  ;;  %v1433_v33 = vadd.f32 %v1427_v4, %v4658_v34 }
0x12e5   :  { %v1439_v26 = vmul.f32 %v4668_v41, %v1435_v32  ;;  %v1438_v38 = vmul.f32 %v4668_v41, %v1434_v17  ;;  %v1436_v43 = vmax.f32 %v1432_v20, 0.0  ;;  %v1437_v47 = vmax.f32 %v1433_v33, 0.0 }
0x12e7   :  { %v1445_v21 = vsel %vm358_vm4, %v1439_v26, 0.0  ;;  %v1442_v44 = vsel %vm358_vm4, %v1438_v38, 0.0  ;;  %v1440_v46 = vmul.f32 %v4668_v41, %v1436_v43  ;;  %v1441_v51 = vmul.f32 %v4668_v41, %v1437_v47 }
0x12e8   :  { %1446 = vadd.xlane.f32.xlu0 %v1445_v21  ;;  %1443 = vadd.xlane.f32.xlu1 %v1442_v44 }
0x12e9   :  { %v1448_v49 = vsel %vm358_vm4, %v1440_v46, 0.0  ;;  %v1451_v15 = vsel %vm358_vm4, %v1441_v51, 0.0 }
0x12ec   :  { %1449 = vadd.xlane.f32.xlu0 %v1448_v49 }
0x12f0   :  { %1452 = vadd.xlane.f32.xlu0 %v1451_v15 }
0x1375   :  { %v1447_v55 = vpop.xlane.xlu0 %1446  ;;  %v1444_v6 = vpop.xlane.xlu1 %1443 }
0x1376   :  { %v1455_v58 = vadd.f32 %v1447_v55, %v4687_v3  ;;  %v1454_v61 = vadd.f32 %v1444_v6, %v4683_v62 }
0x1378   :  { %1463 = vperm.xlu1 %4304, %v1454_v61   ;;  %1466 = vperm.xlu0 %4305, %v1455_v58  }
0x1379   :  { %v1450_v0 = vpop.xlane.xlu0 %1449 }
0x137a   :  { %v1456_v1 = vadd.f32 %v1450_v0, %v4683_v62 }
0x137c   :  { %1469 = vperm.xlu1 %4304, %v1456_v1  }
0x137d   :  { %v1453_v9 = vpop.xlane.xlu0 %1452 }
0x137e   :  { %v1457_v5 = vadd.f32 %v1453_v9, %v4687_v3 }
0x1380   :  { %1472 = vperm.xlu1 %4304, %v1457_v5  }
0x13f7   :  { %v1464_v41 = vpop.permute.xlu1 %1463  ;;  %v1467_v22 = vpop.permute.xlu0 %1466 }
0x13f8   :  { %v1477_v4 = vrot.slane %v1464_v41, %v4695_v12  ;;  %v1481_v32 = vrot.slane %v1467_v22, %v4692_v10 }
0x13fa   :  { %v1482_v26 = vsel %vm644_vm5, %v1481_v32, %v1477_v4 }
0x13fb   :  { %v1470_v8 = vpop.permute.xlu1 %1469 }
0x13fc   :  { %v1486_v20 = vrot.slane %v1470_v8, %v4695_v12 }
0x13ff   :  { %v1473_v17 = vpop.permute.xlu1 %1472 }
0x1400   :  { %v1490_v33 = vrot.slane %v1473_v17, %v4692_v10 }
0x1402   :  { %v1491_v38 = vsel %vm644_vm5, %v1490_v33, %v1486_v20 }
0x1403   :  { %v1492_v43 = vsel %vm169_vm3, %v1491_v38, %v1482_v26 }
0x1404   :  { %v1494_v21 = vsel %vm657_vm6, %v1492_v43, -inf }
0x1405   :  { %1495 = vmax.xlane.f32.xlu1 %v1494_v21 }
0x1492   :  { %v1496_v44 = vpop.xlane.xlu1 %1495 }
0x1493   :  { %v1501_v46 = vrot.slane %v1496_v44, %v4646_v24  ;;  %v1505_v47 = vrot.slane %v1496_v44, %v4706_v36 }
0x1495   :  { %v1508_v49 = vsub.f32 %v1454_v61, %v1501_v46  ;;  %v1509_v51 = vsub.f32 %v1455_v58, %v1501_v46  ;;  %v1510_v55 = vsub.f32 %v1456_v1, %v1505_v47  ;;  %v1511_v0 = vsub.f32 %v1457_v5, %v1505_v47 }
0x1497   :  { %v1512_v15 = vmul.f32 1.442695, %v1508_v49  ;;  %v1514_v6 = vmul.f32 1.442695, %v1509_v51  ;;  %v1516_v9 = vmul.f32 1.442695, %v1510_v55 }
0x1498   :  { %v1518_v41 = vmul.f32 1.442695, %v1511_v0 }
0x1499   :  { %4350 = vpow2.f32 %v1512_v15 }
0x149a   :  { %4352 = vpow2.f32 %v1514_v6 }
0x149b   :  { %4354 = vpow2.f32 %v1516_v9 }
0x149c   :  { %4356 = vpow2.f32 %v1518_v41 }
0x14a3   :  { %v4351_v22 = vpop.eup %4350 }
0x14a4   :  { %1525 = vperm.xlu0 %4305, %v4351_v22   ;;  %v4353_v8 = vpop.eup %4352 }
0x14a5   :  { %v4355_v4 = vpop.eup %4354 }
0x14a6   :  { %v4357_v32 = vpop.eup %4356 }
0x14a8   :  { %1528 = vperm.xlu0 %4305, %v4353_v8  }
0x14ac   :  { %1531 = vperm.xlu0 %4305, %v4355_v4  }
0x14b0   :  { %1534 = vperm.xlu0 %4305, %v4357_v32  }
0x1523   :  { %v1526_v61 = vpop.permute.xlu0 %1525 }
0x1524   :  { %v1539_v5 = vrot.slane %v1526_v61, %v4695_v12 }
0x1527   :  { %v1529_v58 = vpop.permute.xlu0 %1528 }
0x1528   :  { %v1543_v1 = vrot.slane %v1529_v58, %v4692_v10 }
0x152a   :  { %v1544_v38 = vsel %vm644_vm5, %v1543_v1, %v1539_v5 }
0x152b   :  { %v1532_v17 = vpop.permute.xlu0 %1531 }
0x152c   :  { %v1548_v33 = vrot.slane %v1532_v17, %v4695_v12 }
0x152f   :  { %v1535_v20 = vpop.permute.xlu0 %1534 }
0x1530   :  { %v1552_v26 = vrot.slane %v1535_v20, %v4692_v10 }
0x1532   :  { %v1553_v43 = vsel %vm644_vm5, %v1552_v26, %v1548_v33 }
0x1533   :  { %v1554_v21 = vsel %vm169_vm3, %v1553_v43, %v1544_v38 }
0x1534   :  { %v1556_v44 = vsel %vm657_vm6, %v1554_v21, 0.0 }
0x1535   :  { %1557 = vadd.xlane.f32.xlu0 %v1556_v44 }
0x15c2   :  { %v1558_v46 = vpop.xlane.xlu0 %1557 }
0x15c3   :  { %4358 = vrcp.f32 %v1558_v46 }
0x15cd   :  { %v4359_v47 = vpop.eup %4358 }
0x15ce   :  { %v1564_v49 = vrot.slane %v4359_v47, %v4646_v24  ;;  %v1568_v55 = vrot.slane %v4359_v47, %v4706_v36 }
0x15d0   :  { %v1572_v51 = vmul.f32 %v4353_v8, %v1564_v49  ;;  %v1571_v15 = vmul.f32 %v4351_v22, %v1564_v49  ;;  %v1573_v6 = vmul.f32 %v4355_v4, %v1568_v55  ;;  %v1574_v0 = vmul.f32 %v4357_v32, %v1568_v55 }
0x15d2   :  { %1582 = vperm.xlu0 %4305, %v1572_v51   ;;  %1577 = vperm.xlu1 %4304, %v1571_v15  }
0x15d6   :  { %1587 = vperm.xlu1 %4304, %v1573_v6  }
0x15da   :  { %1592 = vperm.xlu1 %4304, %v1574_v0  }
0x1651   :  { %v4990_v9 = vpop.permute.xlu0 %1582  ;;  %v4992_v41 = vpop.permute.xlu1 %1577 }
0x1652   :  { %v1596_v61 = vmul.f32 %v4990_v9, %v4562_v29  ;;  %v1595_v58 = vmul.f32 %v4992_v41, %v4564_v30 }
0x1654   :  { %v1600_v22 = vsel %vm136_vm2, %v1596_v61, 0.0  ;;  %v1599_v8 = vsel %vm136_vm2, %v1595_v58, 0.0  ;;  %v3707_v58 = vmul.f32 -1.442695, %v4946_v56 }
0x1655   :  { %v1601_v17 = vadd.f32 %v1600_v22, %v1599_v8  ;;  %v5000_v1 = vpop.permute.xlu1 %1587 }
0x1656   :  { %v1597_v32 = vmul.f32 %v5000_v1, %v4572_v39  ;;  %4360 = vpow2.f32 %v3707_v58 }
0x1657   :  { %v1602_v4 = vrot.slane %v1601_v17, 4 }
0x1658   :  { %v1608_v26 = vsel %vm136_vm2, %v1597_v32, 0.0 }
0x1659   :  { %v1603_v20 = vadd.f32 %v1602_v4, %v1601_v17  ;;  %v5004_v5 = vpop.permute.xlu1 %1592 }
0x165a   :  { %v1598_v33 = vmul.f32 %v5004_v5, %v4570_v37 }
0x165b   :  { %v1604_v21 = vrot.slane %v1603_v20, 2 }
0x165c   :  { %v1609_v38 = vsel %vm136_vm2, %v1598_v33, 0.0 }
0x165d   :  { %v1610_v43 = vadd.f32 %v1609_v38, %v1608_v26  ;;  %v1605_v47 = vadd.f32 %v1604_v21, %v1603_v20 }
0x165f   :  { %v1611_v44 = vrot.slane %v1610_v43, 4  ;;  %v1606_v51 = vrot.slane %v1605_v47, 1 }
0x1660   :  { %v4361_v22 = vpop.eup %4360 }
0x1661   :  { %v1612_v46 = vadd.f32 %v1611_v44, %v1610_v43  ;;  %v1607_v6 = vadd.f32 %v1606_v51, %v1605_v47  ;;  %v1394_v8 = vadd.f32 1.0, %v4361_v22 }
0x1663   :  { %v1613_v49 = vrot.slane %v1612_v46, 2  ;;  %4362 = vrcp.f32 %v1394_v8 }
0x1665   :  { %v1614_v15 = vadd.f32 %v1613_v49, %v1612_v46 }
0x1667   :  { %v1615_v55 = vrot.slane %v1614_v15, 1 }
0x1669   :  { %v1616_v0 = vadd.f32 %v1615_v55, %v1614_v15  ;;  %v1717_v55 = vrot.slane %v4924_v50, 6 }
0x166b   :  { %v1619_v61 = vsel %vm169_vm3, %v1616_v0, %v1607_v6 }
0x166c   :  { %1620 = vrot.lane.b32.xlu1 %v1619_v61, %s4469_s13 }
0x166d   :  { %v4363_v17 = vpop.eup %4362 }
0x16de   :  { %v1621_v4 = vpop.permute.xlu1 %1620 }
0x16df   :  { %v1623_v32 = vmul.f32 %v4363_v17, %v1621_v4  ;;  %v3417_v17 = vsel %vm3416_vm8, %v4826_v11, %v4928_v53  ;;  %v5060_v53 = vld [vmem:[%s5520_s3 + $0x3] ss:$0 sm:$0xff] }
0x16e1   :  { %1625 = vrot.lane.b32.xlu1 %v1623_v32, %s4470_s20 }
0x16e5   :  { %1628 = vrot.lane.b32.xlu1 %v1316_v54, %s4472_s24 }
0x1753   :  { %v1626_v20 = vpop.permute.xlu1 %1625 }
0x1757   :  { %v1629_v33 = vpop.permute.xlu1 %1628 }
0x1758   :  { %v1631_v26 = vsel %vm136_vm2, %v1626_v20, %v1629_v33 }
0x1759   :  { %3998 = vmatmul.mubr.msk.f32.vlgmr.msra.gmra.mrb[10].mxu0 %vm796_vm7, %v1631_v26 }
0x175a   :  { %4235 = vmatpush3.bf16.msra.mxu0 %v4594_v63  ;;  %4038 = vmatprep.mubr.msk.f32.mxu0 %vm4465_vm1, %v4466_v19 }
0x175b   :  { %4236 = vmatprep.subr.bf16.mxu0 %v5524_v16 }
0x175e   :  { %4238 = vmatpush3.bf16.msra.mxu0 %v4608_v2 }
0x175f   :  { %4239 = vmatprep.subr.bf16.mxu0 %v5524_v16 }
0x182c   :  { %v1701_v56 = vpop.f32.mrb[10].mxu0 }
0x182d   :  { %v1706_v38 = vrot.slane %v1701_v56, 4  ;;  %v3999_v54 = vpop.f32.mrb[11].mxu0 }
0x182f   :  { %v1708_v43 = vadd.f32 %v1706_v38, %v4816_v52 }
0x1831   :  { %4364 = vtanh.f32 %v1708_v43  ;;  %v3709_v44 = vmul.f32 -1.442695, %v1708_v43 }
0x1833   :  { %4366 = vpow2.f32 %v3709_v44 }
0x183b   :  { %v4365_v21 = vpop.eup %4364 }
0x183c   :  { %1721 = vrot.lane.b32.xlu0 %v4365_v21, %s4472_s24 }
0x183d   :  { %v4367_v46 = vpop.eup %4366 }
0x183e   :  { %v1712_v47 = vadd.f32 1.0, %v4367_v46 }
0x1840   :  { %4368 = vrcp.f32 %v1712_v47 }
0x184a   :  { %v4369_v49 = vpop.eup %4368 }
0x184b   :  { %v1719_v6 = vmul.f32 %v4369_v49, %v1717_v55  ;;  %v5078_v55 = vld [vmem:[%s5520_s3 + $0x6] ss:$0 sm:$0xff] }
0x18ae   :  { %v1722_v51 = vpop.permute.xlu0 %1721 }
0x18af   :  { %v1724_v15 = vmul.f32 %v4369_v49, %v1722_v51 }
0x18b1   :  { %1726 = vrot.lane.b32.xlu1 %v1724_v15, %s4471_s21 }
0x1923   :  { %v1727_v0 = vpop.permute.xlu1 %1726 }
0x1924   :  { %v5029_v61 = vadd.f32 %v1727_v0, %v1719_v6 }
0x1926   :  { %4370 = vtanh.f32 %v5029_v61 }
0x1930   :  { %v4371_v58 = vpop.eup %4370 }
0x1931   :  { %1732 = vrot.lane.b32.xlu0 %v4371_v58, %s4472_s24 }
0x19a3   :  { %v1733_v22 = vpop.permute.xlu0 %1732 }
0x19a4   :  { %v5033_v8 = vmul.f32 %v4369_v49, %v1733_v22 }
0x19a6   :  { %v1737_v50 = vrot.slane %v5033_v8, 4  ;;  %v5041_v4 = vsel %vm3418_vm9, %v3417_v17, %v5033_v8 }
0x19a8   :  { %1738 = vrot.lane.b32.xlu1 %v1737_v50, %s4471_s21 }
0x1a1a   :  { %v1739_v32 = vpop.permute.xlu1 %1738 }
0x1a1b   :  { %4009 = vmatmul.mubr.msk.f32.vlgmr.msra.gmra.mrb[12].mxu1 %vm136_vm2, %v1739_v32 }
0x1a1c   :  { %4223 = vmatpush3.bf16.msra.mxu1 %v4759_v7  ;;  %4027 = vmatprep.mubr.msk.f32.mxu1 %vm4465_vm1, %v4466_v19 }
0x1a1d   :  { %4224 = vmatprep.subr.bf16.mxu1 %v5524_v16 }
0x1a20   :  { %4226 = vmatpush3.bf16.msra.mxu1 %v4772_v14 }
0x1a21   :  { %4227 = vmatprep.subr.bf16.mxu1 %v5524_v16 }
0x1a24   :  { %4229 = vmatpush3.bf16.msra.mxu1 %v4784_v23 }
0x1a25   :  { %4230 = vmatprep.subr.bf16.mxu1 %v5524_v16 }
0x1a28   :  { %4232 = vmatpush3.bf16.msra.mxu1 %v4796_v42 }
0x1a29   :  { %4251 = vmatprep.subr.bf16.mxu1 %v5524_v16 }
0x1aee   :  { %v1808_v11 = vpop.f32.mrb[12].mxu1 }
0x1aef   :  { %v5063_v20 = vadd.f32 %v5060_v53, %v1808_v11  ;;  %v4010_v33 = vpop.f32.mrb[13].mxu1 }
0x1af1   :  { %v1825_v26 = vrot.slane %v5063_v20, %v4638_v18 }
0x1af3   :  { %v1826_v56 = vcombine.high %v1825_v26, %v1825_v26  ;;  %v1833_v38 = vrot.slane %v1825_v26, %v4638_v18 }
0x1af5   :  { %v1840_v54 = vrot.slane %v1826_v56, %v4638_v18  ;;  %v1844_v43 = vrot.slane %v1833_v38, %v4646_v24 }
0x1af7   :  { %v1852_v21 = vadd.f32 %v1844_v43, %v4652_v28  ;;  %v1851_v44 = vadd.f32 %v1844_v43, %v4654_v31  ;;  %v1848_v46 = vrot.slane %v1840_v54, %v4646_v24 }
0x1af9   :  { %v1856_v47 = vmax.f32 %v1852_v21, 0.0  ;;  %v1855_v49 = vmax.f32 %v1851_v44, 0.0  ;;  %v1853_v51 = vadd.f32 %v1848_v46, %v4660_v35  ;;  %v1854_v15 = vadd.f32 %v1848_v46, %v4658_v34 }
0x1afb   :  { %v1860_v6 = vmul.f32 %v5078_v55, %v1856_v47  ;;  %v1859_v0 = vmul.f32 %v5078_v55, %v1855_v49  ;;  %v1857_v58 = vmax.f32 %v1853_v51, 0.0  ;;  %v1858_v11 = vmax.f32 %v1854_v15, 0.0 }
0x1afd   :  { %v1866_v22 = vsel %vm358_vm4, %v1860_v6, 0.0  ;;  %v1863_v17 = vsel %vm358_vm4, %v1859_v0, 0.0  ;;  %v1861_v32 = vmul.f32 %v5078_v55, %v1857_v58  ;;  %v1862_v26 = vmul.f32 %v5078_v55, %v1858_v11 }
0x1afe   :  { %1867 = vadd.xlane.f32.xlu1 %v1866_v22  ;;  %1864 = vadd.xlane.f32.xlu0 %v1863_v17 }
0x1aff   :  { %v1869_v33 = vsel %vm358_vm4, %v1861_v32, 0.0  ;;  %v1872_v56 = vsel %vm358_vm4, %v1862_v26, 0.0 }
0x1b02   :  { %1870 = vadd.xlane.f32.xlu0 %v1869_v33 }
0x1b06   :  { %1873 = vadd.xlane.f32.xlu0 %v1872_v56 }
0x1b8b   :  { %v1868_v38 = vpop.xlane.xlu1 %1867  ;;  %v1865_v54 = vpop.xlane.xlu0 %1864 }
0x1b8c   :  { %v1876_v43 = vadd.f32 %v1868_v38, %v4687_v3  ;;  %v1875_v21 = vadd.f32 %v1865_v54, %v4683_v62 }
0x1b8e   :  { %1887 = vperm.xlu1 %4304, %v1876_v43   ;;  %1884 = vperm.xlu0 %4305, %v1875_v21  }
0x1b8f   :  { %v1871_v44 = vpop.xlane.xlu0 %1870 }
0x1b90   :  { %v1877_v46 = vadd.f32 %v1871_v44, %v4683_v62 }
0x1b92   :  { %1890 = vperm.xlu1 %4304, %v1877_v46  }
0x1b93   :  { %v1874_v47 = vpop.xlane.xlu0 %1873 }
0x1b94   :  { %v1878_v49 = vadd.f32 %v1874_v47, %v4687_v3 }
0x1b96   :  { %1893 = vperm.xlu1 %4304, %v1878_v49  }
0x1c0d   :  { %v1888_v51 = vpop.permute.xlu1 %1887  ;;  %v1885_v15 = vpop.permute.xlu0 %1884 }
0x1c0e   :  { %v1902_v0 = vrot.slane %v1888_v51, %v4692_v10  ;;  %v1898_v58 = vrot.slane %v1885_v15, %v4695_v12 }
0x1c10   :  { %v1903_v11 = vsel %vm644_vm5, %v1902_v0, %v1898_v58 }
0x1c11   :  { %v1891_v6 = vpop.permute.xlu1 %1890 }
0x1c12   :  { %v1907_v17 = vrot.slane %v1891_v6, %v4695_v12 }
0x1c15   :  { %v1894_v22 = vpop.permute.xlu1 %1893 }
0x1c16   :  { %v1911_v32 = vrot.slane %v1894_v22, %v4692_v10 }
0x1c18   :  { %v1912_v33 = vsel %vm644_vm5, %v1911_v32, %v1907_v17 }
0x1c19   :  { %v1913_v26 = vsel %vm169_vm3, %v1912_v33, %v1903_v11 }
0x1c1a   :  { %v1915_v56 = vsel %vm657_vm6, %v1913_v26, -inf }
0x1c1b   :  { %1916 = vmax.xlane.f32.xlu0 %v1915_v56 }
0x1ca8   :  { %v1917_v38 = vpop.xlane.xlu0 %1916 }
0x1ca9   :  { %v1922_v54 = vrot.slane %v1917_v38, %v4646_v24  ;;  %v1926_v44 = vrot.slane %v1917_v38, %v4706_v36 }
0x1cab   :  { %v1929_v47 = vsub.f32 %v1875_v21, %v1922_v54  ;;  %v1930_v51 = vsub.f32 %v1876_v43, %v1922_v54  ;;  %v1931_v6 = vsub.f32 %v1877_v46, %v1926_v44  ;;  %v1932_v16 = vsub.f32 %v1878_v49, %v1926_v44 }
0x1cad   :  { %v1933_v15 = vmul.f32 1.442695, %v1929_v47  ;;  %v1935_v22 = vmul.f32 1.442695, %v1930_v51  ;;  %v1937_v0 = vmul.f32 1.442695, %v1931_v6 }
0x1cae   :  { %v1939_v58 = vmul.f32 1.442695, %v1932_v16 }
0x1caf   :  { %4372 = vpow2.f32 %v1933_v15 }
0x1cb0   :  { %4374 = vpow2.f32 %v1935_v22 }
0x1cb1   :  { %4376 = vpow2.f32 %v1937_v0 }
0x1cb2   :  { %4378 = vpow2.f32 %v1939_v58 }
0x1cb9   :  { %v4373_v17 = vpop.eup %4372 }
0x1cba   :  { %1946 = vperm.xlu1 %4304, %v4373_v17   ;;  %v4375_v32 = vpop.eup %4374 }
0x1cbb   :  { %v4377_v11 = vpop.eup %4376 }
0x1cbc   :  { %v4379_v33 = vpop.eup %4378 }
0x1cbe   :  { %1949 = vperm.xlu1 %4304, %v4375_v32  }
0x1cc2   :  { %1952 = vperm.xlu1 %4304, %v4377_v11  }
0x1cc6   :  { %1955 = vperm.xlu1 %4304, %v4379_v33  }
0x1d39   :  { %v1947_v21 = vpop.permute.xlu1 %1946 }
0x1d3a   :  { %v1960_v49 = vrot.slane %v1947_v21, %v4695_v12 }
0x1d3d   :  { %v1950_v43 = vpop.permute.xlu1 %1949 }
0x1d3e   :  { %v1964_v46 = vrot.slane %v1950_v43, %v4692_v10 }
0x1d40   :  { %v1965_v54 = vsel %vm644_vm5, %v1964_v46, %v1960_v49  ;;  %v3557_v46 = vrot.slane %v4900_v27, %v4692_v10  ;;  %v3537_v49 = vrot.slane %v4734_v45, %v4692_v10  ;;  %v3533_v27 = vrot.slane %v4730_v40, %v4695_v12 }
0x1d41   :  { %v1953_v26 = vpop.permute.xlu1 %1952  ;;  %v3565_v45 = vrot.slane %v4992_v41, %v4695_v12 }
0x1d42   :  { %v1969_v38 = vrot.slane %v1953_v26, %v4695_v12 }
0x1d45   :  { %v1956_v56 = vpop.permute.xlu1 %1955 }
0x1d46   :  { %v1973_v16 = vrot.slane %v1956_v56, %v4692_v10  ;;  %v3528_v56 = vrot.slane %v4720_v25, %v4692_v10  ;;  %v3569_v25 = vrot.slane %v4990_v9, %v4692_v10 }
0x1d48   :  { %v1974_v44 = vsel %vm644_vm5, %v1973_v16, %v1969_v38  ;;  %v3538_v16 = vsel %vm644_vm5, %v3537_v49, %v3533_v27 }
0x1d49   :  { %v1975_v47 = vsel %vm169_vm3, %v1974_v44, %v1965_v54 }
0x1d4a   :  { %v1977_v51 = vsel %vm657_vm6, %v1975_v47, 0.0 }
0x1d4b   :  { %1978 = vadd.xlane.f32.xlu1 %v1977_v51  ;;  %v3570_v51 = vsel %vm644_vm5, %v3569_v25, %v3565_v45 }
0x1dd8   :  { %v1979_v15 = vpop.xlane.xlu1 %1978 }
0x1dd9   :  { %4380 = vrcp.f32 %v1979_v15 }
0x1de3   :  { %v4381_v6 = vpop.eup %4380 }
0x1de4   :  { %v1989_v22 = vrot.slane %v4381_v6, %v4706_v36  ;;  %v1985_v0 = vrot.slane %v4381_v6, %v4646_v24 }
0x1de6   :  { %v1994_v58 = vmul.f32 %v4377_v11, %v1989_v22  ;;  %v1992_v21 = vmul.f32 %v4373_v17, %v1985_v0  ;;  %v1993_v43 = vmul.f32 %v4375_v32, %v1985_v0  ;;  %v1995_v26 = vmul.f32 %v4379_v33, %v1989_v22 }
0x1de7   :  { %v3524_v11 = vrot.slane %v4722_v13, %v4695_v12  ;;  %v3553_v17 = vrot.slane %v4890_v59, %v4695_v12  ;;  %v3548_v32 = vrot.slane %v4892_v60, %v4692_v10  ;;  %v3578_v33 = vrot.slane %v5004_v5, %v4692_v10 }
0x1de8   :  { %2008 = vperm.xlu1 %4304, %v1994_v58   ;;  %1998 = vperm.xlu0 %4305, %v1992_v21   ;;  %v3544_v13 = vrot.slane %v4886_v57, %v4695_v12  ;;  %v3574_v60 = vrot.slane %v5000_v1, %v4695_v12 }
0x1de9   :  { %v3558_v59 = vsel %vm644_vm5, %v3557_v46, %v3553_v17  ;;  %v3529_v57 = vsel %vm644_vm5, %v3528_v56, %v3524_v11 }
0x1dea   :  { %v3549_v44 = vsel %vm644_vm5, %v3548_v32, %v3544_v13  ;;  %v3579_v9 = vsel %vm644_vm5, %v3578_v33, %v3574_v60  ;;  %v3539_v0 = vsel %vm169_vm3, %v3538_v16, %v3529_v57 }
0x1deb   :  { %v3560_v47 = vsel %vm3559_vm10, %v3558_v59, %v3549_v44  ;;  %v3581_v58 = vsel %vm3580_vm11, %v3579_v9, %v3570_v51 }
0x1dec   :  { %2003 = vperm.xlu0 %4305, %v1993_v43   ;;  %v3664_v17 = vsel %vm3416_vm8, %v3539_v0, %v3560_v47 }
0x1ded   :  { %v3665_v59 = vsel %vm3418_vm9, %v3664_v17, %v3581_v58 }
0x1df0   :  { %2013 = vperm.xlu0 %4305, %v1995_v26  }
0x1e67   :  { %v1999_v38 = vpop.permute.xlu0 %1998  ;;  %v2009_v40 = vpop.permute.xlu1 %2008 }
0x1e68   :  { %v2016_v5 = vmul.f32 %v1999_v38, %v4564_v30  ;;  %v2018_v1 = vmul.f32 %v2009_v40, %v4572_v39  ;;  %v3595_v26 = vrot.slane %v2009_v40, %v4695_v12  ;;  %v3586_v46 = vrot.slane %v1999_v38, %v4695_v12 }
0x1e6a   :  { %v2020_v15 = vsel %vm136_vm2, %v2016_v5, 0.0  ;;  %v2029_v32 = vsel %vm136_vm2, %v2018_v1, 0.0 }
0x1e6b   :  { %v2004_v54 = vpop.permute.xlu0 %2003 }
0x1e6c   :  { %v2017_v41 = vmul.f32 %v2004_v54, %v4562_v29  ;;  %v3590_v22 = vrot.slane %v2004_v54, %v4692_v10 }
0x1e6e   :  { %v2021_v6 = vsel %vm136_vm2, %v2017_v41, 0.0  ;;  %v3591_v33 = vsel %vm644_vm5, %v3590_v22, %v3586_v46 }
0x1e6f   :  { %v2022_v21 = vadd.f32 %v2021_v6, %v2020_v15  ;;  %v2014_v43 = vpop.permute.xlu0 %2013  ;;  %v3711_v15 = vmul.f32 -1.442695, %v5063_v20  ;;  %v5526_v20 = vmov 0.0|0.0  }
0x1e70   :  { %v2019_v56 = vmul.f32 %v2014_v43, %v4570_v37  ;;  %v3599_v49 = vrot.slane %v2014_v43, %v4692_v10 }
0x1e71   :  { %v2023_v11 = vrot.slane %v2022_v21, 4  ;;  %4382 = vpow2.f32 %v3711_v15 }
0x1e72   :  { %v2030_v27 = vsel %vm136_vm2, %v2019_v56, 0.0  ;;  %v3600_v25 = vsel %vm644_vm5, %v3599_v49, %v3595_v26 }
0x1e73   :  { %v2024_v45 = vadd.f32 %v2023_v11, %v2022_v21  ;;  %v2031_v13 = vadd.f32 %v2030_v27, %v2029_v32  ;;  %v3602_v38 = vsel %vm3601_vm12, %v3600_v25, %v3591_v33 }
0x1e74   :  { %v3666_v60 = vsel %vm3420_vm13, %v3665_v59, %v3602_v38 }
0x1e75   :  { %v2025_v5 = vrot.slane %v2024_v45, 2  ;;  %v2032_v16 = vrot.slane %v2031_v13, 4  ;;  %3669 = vst.msk [vmem:[%s5522_s5] sm:$0xff] %vm358_vm4, %v3666_v60 }
0x1e77   :  { %v2033_v40 = vadd.f32 %v2032_v16, %v2031_v13  ;;  %v2026_v54 = vadd.f32 %v2025_v5, %v2024_v45  ;;  %v2138_v13 = vrot.slane %v5029_v61, 6 }
0x1e79   :  { %v2034_v44 = vrot.slane %v2033_v40, 2  ;;  %v2027_v9 = vrot.slane %v2026_v54, 1 }
0x1e7b   :  { %v2035_v41 = vadd.f32 %v2034_v44, %v2033_v40  ;;  %v2028_v47 = vadd.f32 %v2027_v9, %v2026_v54  ;;  %v4383_v6 = vpop.eup %4382 }
0x1e7c   :  { %v1815_v22 = vadd.f32 1.0, %v4383_v6 }
0x1e7d   :  { %v2036_v57 = vrot.slane %v2035_v41, 1 }
0x1e7e   :  { %4384 = vrcp.f32 %v1815_v22 }
0x1e7f   :  { %v2037_v51 = vadd.f32 %v2036_v57, %v2035_v41 }
0x1e81   :  { %v2040_v1 = vsel %vm169_vm3, %v2037_v51, %v2028_v47 }
0x1e82   :  { %2041 = vrot.lane.b32.xlu0 %v2040_v1, %s4469_s13 }
0x1e88   :  { %v4385_v0 = vpop.eup %4384 }
0x1ef4   :  { %v2042_v58 = vpop.permute.xlu0 %2041 }
0x1ef5   :  { %v2044_v21 = vmul.f32 %v4385_v0, %v2042_v58 }
0x1ef7   :  { %2046 = vrot.lane.b32.xlu0 %v2044_v21, %s4470_s20 }
0x1efb   :  { %2049 = vrot.lane.b32.xlu0 %v1737_v50, %s4472_s24 }
0x1f69   :  { %v2047_v43 = vpop.permute.xlu0 %2046 }
0x1f6d   :  { %v2050_v26 = vpop.permute.xlu0 %2049 }
0x1f6e   :  { %v2052_v46 = vsel %vm136_vm2, %v2047_v43, %v2050_v26 }
0x1f6f   :  { %4028 = vmatmul.mubr.msk.f32.vlgmr.msra.gmra.mrb[14].mxu1 %vm796_vm7, %v2052_v46 }
0x1f70   :  { %4253 = vmatpush3.bf16.msra.mxu1 %v4594_v63  ;;  %4068 = vmatprep.mubr.msk.f32.mxu1 %vm4465_vm1, %v4466_v19 }
0x1f71   :  { %4254 = vmatprep.subr.bf16.mxu1 %v5526_v20 }
0x1f74   :  { %4256 = vmatpush3.bf16.msra.mxu1 %v4608_v2 }
0x1f75   :  { %4257 = vmatprep.subr.bf16.mxu1 %v5526_v20 }
0x2042   :  { %v2122_v56 = vpop.f32.mrb[14].mxu1 }
0x2043   :  { %v2127_v8 = vrot.slane %v2122_v56, 2  ;;  %v4029_v50 = vpop.f32.mrb[15].mxu1 }
0x2045   :  { %v2129_v49 = vadd.f32 %v2127_v8, %v4816_v52 }
0x2047   :  { %4386 = vtanh.f32 %v2129_v49  ;;  %v3713_v17 = vmul.f32 -1.442695, %v2129_v49 }
0x2049   :  { %4388 = vpow2.f32 %v3713_v17 }
0x2051   :  { %v4387_v11 = vpop.eup %4386 }
0x2052   :  { %2142 = vrot.lane.b32.xlu1 %v4387_v11, %s4472_s24 }
0x2053   :  { %v4389_v32 = vpop.eup %4388 }
0x2054   :  { %v2133_v33 = vadd.f32 1.0, %v4389_v32 }
0x2056   :  { %4390 = vrcp.f32 %v2133_v33 }
0x2060   :  { %v4391_v27 = vpop.eup %4390 }
0x2061   :  { %v2140_v38 = vmul.f32 %v4391_v27, %v2138_v13 }
0x20c4   :  { %v2143_v25 = vpop.permute.xlu1 %2142 }
0x20c5   :  { %v2145_v45 = vmul.f32 %v4391_v27, %v2143_v25 }
0x20c7   :  { %2147 = vrot.lane.b32.xlu0 %v2145_v45, %s4471_s21 }
0x2139   :  { %v2148_v59 = vpop.permute.xlu0 %2147 }
0x213a   :  { %v5186_v60 = vadd.f32 %v2148_v59, %v2140_v38 }
0x213c   :  { %4392 = vtanh.f32 %v5186_v60 }
0x2146   :  { %v4393_v52 = vpop.eup %4392 }
0x2147   :  { %2153 = vrot.lane.b32.xlu1 %v4393_v52, %s4472_s24 }
0x21b9   :  { %v2154_v5 = vpop.permute.xlu1 %2153 }
0x21ba   :  { %v5190_v16 = vmul.f32 %v4391_v27, %v2154_v5 }
0x21bc   :  { %v2158_v40 = vrot.slane %v5190_v16, 6  ;;  %v5196_v54 = vsel %vm3420_vm13, %v5041_v4, %v5190_v16 }
0x21be   :  { %2159 = vrot.lane.b32.xlu0 %v2158_v40, %s4471_s21 }
0x2230   :  { %v2160_v61 = vpop.permute.xlu0 %2159 }
0x2231   :  { %4039 = vmatmul.mubr.msk.f32.vlgmr.msra.gmra.mrb[12].mxu0 %vm136_vm2, %v2160_v61 }
0x2232   :  { %4241 = vmatpush3.bf16.msra.mxu0 %v4759_v7  ;;  %4057 = vmatprep.mubr.msk.f32.mxu0 %vm4465_vm1, %v4466_v19 }
0x2233   :  { %4242 = vmatprep.subr.bf16.mxu0 %v5526_v20 }
0x2236   :  { %4244 = vmatpush3.bf16.msra.mxu0 %v4772_v14 }
0x2237   :  { %4245 = vmatprep.subr.bf16.mxu0 %v5526_v20 }
0x223a   :  { %4247 = vmatpush3.bf16.msra.mxu0 %v4784_v23 }
0x223b   :  { %4248 = vmatprep.subr.bf16.mxu0 %v5526_v20 }
0x223e   :  { %4250 = vmatpush3.bf16.msra.mxu0 %v4796_v42 }
0x223f   :  { %4269 = vmatprep.subr.bf16.mxu0 %v5526_v20 }
0x2304   :  { %v2229_v4 = vpop.f32.mrb[12].mxu0 }
0x2305   :  { %v5213_v44 = vadd.f32 %v5060_v53, %v2229_v4  ;;  %v4040_v9 = vpop.f32.mrb[13].mxu0 }
0x2307   :  { %v2246_v41 = vrot.slane %v5213_v44, %v4638_v18 }
0x2309   :  { %v2247_v57 = vcombine.high %v2246_v41, %v2246_v41  ;;  %v2254_v47 = vrot.slane %v2246_v41, %v4638_v18 }
0x230b   :  { %v2261_v51 = vrot.slane %v2247_v57, %v4638_v18  ;;  %v2265_v1 = vrot.slane %v2254_v47, %v4646_v24 }
0x230d   :  { %v2273_v15 = vadd.f32 %v2265_v1, %v4652_v28  ;;  %v2272_v6 = vadd.f32 %v2265_v1, %v4654_v31  ;;  %v2269_v22 = vrot.slane %v2261_v51, %v4646_v24 }
0x230f   :  { %v2277_v0 = vmax.f32 %v2273_v15, 0.0  ;;  %v2276_v58 = vmax.f32 %v2272_v6, 0.0  ;;  %v2274_v21 = vadd.f32 %v2269_v22, %v4660_v35  ;;  %v2275_v43 = vadd.f32 %v2269_v22, %v4658_v34 }
0x2311   :  { %v2281_v26 = vmul.f32 %v5078_v55, %v2277_v0  ;;  %v2280_v46 = vmul.f32 %v5078_v55, %v2276_v58  ;;  %v2278_v56 = vmax.f32 %v2274_v21, 0.0  ;;  %v2279_v11 = vmax.f32 %v2275_v43, 0.0 }
0x2313   :  { %v2287_v8 = vsel %vm358_vm4, %v2281_v26, 0.0  ;;  %v2284_v50 = vsel %vm358_vm4, %v2280_v46, 0.0  ;;  %v2282_v49 = vmul.f32 %v5078_v55, %v2278_v56  ;;  %v2283_v32 = vmul.f32 %v5078_v55, %v2279_v11 }
0x2314   :  { %2288 = vadd.xlane.f32.xlu0 %v2287_v8  ;;  %2285 = vadd.xlane.f32.xlu1 %v2284_v50 }
0x2315   :  { %v2290_v17 = vsel %vm358_vm4, %v2282_v49, 0.0  ;;  %v2293_v33 = vsel %vm358_vm4, %v2283_v32, 0.0 }
0x2318   :  { %2291 = vadd.xlane.f32.xlu0 %v2290_v17 }
0x231c   :  { %2294 = vadd.xlane.f32.xlu0 %v2293_v33 }
0x23a1   :  { %v2289_v27 = vpop.xlane.xlu0 %2288  ;;  %v2286_v25 = vpop.xlane.xlu1 %2285 }
0x23a2   :  { %v2297_v45 = vadd.f32 %v2289_v27, %v4687_v3  ;;  %v2296_v13 = vadd.f32 %v2286_v25, %v4683_v62 }
0x23a4   :  { %2305 = vperm.xlu1 %4304, %v2296_v13   ;;  %2308 = vperm.xlu0 %4305, %v2297_v45  }
0x23a5   :  { %v2292_v38 = vpop.xlane.xlu0 %2291 }
0x23a6   :  { %v2298_v59 = vadd.f32 %v2292_v38, %v4683_v62 }
0x23a8   :  { %2311 = vperm.xlu1 %4304, %v2298_v59  }
0x23a9   :  { %v2295_v52 = vpop.xlane.xlu0 %2294 }
0x23aa   :  { %v2299_v5 = vadd.f32 %v2295_v52, %v4687_v3 }
0x23ac   :  { %2314 = vperm.xlu1 %4304, %v2299_v5  }
0x2423   :  { %v2306_v61 = vpop.permute.xlu1 %2305  ;;  %v2309_v4 = vpop.permute.xlu0 %2308 }
0x2424   :  { %v2319_v41 = vrot.slane %v2306_v61, %v4695_v12  ;;  %v2323_v57 = vrot.slane %v2309_v4, %v4692_v10 }
0x2426   :  { %v2324_v15 = vsel %vm644_vm5, %v2323_v57, %v2319_v41 }
0x2427   :  { %v2312_v9 = vpop.permute.xlu1 %2311 }
0x2428   :  { %v2328_v51 = vrot.slane %v2312_v9, %v4695_v12 }
0x242b   :  { %v2315_v47 = vpop.permute.xlu1 %2314 }
0x242c   :  { %v2332_v1 = vrot.slane %v2315_v47, %v4692_v10 }
0x242e   :  { %v2333_v6 = vsel %vm644_vm5, %v2332_v1, %v2328_v51 }
0x242f   :  { %v2334_v22 = vsel %vm169_vm3, %v2333_v6, %v2324_v15 }
0x2430   :  { %v2336_v0 = vsel %vm657_vm6, %v2334_v22, -inf }
0x2431   :  { %2337 = vmax.xlane.f32.xlu1 %v2336_v0 }
0x24be   :  { %v2338_v58 = vpop.xlane.xlu1 %2337 }
0x24bf   :  { %v2343_v21 = vrot.slane %v2338_v58, %v4646_v24  ;;  %v2347_v43 = vrot.slane %v2338_v58, %v4706_v36 }
0x24c1   :  { %v2350_v26 = vsub.f32 %v2296_v13, %v2343_v21  ;;  %v2351_v46 = vsub.f32 %v2297_v45, %v2343_v21  ;;  %v2352_v8 = vsub.f32 %v2298_v59, %v2347_v43  ;;  %v2353_v49 = vsub.f32 %v2299_v5, %v2347_v43 }
0x24c3   :  { %v2354_v56 = vmul.f32 1.442695, %v2350_v26  ;;  %v2356_v50 = vmul.f32 1.442695, %v2351_v46  ;;  %v2358_v11 = vmul.f32 1.442695, %v2352_v8 }
0x24c4   :  { %v2360_v17 = vmul.f32 1.442695, %v2353_v49 }
0x24c5   :  { %4394 = vpow2.f32 %v2354_v56 }
0x24c6   :  { %4396 = vpow2.f32 %v2356_v50 }
0x24c7   :  { %4398 = vpow2.f32 %v2358_v11 }
0x24c8   :  { %4400 = vpow2.f32 %v2360_v17 }
0x24cf   :  { %v4395_v32 = vpop.eup %4394 }
0x24d0   :  { %2367 = vperm.xlu0 %4305, %v4395_v32   ;;  %v4397_v33 = vpop.eup %4396 }
0x24d1   :  { %v4399_v27 = vpop.eup %4398 }
0x24d2   :  { %v4401_v25 = vpop.eup %4400 }
0x24d4   :  { %2370 = vperm.xlu0 %4305, %v4397_v33  }
0x24d8   :  { %2373 = vperm.xlu0 %4305, %v4399_v27  }
0x24dc   :  { %2376 = vperm.xlu0 %4305, %v4401_v25  }
0x254f   :  { %v2368_v13 = vpop.permute.xlu0 %2367 }
0x2550   :  { %v2381_v5 = vrot.slane %v2368_v13, %v4695_v12 }
0x2553   :  { %v2371_v45 = vpop.permute.xlu0 %2370 }
0x2554   :  { %v2385_v59 = vrot.slane %v2371_v45, %v4692_v10 }
0x2556   :  { %v2386_v9 = vsel %vm644_vm5, %v2385_v59, %v2381_v5 }
0x2557   :  { %v2374_v38 = vpop.permute.xlu0 %2373 }
0x2558   :  { %v2390_v61 = vrot.slane %v2374_v38, %v4695_v12 }
0x255b   :  { %v2377_v52 = vpop.permute.xlu0 %2376 }
0x255c   :  { %v2394_v4 = vrot.slane %v2377_v52, %v4692_v10 }
0x255e   :  { %v2395_v41 = vsel %vm644_vm5, %v2394_v4, %v2390_v61 }
0x255f   :  { %v2396_v57 = vsel %vm169_vm3, %v2395_v41, %v2386_v9 }
0x2560   :  { %v2398_v47 = vsel %vm657_vm6, %v2396_v57, 0.0 }
0x2561   :  { %2399 = vadd.xlane.f32.xlu0 %v2398_v47 }
0x25ee   :  { %v2400_v51 = vpop.xlane.xlu0 %2399 }
0x25ef   :  { %4402 = vrcp.f32 %v2400_v51 }
0x25f9   :  { %v4403_v1 = vpop.eup %4402 }
0x25fa   :  { %v2406_v15 = vrot.slane %v4403_v1, %v4646_v24  ;;  %v2410_v0 = vrot.slane %v4403_v1, %v4706_v36 }
0x25fc   :  { %v2414_v6 = vmul.f32 %v4397_v33, %v2406_v15  ;;  %v2413_v22 = vmul.f32 %v4395_v32, %v2406_v15  ;;  %v2415_v58 = vmul.f32 %v4399_v27, %v2410_v0  ;;  %v2416_v21 = vmul.f32 %v4401_v25, %v2410_v0 }
0x25fe   :  { %2424 = vperm.xlu0 %4305, %v2414_v6   ;;  %2419 = vperm.xlu1 %4304, %v2413_v22  }
0x2602   :  { %2429 = vperm.xlu1 %4304, %v2415_v58  }
0x2606   :  { %2434 = vperm.xlu1 %4304, %v2416_v21  }
0x267d   :  { %v2425_v43 = vpop.permute.xlu0 %2424  ;;  %v2420_v26 = vpop.permute.xlu1 %2419 }
0x267e   :  { %v2438_v46 = vmul.f32 %v2425_v43, %v4562_v29  ;;  %v2437_v56 = vmul.f32 %v2420_v26, %v4564_v30  ;;  %v3611_v32 = vrot.slane %v2425_v43, %v4692_v10  ;;  %v3607_v33 = vrot.slane %v2420_v26, %v4695_v12 }
0x267f   :  { %v3715_v26 = vmul.f32 -1.442695, %v5213_v44 }
0x2680   :  { %v2442_v8 = vsel %vm136_vm2, %v2438_v46, 0.0  ;;  %v2441_v50 = vsel %vm136_vm2, %v2437_v56, 0.0  ;;  %v3612_v52 = vsel %vm644_vm5, %v3611_v32, %v3607_v33 }
0x2681   :  { %v2443_v49 = vadd.f32 %v2442_v8, %v2441_v50  ;;  %v2430_v11 = vpop.permute.xlu1 %2429  ;;  %4404 = vpow2.f32 %v3715_v26 }
0x2682   :  { %v2439_v27 = vmul.f32 %v2430_v11, %v4572_v39  ;;  %v3616_v45 = vrot.slane %v2430_v11, %v4695_v12 }
0x2683   :  { %v2444_v17 = vrot.slane %v2443_v49, 4 }
0x2684   :  { %v2450_v5 = vsel %vm136_vm2, %v2439_v27, 0.0 }
0x2685   :  { %v2445_v25 = vadd.f32 %v2444_v17, %v2443_v49  ;;  %v2435_v13 = vpop.permute.xlu1 %2434 }
0x2686   :  { %v2440_v38 = vmul.f32 %v2435_v13, %v4570_v37  ;;  %v3620_v59 = vrot.slane %v2435_v13, %v4692_v10 }
0x2687   :  { %v2446_v9 = vrot.slane %v2445_v25, 2 }
0x2688   :  { %v2451_v61 = vsel %vm136_vm2, %v2440_v38, 0.0  ;;  %v3621_v4 = vsel %vm644_vm5, %v3620_v59, %v3616_v45 }
0x2689   :  { %v2452_v41 = vadd.f32 %v2451_v61, %v2450_v5  ;;  %v5272_v57 = vsel %vm169_vm3, %v3621_v4, %v3612_v52  ;;  %v2447_v51 = vadd.f32 %v2446_v9, %v2445_v25 }
0x268b   :  { %v2453_v47 = vrot.slane %v2452_v41, 4  ;;  %v2448_v22 = vrot.slane %v2447_v51, 1  ;;  %v4405_v46 = vpop.eup %4404 }
0x268c   :  { %v2236_v56 = vadd.f32 1.0, %v4405_v46 }
0x268d   :  { %v2454_v1 = vadd.f32 %v2453_v47, %v2452_v41  ;;  %v2449_v58 = vadd.f32 %v2448_v22, %v2447_v51 }
0x268e   :  { %4406 = vrcp.f32 %v2236_v56 }
0x268f   :  { %v2455_v15 = vrot.slane %v2454_v1, 2 }
0x2691   :  { %v2456_v6 = vadd.f32 %v2455_v15, %v2454_v1 }
0x2693   :  { %v2457_v0 = vrot.slane %v2456_v6, 1 }
0x2695   :  { %v2458_v21 = vadd.f32 %v2457_v0, %v2456_v6 }
0x2697   :  { %v2461_v43 = vsel %vm169_vm3, %v2458_v21, %v2449_v58 }
0x2698   :  { %2462 = vrot.lane.b32.xlu1 %v2461_v43, %s4469_s13  ;;  %v4407_v8 = vpop.eup %4406 }
0x270a   :  { %v2463_v50 = vpop.permute.xlu1 %2462 }
0x270b   :  { %v2465_v49 = vmul.f32 %v4407_v8, %v2463_v50 }
0x270d   :  { %2467 = vrot.lane.b32.xlu1 %v2465_v49, %s4470_s20 }
0x2711   :  { %2470 = vrot.lane.b32.xlu1 %v2158_v40, %s4472_s24 }
0x277f   :  { %v2468_v11 = vpop.permute.xlu1 %2467 }
0x2783   :  { %v2471_v17 = vpop.permute.xlu1 %2470 }
0x2784   :  { %v2473_v32 = vsel %vm136_vm2, %v2468_v11, %v2471_v17 }
0x2785   :  { %4058 = vmatmul.mubr.msk.f32.vlgmr.msra.gmra.mrb[14].mxu0 %vm796_vm7, %v2473_v32 }
0x2786   :  { %4271 = vmatpush3.bf16.msra.mxu0 %v4594_v63  ;;  %4098 = vmatprep.mubr.msk.f32.mxu0 %vm4465_vm1, %v4466_v19 }
0x2787   :  { %4272 = vmatprep.subr.bf16.mxu0 %v5526_v20 }
0x278a   :  { %4274 = vmatpush3.bf16.msra.mxu0 %v4608_v2  ;;  %v2556_v2 = vrot.slane %v5186_v60, 6 }
0x278b   :  { %4275 = vmatprep.subr.bf16.mxu0 %v5526_v20 }
0x2858   :  { %v2543_v44 = vpop.f32.mrb[14].mxu0 }
0x2859   :  { %v2547_v16 = vadd.f32 %v2543_v44, %v4806_v48  ;;  %v4059_v40 = vpop.f32.mrb[15].mxu0 }
0x285b   :  { %4408 = vtanh.f32 %v2547_v16  ;;  %v3717_v27 = vmul.f32 -1.442695, %v2547_v16 }
0x285d   :  { %4410 = vpow2.f32 %v3717_v27 }
0x2865   :  { %v4409_v33 = vpop.eup %4408 }
0x2866   :  { %2560 = vrot.lane.b32.xlu0 %v4409_v33, %s4472_s24 }
0x2867   :  { %v4411_v63 = vpop.eup %4410 }
0x2868   :  { %v2551_v25 = vadd.f32 1.0, %v4411_v63 }
0x286a   :  { %4412 = vrcp.f32 %v2551_v25 }
0x2874   :  { %v4413_v13 = vpop.eup %4412 }
0x2875   :  { %v2558_v59 = vmul.f32 %v4413_v13, %v2556_v2 }
0x28d8   :  { %v2561_v45 = vpop.permute.xlu0 %2560 }
0x28d9   :  { %v2563_v38 = vmul.f32 %v4413_v13, %v2561_v45 }
0x28db   :  { %2565 = vrot.lane.b32.xlu1 %v2563_v38, %s4471_s21 }
0x294d   :  { %v2566_v52 = vpop.permute.xlu1 %2565 }
0x294e   :  { %v5293_v5 = vadd.f32 %v2566_v52, %v2558_v59 }
0x2950   :  { %4414 = vtanh.f32 %v5293_v5 }
0x295a   :  { %v4415_v61 = vpop.eup %4414 }
0x295b   :  { %2571 = vrot.lane.b32.xlu0 %v4415_v61, %s4472_s24 }
0x29cd   :  { %v2572_v4 = vpop.permute.xlu0 %2571 }
0x29ce   :  { %v5297_v9 = vmul.f32 %v4413_v13, %v2572_v4 }
0x29d0   :  { %2576 = vrot.lane.b32.xlu1 %v5297_v9, %s4471_s21 }
0x2a42   :  { %v2577_v41 = vpop.permute.xlu1 %2576 }
0x2a43   :  { %4069 = vmatmul.mubr.msk.f32.vlgmr.msra.gmra.mrb[16].mxu1 %vm136_vm2, %v2577_v41 }
0x2a44   :  { %4259 = vmatpush3.bf16.msra.mxu1 %v4759_v7  ;;  %4087 = vmatprep.mubr.msk.f32.mxu1 %vm4465_vm1, %v4466_v19 }
0x2a45   :  { %4260 = vmatprep.subr.bf16.mxu1 %v5526_v20 }
0x2a48   :  { %4262 = vmatpush3.bf16.msra.mxu1 %v4772_v14 }
0x2a49   :  { %4263 = vmatprep.subr.bf16.mxu1 %v5526_v20 }
0x2a4c   :  { %4265 = vmatpush3.bf16.msra.mxu1 %v4784_v23 }
0x2a4d   :  { %4266 = vmatprep.subr.bf16.mxu1 %v5526_v20 }
0x2a50   :  { %4268 = vmatpush3.bf16.msra.mxu1 %v4796_v42 }
0x2b16   :  { %v2646_v60 = vpop.f32.mrb[16].mxu1 }
0x2b17   :  { %v5312_v47 = vadd.f32 %v5060_v53, %v2646_v60  ;;  %v4070_v51 = vpop.f32.mrb[17].mxu1 }
0x2b19   :  { %v2663_v1 = vrot.slane %v5312_v47, %v4638_v18 }
0x2b1b   :  { %v2664_v15 = vcombine.high %v2663_v1, %v2663_v1  ;;  %v2671_v6 = vrot.slane %v2663_v1, %v4638_v18 }
0x2b1d   :  { %v2678_v22 = vrot.slane %v2664_v15, %v4638_v18  ;;  %v2682_v0 = vrot.slane %v2671_v6, %v4646_v24 }
0x2b1f   :  { %v2690_v58 = vadd.f32 %v2682_v0, %v4652_v28  ;;  %v2689_v21 = vadd.f32 %v2682_v0, %v4654_v31  ;;  %v2686_v43 = vrot.slane %v2678_v22, %v4646_v24 }
0x2b21   :  { %v2694_v26 = vmax.f32 %v2690_v58, 0.0  ;;  %v2693_v53 = vmax.f32 %v2689_v21, 0.0  ;;  %v2691_v46 = vadd.f32 %v2686_v43, %v4660_v35  ;;  %v2692_v56 = vadd.f32 %v2686_v43, %v4658_v34 }
0x2b23   :  { %v2698_v8 = vmul.f32 %v5078_v55, %v2694_v26  ;;  %v2697_v50 = vmul.f32 %v5078_v55, %v2693_v53  ;;  %v2695_v49 = vmax.f32 %v2691_v46, 0.0  ;;  %v2696_v44 = vmax.f32 %v2692_v56, 0.0 }
0x2b25   :  { %v2704_v11 = vsel %vm358_vm4, %v2698_v8, 0.0  ;;  %v2701_v17 = vsel %vm358_vm4, %v2697_v50, 0.0  ;;  %v2699_v32 = vmul.f32 %v5078_v55, %v2695_v49  ;;  %v2700_v40 = vmul.f32 %v5078_v55, %v2696_v44 }
0x2b26   :  { %2705 = vadd.xlane.f32.xlu1 %v2704_v11  ;;  %2702 = vadd.xlane.f32.xlu0 %v2701_v17 }
0x2b27   :  { %v2707_v16 = vsel %vm358_vm4, %v2699_v32, 0.0  ;;  %v2710_v33 = vsel %vm358_vm4, %v2700_v40, 0.0 }
0x2b2a   :  { %2708 = vadd.xlane.f32.xlu0 %v2707_v16 }
0x2b2e   :  { %2711 = vadd.xlane.f32.xlu0 %v2710_v33 }
0x2bb3   :  { %v2706_v27 = vpop.xlane.xlu1 %2705  ;;  %v2703_v63 = vpop.xlane.xlu0 %2702 }
0x2bb4   :  { %v2714_v25 = vadd.f32 %v2706_v27, %v4687_v3  ;;  %v2713_v13 = vadd.f32 %v2703_v63, %v4683_v62 }
0x2bb6   :  { %2725 = vperm.xlu1 %4304, %v2714_v25   ;;  %2722 = vperm.xlu0 %4305, %v2713_v13  }
0x2bb7   :  { %v2709_v45 = vpop.xlane.xlu0 %2708 }
0x2bb8   :  { %v2715_v38 = vadd.f32 %v2709_v45, %v4683_v62 }
0x2bba   :  { %2728 = vperm.xlu1 %4304, %v2715_v38  }
0x2bbb   :  { %v2712_v2 = vpop.xlane.xlu0 %2711 }
0x2bbc   :  { %v2716_v59 = vadd.f32 %v2712_v2, %v4687_v3 }
0x2bbe   :  { %2731 = vperm.xlu1 %4304, %v2716_v59  }
0x2c35   :  { %v2726_v55 = vpop.permute.xlu1 %2725  ;;  %v2723_v52 = vpop.permute.xlu0 %2722 }
0x2c36   :  { %v2740_v4 = vrot.slane %v2726_v55, %v4692_v10  ;;  %v2736_v41 = vrot.slane %v2723_v52, %v4695_v12 }
0x2c38   :  { %v2741_v15 = vsel %vm644_vm5, %v2740_v4, %v2736_v41 }
0x2c39   :  { %v2729_v61 = vpop.permute.xlu1 %2728 }
0x2c3a   :  { %v2745_v51 = vrot.slane %v2729_v61, %v4695_v12 }
0x2c3d   :  { %v2732_v60 = vpop.permute.xlu1 %2731 }
0x2c3e   :  { %v2749_v1 = vrot.slane %v2732_v60, %v4692_v10 }
0x2c40   :  { %v2750_v6 = vsel %vm644_vm5, %v2749_v1, %v2745_v51 }
0x2c41   :  { %v2751_v22 = vsel %vm169_vm3, %v2750_v6, %v2741_v15 }
0x2c42   :  { %v2753_v0 = vsel %vm657_vm6, %v2751_v22, -inf }
0x2c43   :  { %2754 = vmax.xlane.f32.xlu0 %v2753_v0 }
0x2cd0   :  { %v2755_v58 = vpop.xlane.xlu0 %2754 }
0x2cd1   :  { %v2760_v21 = vrot.slane %v2755_v58, %v4646_v24  ;;  %v2764_v43 = vrot.slane %v2755_v58, %v4706_v36 }
0x2cd3   :  { %v2767_v26 = vsub.f32 %v2713_v13, %v2760_v21  ;;  %v2768_v53 = vsub.f32 %v2714_v25, %v2760_v21  ;;  %v2769_v56 = vsub.f32 %v2715_v38, %v2764_v43  ;;  %v2770_v50 = vsub.f32 %v2716_v59, %v2764_v43 }
0x2cd5   :  { %v2771_v46 = vmul.f32 1.442695, %v2767_v26  ;;  %v2773_v8 = vmul.f32 1.442695, %v2768_v53  ;;  %v2775_v49 = vmul.f32 1.442695, %v2769_v56 }
0x2cd6   :  { %v2777_v11 = vmul.f32 1.442695, %v2770_v50 }
0x2cd7   :  { %4416 = vpow2.f32 %v2771_v46 }
0x2cd8   :  { %4418 = vpow2.f32 %v2773_v8 }
0x2cd9   :  { %4420 = vpow2.f32 %v2775_v49 }
0x2cda   :  { %4422 = vpow2.f32 %v2777_v11 }
0x2ce1   :  { %v4417_v17 = vpop.eup %4416 }
0x2ce2   :  { %2784 = vperm.xlu1 %4304, %v4417_v17   ;;  %v4419_v32 = vpop.eup %4418 }
0x2ce3   :  { %v4421_v44 = vpop.eup %4420 }
0x2ce4   :  { %v4423_v16 = vpop.eup %4422 }
0x2ce6   :  { %2787 = vperm.xlu1 %4304, %v4419_v32  }
0x2cea   :  { %2790 = vperm.xlu1 %4304, %v4421_v44  }
0x2cee   :  { %2793 = vperm.xlu1 %4304, %v4423_v16  }
0x2d61   :  { %v2785_v40 = vpop.permute.xlu1 %2784 }
0x2d62   :  { %v2798_v13 = vrot.slane %v2785_v40, %v4695_v12 }
0x2d65   :  { %v2788_v33 = vpop.permute.xlu1 %2787 }
0x2d66   :  { %v2802_v63 = vrot.slane %v2788_v33, %v4692_v10 }
0x2d68   :  { %v2803_v2 = vsel %vm644_vm5, %v2802_v63, %v2798_v13 }
0x2d69   :  { %v2791_v27 = vpop.permute.xlu1 %2790 }
0x2d6a   :  { %v2807_v45 = vrot.slane %v2791_v27, %v4695_v12 }
0x2d6d   :  { %v2794_v25 = vpop.permute.xlu1 %2793 }
0x2d6e   :  { %v2811_v38 = vrot.slane %v2794_v25, %v4692_v10 }
0x2d70   :  { %v2812_v59 = vsel %vm644_vm5, %v2811_v38, %v2807_v45 }
0x2d71   :  { %v2813_v55 = vsel %vm169_vm3, %v2812_v59, %v2803_v2 }
0x2d72   :  { %v2815_v52 = vsel %vm657_vm6, %v2813_v55, 0.0 }
0x2d73   :  { %2816 = vadd.xlane.f32.xlu1 %v2815_v52 }
0x2e00   :  { %v2817_v61 = vpop.xlane.xlu1 %2816 }
0x2e01   :  { %4424 = vrcp.f32 %v2817_v61 }
0x2e0b   :  { %v4425_v4 = vpop.eup %4424 }
0x2e0c   :  { %v2827_v41 = vrot.slane %v4425_v4, %v4706_v36  ;;  %v2823_v60 = vrot.slane %v4425_v4, %v4646_v24 }
0x2e0e   :  { %v2832_v51 = vmul.f32 %v4421_v44, %v2827_v41  ;;  %v2830_v1 = vmul.f32 %v4417_v17, %v2823_v60  ;;  %v2831_v15 = vmul.f32 %v4419_v32, %v2823_v60  ;;  %v2833_v6 = vmul.f32 %v4423_v16, %v2827_v41 }
0x2e10   :  { %2846 = vperm.xlu1 %4304, %v2832_v51   ;;  %2836 = vperm.xlu0 %4305, %v2830_v1  }
0x2e14   :  { %2841 = vperm.xlu0 %4305, %v2831_v15   ;;  %v3719_v15 = vmul.f32 -1.442695, %v5312_v47 }
0x2e16   :  { %4426 = vpow2.f32 %v3719_v15  ;;  %v4463_v15 = vld [vmem:[%s5520_s3 + $0x6] ss:$0 sm:$0xff] }
0x2e18   :  { %2851 = vperm.xlu0 %4305, %v2833_v6  }
0x2e20   :  { %v4427_v6 = vpop.eup %4426 }
0x2e8f   :  { %v2837_v22 = vpop.permute.xlu0 %2836  ;;  %v2847_v58 = vpop.permute.xlu1 %2846 }
0x2e90   :  { %v2854_v0 = vmul.f32 %v2837_v22, %v4564_v30  ;;  %v3627_v43 = vrot.slane %v2837_v22, %v4695_v12  ;;  %v2856_v46 = vmul.f32 %v2847_v58, %v4572_v39  ;;  %v3636_v17 = vrot.slane %v2847_v58, %v4695_v12 }
0x2e92   :  { %v2858_v56 = vsel %vm136_vm2, %v2854_v0, 0.0  ;;  %v2867_v40 = vsel %vm136_vm2, %v2856_v46, 0.0 }
0x2e93   :  { %v2842_v21 = vpop.permute.xlu0 %2841 }
0x2e94   :  { %v2855_v26 = vmul.f32 %v2842_v21, %v4562_v29  ;;  %v3631_v53 = vrot.slane %v2842_v21, %v4692_v10 }
0x2e96   :  { %v2859_v8 = vsel %vm136_vm2, %v2855_v26, 0.0  ;;  %v3632_v50 = vsel %vm644_vm5, %v3631_v53, %v3627_v43 }
0x2e97   :  { %v2860_v49 = vadd.f32 %v2859_v8, %v2858_v56  ;;  %v2852_v11 = vpop.permute.xlu0 %2851 }
0x2e98   :  { %v2857_v32 = vmul.f32 %v2852_v11, %v4570_v37  ;;  %v3640_v44 = vrot.slane %v2852_v11, %v4692_v10 }
0x2e99   :  { %v2861_v16 = vrot.slane %v2860_v49, 4 }
0x2e9a   :  { %v2868_v33 = vsel %vm136_vm2, %v2857_v32, 0.0  ;;  %v3641_v27 = vsel %vm644_vm5, %v3640_v44, %v3636_v17 }
0x2e9b   :  { %v2862_v63 = vadd.f32 %v2861_v16, %v2860_v49  ;;  %v2869_v25 = vadd.f32 %v2868_v33, %v2867_v40  ;;  %v3642_v13 = vsel %vm3559_vm10, %v3641_v27, %v3632_v50  ;;  %v2976_v16 = vrot.slane %v5293_v5, 6 }
0x2e9c   :  { %v5373_v45 = vsel %vm3416_vm8, %v5272_v57, %v3642_v13  ;;  %v2653_v57 = vadd.f32 1.0, %v4427_v6 }
0x2e9d   :  { %v2863_v38 = vrot.slane %v2862_v63, 2  ;;  %v2870_v2 = vrot.slane %v2869_v25, 4 }
0x2e9e   :  { %4428 = vrcp.f32 %v2653_v57 }
0x2e9f   :  { %v2864_v59 = vadd.f32 %v2863_v38, %v2862_v63  ;;  %v2871_v55 = vadd.f32 %v2870_v2, %v2869_v25 }
0x2ea1   :  { %v2872_v52 = vrot.slane %v2871_v55, 2  ;;  %v2865_v4 = vrot.slane %v2864_v59, 1 }
0x2ea3   :  { %v2873_v61 = vadd.f32 %v2872_v52, %v2871_v55  ;;  %v2866_v60 = vadd.f32 %v2865_v4, %v2864_v59 }
0x2ea5   :  { %v2874_v41 = vrot.slane %v2873_v61, 1 }
0x2ea7   :  { %v2875_v51 = vadd.f32 %v2874_v41, %v2873_v61 }
0x2ea8   :  { %v4429_v22 = vpop.eup %4428 }
0x2ea9   :  { %v2878_v1 = vsel %vm169_vm3, %v2875_v51, %v2866_v60 }
0x2eaa   :  { %2879 = vrot.lane.b32.xlu0 %v2878_v1, %s4469_s13 }
0x2f1c   :  { %v2880_v0 = vpop.permute.xlu0 %2879 }
0x2f1d   :  { %v2882_v58 = vmul.f32 %v4429_v22, %v2880_v0 }
0x2f1f   :  { %2884 = vrot.lane.b32.xlu0 %v2882_v58, %s4470_s20 }
0x2f23   :  { %2887 = vrot.lane.b32.xlu0 %v5297_v9, %s4472_s24 }
0x2f91   :  { %v2885_v21 = vpop.permute.xlu0 %2884 }
0x2f95   :  { %v2888_v43 = vpop.permute.xlu0 %2887 }
0x2f96   :  { %v2890_v26 = vsel %vm136_vm2, %v2885_v21, %v2888_v43 }
0x2f97   :  { %4088 = vmatmul.mubr.msk.f32.vlgmr.msra.gmra.mrb[18].mxu1 %vm796_vm7, %v2890_v26 }
0x306a   :  { %v2960_v53 = vpop.f32.mrb[18].mxu1 }
0x306b   :  { %v2965_v47 = vrot.slane %v2960_v53, 6  ;;  %v4089_v46 = vpop.f32.mrb[19].mxu1 }
0x306d   :  { %v2967_v56 = vadd.f32 %v2965_v47, %v4806_v48 }
0x306f   :  { %4430 = vtanh.f32 %v2967_v56  ;;  %v3721_v50 = vmul.f32 -1.442695, %v2967_v56 }
0x3071   :  { %4432 = vpow2.f32 %v3721_v50 }
0x3079   :  { %v4431_v8 = vpop.eup %4430 }
0x307a   :  { %2980 = vrot.lane.b32.xlu1 %v4431_v8, %s4472_s24 }
0x307b   :  { %v4433_v49 = vpop.eup %4432 }
0x307c   :  { %v2971_v11 = vadd.f32 1.0, %v4433_v49 }
0x307e   :  { %4434 = vrcp.f32 %v2971_v11 }
0x3088   :  { %v4435_v17 = vpop.eup %4434 }
0x3089   :  { %v2978_v40 = vmul.f32 %v4435_v17, %v2976_v16 }
0x30ec   :  { %v2981_v32 = vpop.permute.xlu1 %2980 }
0x30ed   :  { %v2983_v44 = vmul.f32 %v4435_v17, %v2981_v32 }
0x30ef   :  { %2985 = vrot.lane.b32.xlu0 %v2983_v44, %s4471_s21 }
0x3161   :  { %v2986_v33 = vpop.permute.xlu0 %2985 }
0x3162   :  { %v5387_v27 = vadd.f32 %v2986_v33, %v2978_v40 }
0x3164   :  { %4436 = vtanh.f32 %v5387_v27 }
0x316e   :  { %v4437_v63 = vpop.eup %4436 }
0x316f   :  { %2991 = vrot.lane.b32.xlu1 %v4437_v63, %s4472_s24 }
0x31e1   :  { %v2992_v25 = vpop.permute.xlu1 %2991 }
0x31e2   :  { %v5391_v13 = vmul.f32 %v4435_v17, %v2992_v25 }
0x31e4   :  { %v2996_v38 = vrot.slane %v5391_v13, 2 }
0x31e6   :  { %2997 = vrot.lane.b32.xlu0 %v2996_v38, %s4471_s21 }
0x3258   :  { %v2998_v2 = vpop.permute.xlu0 %2997 }
0x3259   :  { %4099 = vmatmul.mubr.msk.f32.vlgmr.msra.gmra.mrb[16].mxu0 %vm136_vm2, %v2998_v2 }
0x325a   :  { %4277 = vmatpush3.bf16.msra.mxu0 %v4759_v7  ;;  %4117 = vmatprep.mubr.msk.f32.mxu0 %vm4465_vm1, %v4466_v19  ;;  %v4462_v7 = vld [vmem:[%s5520_s3 + $0x3] ss:$0 sm:$0xff] }
0x325b   :  { %4278 = vmatprep.subr.bf16.mxu0 %v5526_v20 }
0x325e   :  { %4280 = vmatpush3.bf16.msra.mxu0 %v4772_v14 }
0x325f   :  { %4281 = vmatprep.subr.bf16.mxu0 %v5526_v20 }
0x3262   :  { %4283 = vmatpush3.bf16.msra.mxu0 %v4784_v23 }
0x3263   :  { %4284 = vmatprep.subr.bf16.mxu0 %v5526_v20 }
0x3266   :  { %4286 = vmatpush3.bf16.msra.mxu0 %v4796_v42 }
0x332c   :  { %v3067_v5 = vpop.f32.mrb[16].mxu0 }
0x332d   :  { %v5410_v59 = vadd.f32 %v4462_v7, %v3067_v5  ;;  %v4100_v19 = vpop.f32.mrb[17].mxu0 }
0x332f   :  { %v3084_v55 = vrot.slane %v5410_v59, %v4638_v18 }
0x3331   :  { %v3085_v14 = vcombine.high %v3084_v55, %v3084_v55  ;;  %v3092_v52 = vrot.slane %v3084_v55, %v4638_v18 }
0x3333   :  { %v3099_v23 = vrot.slane %v3085_v14, %v4638_v18  ;;  %v3103_v20 = vrot.slane %v3092_v52, %v4646_v24 }
0x3335   :  { %v3111_v42 = vadd.f32 %v3103_v20, %v4652_v28  ;;  %v3110_v61 = vadd.f32 %v3103_v20, %v4654_v31  ;;  %v3107_v4 = vrot.slane %v3099_v23, %v4646_v24 }
0x3337   :  { %v3115_v41 = vmax.f32 %v3111_v42, 0.0  ;;  %v3114_v60 = vmax.f32 %v3110_v61, 0.0  ;;  %v3112_v51 = vadd.f32 %v3107_v4, %v4660_v35  ;;  %v3113_v1 = vadd.f32 %v3107_v4, %v4658_v34 }
0x3339   :  { %v3119_v6 = vmul.f32 %v4463_v15, %v3115_v41  ;;  %v3118_v18 = vmul.f32 %v4463_v15, %v3114_v60  ;;  %v3116_v57 = vmax.f32 %v3112_v51, 0.0  ;;  %v3117_v0 = vmax.f32 %v3113_v1, 0.0 }
0x333b   :  { %v3125_v22 = vsel %vm358_vm4, %v3119_v6, 0.0  ;;  %v3122_v28 = vsel %vm358_vm4, %v3118_v18, 0.0  ;;  %v3120_v31 = vmul.f32 %v4463_v15, %v3116_v57  ;;  %v3121_v35 = vmul.f32 %v4463_v15, %v3117_v0 }
0x333c   :  { %3126 = vadd.xlane.f32.xlu0 %v3125_v22  ;;  %3123 = vadd.xlane.f32.xlu1 %v3122_v28 }
0x333d   :  { %v3128_v58 = vsel %vm358_vm4, %v3120_v31, 0.0  ;;  %v3131_v34 = vsel %vm358_vm4, %v3121_v35, 0.0 }
0x3340   :  { %3129 = vadd.xlane.f32.xlu0 %v3128_v58 }
0x3344   :  { %3132 = vadd.xlane.f32.xlu0 %v3131_v34 }
0x33c9   :  { %v3127_v21 = vpop.xlane.xlu0 %3126  ;;  %v3124_v43 = vpop.xlane.xlu1 %3123 }
0x33ca   :  { %v3135_v26 = vadd.f32 %v3127_v21, %v4687_v3  ;;  %v3134_v53 = vadd.f32 %v3124_v43, %v4683_v62 }
0x33cc   :  { %3143 = vperm.xlu1 %4304, %v3134_v53   ;;  %3146 = vperm.xlu0 %4305, %v3135_v26  }
0x33cd   :  { %v3130_v47 = vpop.xlane.xlu0 %3129 }
0x33ce   :  { %v3136_v46 = vadd.f32 %v3130_v47, %v4683_v62 }
0x33d0   :  { %3149 = vperm.xlu1 %4304, %v3136_v46  }
0x33d1   :  { %v3133_v56 = vpop.xlane.xlu0 %3132 }
0x33d2   :  { %v3137_v8 = vadd.f32 %v3133_v56, %v4687_v3 }
0x33d4   :  { %3152 = vperm.xlu1 %4304, %v3137_v8  }
0x344b   :  { %v3144_v50 = vpop.permute.xlu1 %3143  ;;  %v3147_v49 = vpop.permute.xlu0 %3146 }
0x344c   :  { %v3157_v17 = vrot.slane %v3144_v50, %v4695_v12  ;;  %v3161_v32 = vrot.slane %v3147_v49, %v4692_v10 }
0x344e   :  { %v3162_v33 = vsel %vm644_vm5, %v3161_v32, %v3157_v17 }
0x344f   :  { %v3150_v11 = vpop.permute.xlu1 %3149 }
0x3450   :  { %v3166_v16 = vrot.slane %v3150_v11, %v4695_v12 }
0x3453   :  { %v3153_v44 = vpop.permute.xlu1 %3152 }
0x3454   :  { %v3170_v40 = vrot.slane %v3153_v44, %v4692_v10 }
0x3456   :  { %v3171_v62 = vsel %vm644_vm5, %v3170_v40, %v3166_v16 }
0x3457   :  { %v3172_v63 = vsel %vm169_vm3, %v3171_v62, %v3162_v33 }
0x3458   :  { %v3174_v3 = vsel %vm657_vm6, %v3172_v63, -inf }
0x3459   :  { %3175 = vmax.xlane.f32.xlu1 %v3174_v3 }
0x34e6   :  { %v3176_v25 = vpop.xlane.xlu1 %3175 }
0x34e7   :  { %v3181_v2 = vrot.slane %v3176_v25, %v4646_v24  ;;  %v3185_v5 = vrot.slane %v3176_v25, %v4706_v36 }
0x34e9   :  { %v3188_v7 = vsub.f32 %v3134_v53, %v3181_v2  ;;  %v3189_v19 = vsub.f32 %v3135_v26, %v3181_v2  ;;  %v3190_v14 = vsub.f32 %v3136_v46, %v3185_v5  ;;  %v3191_v23 = vsub.f32 %v3137_v8, %v3185_v5 }
0x34eb   :  { %v3192_v55 = vmul.f32 1.442695, %v3188_v7  ;;  %v3194_v52 = vmul.f32 1.442695, %v3189_v19  ;;  %v3196_v20 = vmul.f32 1.442695, %v3190_v14 }
0x34ec   :  { %v3198_v42 = vmul.f32 1.442695, %v3191_v23 }
0x34ed   :  { %4438 = vpow2.f32 %v3192_v55 }
0x34ee   :  { %4440 = vpow2.f32 %v3194_v52 }
0x34ef   :  { %4442 = vpow2.f32 %v3196_v20 }
0x34f0   :  { %4444 = vpow2.f32 %v3198_v42 }
0x34f7   :  { %v4439_v61 = vpop.eup %4438 }
0x34f8   :  { %3205 = vperm.xlu0 %4305, %v4439_v61   ;;  %v4441_v4 = vpop.eup %4440 }
0x34f9   :  { %v4443_v41 = vpop.eup %4442 }
0x34fa   :  { %v4445_v60 = vpop.eup %4444 }
0x34fc   :  { %3208 = vperm.xlu0 %4305, %v4441_v4  }
0x3500   :  { %3211 = vperm.xlu0 %4305, %v4443_v41  }
0x3504   :  { %3214 = vperm.xlu0 %4305, %v4445_v60  }
0x3577   :  { %v3206_v51 = vpop.permute.xlu0 %3205 }
0x3578   :  { %v3219_v57 = vrot.slane %v3206_v51, %v4695_v12 }
0x357b   :  { %v3209_v1 = vpop.permute.xlu0 %3208 }
0x357c   :  { %v3223_v6 = vrot.slane %v3209_v1, %v4692_v10 }
0x357e   :  { %v3224_v31 = vsel %vm644_vm5, %v3223_v6, %v3219_v57 }
0x357f   :  { %v3212_v15 = vpop.permute.xlu0 %3211 }
0x3580   :  { %v3228_v22 = vrot.slane %v3212_v15, %v4695_v12 }
0x3583   :  { %v3215_v18 = vpop.permute.xlu0 %3214 }
0x3584   :  { %v3232_v28 = vrot.slane %v3215_v18, %v4692_v10 }
0x3586   :  { %v3233_v0 = vsel %vm644_vm5, %v3232_v28, %v3228_v22 }
0x3587   :  { %v3234_v58 = vsel %vm169_vm3, %v3233_v0, %v3224_v31 }
0x3588   :  { %v3236_v35 = vsel %vm657_vm6, %v3234_v58, 0.0 }
0x3589   :  { %3237 = vadd.xlane.f32.xlu0 %v3236_v35 }
0x3616   :  { %v3238_v34 = vpop.xlane.xlu0 %3237 }
0x3617   :  { %4446 = vrcp.f32 %v3238_v34 }
0x3621   :  { %v4447_v21 = vpop.eup %4446 }
0x3622   :  { %v3244_v43 = vrot.slane %v4447_v21, %v4646_v24  ;;  %v3248_v47 = vrot.slane %v4447_v21, %v4706_v36 }
0x3624   :  { %v3252_v26 = vmul.f32 %v4441_v4, %v3244_v43  ;;  %v3251_v53 = vmul.f32 %v4439_v61, %v3244_v43  ;;  %v3253_v46 = vmul.f32 %v4443_v41, %v3248_v47  ;;  %v3254_v56 = vmul.f32 %v4445_v60, %v3248_v47 }
0x3625   :  { %v3723_v60 = vmul.f32 -1.442695, %v5410_v59 }
0x3626   :  { %3262 = vperm.xlu0 %4305, %v3252_v26   ;;  %3257 = vperm.xlu1 %4304, %v3251_v53   ;;  %v3397_v53 = vrot.slane %v5387_v27, 6  ;;  %v3427_v27 = vld [vmem:[%s5518_s2 + $0xf8] sm:$0xff] }
0x3627   :  { %4448 = vpow2.f32 %v3723_v60 }
0x362a   :  { %3267 = vperm.xlu1 %4304, %v3253_v46  }
0x362e   :  { %3272 = vperm.xlu1 %4304, %v3254_v56  }
0x36a5   :  { %v3263_v8 = vpop.permute.xlu0 %3262  ;;  %v3258_v50 = vpop.permute.xlu1 %3257 }
0x36a6   :  { %v3276_v49 = vmul.f32 %v3263_v8, %v4562_v29  ;;  %v3275_v11 = vmul.f32 %v3258_v50, %v4564_v30  ;;  %v3651_v36 = vrot.slane %v3263_v8, %v4692_v10  ;;  %v3647_v40 = vrot.slane %v3258_v50, %v4695_v12  ;;  %v3424_v8 = vld [vmem:[%s5518_s2 + $0xe0] sm:$0xff]  ;;  %v3425_v50 = vld [vmem:[%s5518_s2 + $0xe8] sm:$0xff] }
0x36a8   :  { %v3280_v17 = vsel %vm136_vm2, %v3276_v49, 0.0  ;;  %v3279_v24 = vsel %vm136_vm2, %v3275_v11, 0.0  ;;  %v3652_v25 = vsel %vm644_vm5, %v3651_v36, %v3647_v40  ;;  %v3426_v49 = vld [vmem:[%s5518_s2 + $0xf0] sm:$0xff]  ;;  %v3726_v40 = vld [vmem:[%s5520_s3 + $0x5] ss:$0 sm:$0xff] }
0x36a9   :  { %v3281_v32 = vadd.f32 %v3280_v17, %v3279_v24  ;;  %v3268_v44 = vpop.permute.xlu1 %3267  ;;  %v4291_v11 = vpack.c.bf16 %v3427_v27, %v3426_v49 }
0x36aa   :  { %v3277_v33 = vmul.f32 %v3268_v44, %v4572_v39  ;;  %v3656_v3 = vrot.slane %v3268_v44, %v4695_v12  ;;  %v3422_v44 = vsel %vm3416_vm8, %v5297_v9, %v5391_v13 }
0x36ab   :  { %v3282_v16 = vrot.slane %v3281_v32, 4 }
0x36ac   :  { %v3288_v2 = vsel %vm136_vm2, %v3277_v33, 0.0 }
0x36ad   :  { %v3283_v62 = vadd.f32 %v3282_v16, %v3281_v32  ;;  %v3273_v63 = vpop.permute.xlu1 %3272 }
0x36ae   :  { %v3278_v29 = vmul.f32 %v3273_v63, %v4570_v37  ;;  %v3660_v30 = vrot.slane %v3273_v63, %v4692_v10 }
0x36af   :  { %v3284_v19 = vrot.slane %v3283_v62, 2 }
0x36b0   :  { %v3289_v5 = vsel %vm136_vm2, %v3278_v29, 0.0  ;;  %v3661_v7 = vsel %vm644_vm5, %v3660_v30, %v3656_v3 }
0x36b1   :  { %v3290_v55 = vadd.f32 %v3289_v5, %v3288_v2  ;;  %v3662_v39 = vsel %vm3580_vm11, %v3661_v7, %v3652_v25  ;;  %v3285_v37 = vadd.f32 %v3284_v19, %v3283_v62 }
0x36b2   :  { %v3668_v12 = vsel %vm3418_vm9, %v5373_v45, %v3662_v39  ;;  %v4449_v45 = vpop.eup %4448 }
0x36b3   :  { %v3291_v14 = vrot.slane %v3290_v55, 4  ;;  %3671 = vst.msk [vmem:[%s5522_s5 + $0x8] sm:$0x3f] %vm3670_vm14, %v3668_v12  ;;  %v3286_v20 = vrot.slane %v3285_v37, 1  ;;  %v3074_v51 = vadd.f32 1.0, %v4449_v45 }
0x36b5   :  { %v3292_v10 = vadd.f32 %v3291_v14, %v3290_v55  ;;  %v3287_v61 = vadd.f32 %v3286_v20, %v3285_v37  ;;  %4450 = vrcp.f32 %v3074_v51 }
0x36b7   :  { %v3293_v52 = vrot.slane %v3292_v10, 2 }
0x36b9   :  { %v3294_v23 = vadd.f32 %v3293_v52, %v3292_v10 }
0x36bb   :  { %v3295_v42 = vrot.slane %v3294_v23, 1 }
0x36bd   :  { %v3296_v4 = vadd.f32 %v3295_v42, %v3294_v23 }
0x36bf   :  { %v3299_v41 = vsel %vm169_vm3, %v3296_v4, %v3287_v61  ;;  %v4451_v1 = vpop.eup %4450 }
0x36c0   :  { %3300 = vrot.lane.b32.xlu1 %v3299_v41, %s4469_s13 }
0x3732   :  { %v3301_v15 = vpop.permute.xlu1 %3300 }
0x3733   :  { %v3303_v6 = vmul.f32 %v4451_v1, %v3301_v15 }
0x3735   :  { %3305 = vrot.lane.b32.xlu1 %v3303_v6, %s4470_s20 }
0x3739   :  { %3308 = vrot.lane.b32.xlu1 %v2996_v38, %s4472_s24 }
0x37a7   :  { %v3306_v18 = vpop.permute.xlu1 %3305 }
0x37ab   :  { %v3309_v57 = vpop.permute.xlu1 %3308 }
0x37ac   :  { %v3311_v22 = vsel %vm136_vm2, %v3306_v18, %v3309_v57 }
0x37ad   :  { %4118 = vmatmul.mubr.msk.f32.vlgmr.msra.gmra.mrb[18].mxu0 %vm796_vm7, %v3311_v22 }
0x3880   :  { %v3381_v59 = vpop.f32.mrb[18].mxu0 }
0x3881   :  { %v3386_v28 = vrot.slane %v3381_v59, 4  ;;  %v4119_v31 = vpop.f32.mrb[19].mxu0 }
0x3883   :  { %v3388_v0 = vadd.f32 %v3386_v28, %v4806_v48 }
0x3885   :  { %4452 = vtanh.f32 %v3388_v0  ;;  %v3725_v35 = vmul.f32 -1.442695, %v3388_v0 }
0x3887   :  { %4454 = vpow2.f32 %v3725_v35 }
0x388f   :  { %v4453_v58 = vpop.eup %4452 }
0x3890   :  { %3401 = vrot.lane.b32.xlu0 %v4453_v58, %s4472_s24 }
0x3891   :  { %v4455_v34 = vpop.eup %4454 }
0x3892   :  { %v3392_v21 = vadd.f32 1.0, %v4455_v34 }
0x3894   :  { %4456 = vrcp.f32 %v3392_v21 }
0x389e   :  { %v4457_v38 = vpop.eup %4456 }
0x389f   :  { %v3399_v48 = vmul.f32 %v4457_v38, %v3397_v53 }
0x3902   :  { %v3402_v43 = vpop.permute.xlu0 %3401 }
0x3903   :  { %v3404_v26 = vmul.f32 %v4457_v38, %v3402_v43 }
0x3905   :  { %3406 = vrot.lane.b32.xlu1 %v3404_v26, %s4471_s21 }
0x3909   :  { %3435 = vrot.lane.b32.xlu1 %v5196_v54, %s4471_s21  ;;  %v4287_v54 = vpack.c.bf16 %v3425_v50, %v3424_v8 }
0x390b   :  { %4288 = vmatprep.subr.bf16.mxu1 %v4287_v54 }
0x390c   :  { %4290 = vmatpush3.bf16.msra.mxu1 %v4287_v54 }
0x390d   :  { %4292 = vmatprep.subr.bf16.mxu1 %v4291_v11 }
0x3910   :  { %4294 = vmatpush3.bf16.msra.mxu1 %v4291_v11 }
0x3977   :  { %v3407_v47 = vpop.permute.xlu1 %3406 }
0x3978   :  { %v3409_v46 = vadd.f32 %v3407_v47, %v3399_v48 }
0x397a   :  { %4458 = vtanh.f32 %v3409_v46 }
0x397b   :  { %v3436_v56 = vpop.permute.xlu1 %3435 }
0x397c   :  { %4128 = vmatprep.mubr.msk.f32.mxu1 %vm136_vm2, %v3436_v56 }
0x3984   :  { %v4459_v17 = vpop.eup %4458 }
0x3985   :  { %3412 = vrot.lane.b32.xlu0 %v4459_v17, %s4472_s24 }
0x39f7   :  { %v3413_v24 = vpop.permute.xlu0 %3412 }
0x39f8   :  { %v3415_v32 = vmul.f32 %v4457_v38, %v3413_v24 }
0x39fa   :  { %v3423_v16 = vsel %vm3418_vm9, %v3422_v44, %v3415_v32 }
0x39fb   :  { %3437 = vrot.lane.b32.xlu0 %v3423_v16, %s4471_s21 }
0x3a6d   :  { %v3438_v36 = vpop.permute.xlu0 %3437 }
0x3a6e   :  { %4129 = vmatmul.mubr.msk.f32.vlgmr.msra.gmra.mrb[20].mxu1 %vm136_vm2, %v3438_v36 }
0x3b41   :  { %v4130_v33 = vpop.f32.mrb[20].mxu1 }
0x3b42   :  { %v3515_v62 = vadd.f32 %v4130_v33, %v3726_v40  ;;  %v3509_v63 = vpop.f32.mrb[21].mxu1 }
0x3b43   :  { %v3510_v3 = vadd.f32 %v3726_v40, %v3509_v63 }
0x3b44   :  { %3520 = vst.msk [vmem:[%s5523_s4 + $0x8] sm:$0x3f] %vm3519_vm15, %v3515_v62 }
0x3b45   :  { %3518 = vst.msk [vmem:[%s5523_s4] sm:$0xff] %vm796_vm7, %v3510_v3 }

</bundles_post_ra>
